<compile_context>
chip_gen: v6e
topology: v6e:2x2x1
jax: 0.10.0
libtpu: 0.0.40
codegen_flags: <defaults>
</compile_context>

<pallas_src>
import functools

import jax
import jax.numpy as jnp
from jax.experimental import pallas as pl
from jax.experimental.pallas import tpu as pltpu


def nlinear_kernel(x_ref, w1_ref, b1_ref, w2_ref, b2_ref, w3_ref, b3_ref,
                   o_ref, *, L, D, P, C):
    # x_ref:  (L*C, TB)    one batch tile, batch in lanes
    # w1:     (L*D, L*C)   kron(I_L, W_in)
    # b1:     (L*D, 1)
    # w2:     (P*D, L*D)   kron(W_lin, I_D)
    # b2:     (P*D, 1)
    # w3:     (P*C, P*D)   kron(I_P, W_out)
    # b3:     (P*C, 1)
    # o_ref:  (P*C, TB)    lane-dense output slab
    tb = x_ref.shape[-1]

    # Input projection (enc_in -> d_model) for all L timesteps in one matmul.
    h = jnp.dot(w1_ref[...], x_ref[...],
                preferred_element_type=jnp.float32) + b1_ref[...]        # (L*D, TB) f32

    # NLinear normalization: subtract the last timestep (static sublane slice).
    seq_last = h[(L - 1) * D:, :]                                        # (D, TB)
    hn = (h.reshape(L, D, tb) - seq_last[None]).reshape(L * D, tb)       # (L*D, TB)

    # seq_len -> pred_len Linear, applied per d_model feature.
    y = jnp.dot(w2_ref[...], hn.astype(w2_ref.dtype),
                preferred_element_type=jnp.float32) + b2_ref[...]        # (P*D, TB)

    # Add back the last value, ReLU.
    y = (y.reshape(P, D, tb) + seq_last[None]).reshape(P * D, tb)
    y = jnp.maximum(y, 0.0)

    # Output projection (d_model -> enc_in).
    out = jnp.dot(w3_ref[...], y.astype(w3_ref.dtype),
                  preferred_element_type=jnp.float32) + b3_ref[...]      # (P*C, TB)
    o_ref[...] = out.astype(o_ref.dtype)


@functools.partial(jax.jit,
                   static_argnames=("pred_len", "compute_dtype", "batch_tile"))
def nlinear_forward(x, params, *, pred_len, compute_dtype=jnp.float32,
                    batch_tile=1024):
    B, L, C = x.shape
    D = params["w_in"].shape[0]
    P = pred_len
    f32 = jnp.float32

    # --- Kron-expanded weights (computed once by XLA, constant across grid steps) ---
    w_in = params["w_in"].astype(f32)      # (D, C)
    w_lin = params["w_lin"].astype(f32)    # (P, L)
    w_out = params["w_out"].astype(f32)    # (C, D)
    w1 = jnp.kron(jnp.eye(L, dtype=f32), w_in).astype(compute_dtype)    # (L*D, L*C)
    w2 = jnp.kron(w_lin, jnp.eye(D, dtype=f32)).astype(compute_dtype)   # (P*D, L*D)
    w3 = jnp.kron(jnp.eye(P, dtype=f32), w_out).astype(compute_dtype)   # (P*C, P*D)
    b1 = jnp.tile(params["b_in"].astype(f32), L).reshape(L * D, 1)      # b_in[d] per l
    b2 = jnp.repeat(params["b_lin"].astype(f32), D).reshape(P * D, 1)   # b_lin[p] per d
    b3 = jnp.tile(params["b_out"].astype(f32), P).reshape(P * C, 1)     # b_out[c] per p

    # --- Batch-in-lanes input layout: xB[l*C + c, b] = x[b, l, c] ---
    xB = jnp.transpose(x, (1, 2, 0)).reshape(L * C, B).astype(compute_dtype)

    # --- Batch tiling: whole batch per step when small, else multiple-of-128 tiles ---
    if B <= batch_tile:
        TB, Bp = B, B
    else:
        TB = batch_tile
        Bp = ((B + TB - 1) // TB) * TB
    if Bp != B:
        xB = jnp.pad(xB, ((0, 0), (0, Bp - B)))
    grid = (Bp // TB,)

    itemsize = jnp.dtype(compute_dtype).itemsize
    flops = 2 * Bp * (L * D * L * C + P * D * L * D + P * C * P * D)
    bytes_accessed = (L * C * Bp * itemsize + P * C * Bp * 4
                      + (w1.size + w2.size + w3.size) * itemsize
                      + (b1.size + b2.size + b3.size) * 4)

    kernel = functools.partial(nlinear_kernel, L=L, D=D, P=P, C=C)

    outT = pl.pallas_call(
        kernel,
        out_shape=jax.ShapeDtypeStruct((P * C, Bp), jnp.float32),
        grid_spec=pltpu.PrefetchScalarGridSpec(
            num_scalar_prefetch=0,
            grid=grid,
            in_specs=[
                pl.BlockSpec((L * C, TB), lambda b: (0, b)),      # xB tile
                pl.BlockSpec((L * D, L * C), lambda b: (0, 0)),   # w1
                pl.BlockSpec((L * D, 1), lambda b: (0, 0)),       # b1
                pl.BlockSpec((P * D, L * D), lambda b: (0, 0)),   # w2
                pl.BlockSpec((P * D, 1), lambda b: (0, 0)),       # b2
                pl.BlockSpec((P * C, P * D), lambda b: (0, 0)),   # w3
                pl.BlockSpec((P * C, 1), lambda b: (0, 0)),       # b3
            ],
            out_specs=pl.BlockSpec((P * C, TB), lambda b: (0, b)),
        ),
        compiler_params=pltpu.CompilerParams(
            dimension_semantics=("parallel",)),
        cost_estimate=pl.CostEstimate(
            flops=flops, transcendentals=0, bytes_accessed=bytes_accessed),
    )(xB, w1, b1, w2, b2, w3, b3)

    # (P*C, B) -> (B, P, C); layout plumbing stays in the XLA wrapper.
    out = jnp.transpose(outT[:, :B].reshape(P, C, B), (2, 0, 1))

    # TODO(synk): diff_loss requires the undefined Diffusion/UNet modules; return 0.
    diff_loss = jnp.float32(0.0)
    return out, diff_loss


def nlinear_reference(x, params):
    """Pure-JAX reference for the translated (deterministic) path."""
    h = x @ params["w_in"].T + params["b_in"]
    seq_last = h[:, -1:, :]
    hn = h - seq_last
    y = jnp.einsum("pl,bld->bpd", params["w_lin"], hn) + params["b_lin"][None, :, None]
    y = jnp.maximum(y + seq_last, 0.0)
    return y @ params["w_out"].T + params["b_out"]


def init_params(key, seq_len, pred_len, enc_in, d_model):
    ks = jax.random.split(key, 6)
    scale = 0.1
    return {
        "w_in": scale * jax.random.normal(ks[0], (d_model, enc_in), jnp.float32),
        "b_in": scale * jax.random.normal(ks[1], (d_model,), jnp.float32),
        "w_lin": scale * jax.random.normal(ks[2], (pred_len, seq_len), jnp.float32),
        "b_lin": scale * jax.random.normal(ks[3], (pred_len,), jnp.float32),
        "w_out": scale * jax.random.normal(ks[4], (enc_in, d_model), jnp.float32),
        "b_out": scale * jax.random.normal(ks[5], (enc_in,), jnp.float32),
    }


if __name__ == "__main__":
    B, seq_len, pred_len, enc_in, d_model = 2, 16, 8, 4, 32

    key = jax.random.PRNGKey(0)
    kx, kp = jax.random.split(key)
    x = jax.random.normal(kx, (B, seq_len, enc_in), jnp.float32)
    params = init_params(kp, seq_len, pred_len, enc_in, d_model)

    ref = nlinear_reference(x, params)

    # f32 path: bit-for-bit-ish check vs reference.
    out, diff_loss = nlinear_forward(x, params, pred_len=pred_len)
    out = jax.block_until_ready(out)
    assert out.shape == (B, pred_len, enc_in)
    assert jnp.allclose(out, ref, atol=1e-5, rtol=1e-5), "f32 mismatch vs reference"

    # bf16 MXU-native path (v6e/v7x): f32 accumulation, loose tolerance.
    out_bf16, _ = nlinear_forward(x, params, pred_len=pred_len,
                                  compute_dtype=jnp.bfloat16)
    out_bf16 = jax.block_until_ready(out_bf16)
    assert jnp.allclose(out_bf16, ref, atol=2e-2, rtol=2e-2), "bf16 mismatch vs reference"

    print("KERNEL_OK")
</pallas_src>

<mosaic_0001>
module attributes {stable_mosaic.version = 11 : i64} {
  func.func @nlinear_kernel(%arg0: i32, %arg1: memref<64x2xf32, #tpu.memory_space<vmem>>, %arg2: memref<512x64xf32, #tpu.memory_space<vmem>>, %arg3: memref<512x1xf32, #tpu.memory_space<vmem>>, %arg4: memref<256x512xf32, #tpu.memory_space<vmem>>, %arg5: memref<256x1xf32, #tpu.memory_space<vmem>>, %arg6: memref<32x256xf32, #tpu.memory_space<vmem>>, %arg7: memref<32x1xf32, #tpu.memory_space<vmem>>, %arg8: memref<32x2xf32, #tpu.memory_space<vmem>>) attributes {dimension_semantics = [#tpu.dimension_semantics<parallel>], iteration_bounds = array<i64: 1>, scalar_prefetch = 0 : i64, scratch_operands = 0 : i64, tpu.core_type = #tpu.core_type<tc>, window_params = [{transform_indices = @transform_0, window_bounds = array<i64: 64, 2>}, {pipeline_mode = #tpu.pipeline_mode<synchronous>, transform_indices = @transform_1, window_bounds = array<i64: 512, 64>}, {pipeline_mode = #tpu.pipeline_mode<synchronous>, transform_indices = @transform_2, window_bounds = array<i64: 512, 1>}, {pipeline_mode = #tpu.pipeline_mode<synchronous>, transform_indices = @transform_3, window_bounds = array<i64: 256, 512>}, {pipeline_mode = #tpu.pipeline_mode<synchronous>, transform_indices = @transform_4, window_bounds = array<i64: 256, 1>}, {pipeline_mode = #tpu.pipeline_mode<synchronous>, transform_indices = @transform_5, window_bounds = array<i64: 32, 256>}, {pipeline_mode = #tpu.pipeline_mode<synchronous>, transform_indices = @transform_6, window_bounds = array<i64: 32, 1>}, {transform_indices = @transform_7, window_bounds = array<i64: 32, 2>}]} {
    %c0 = arith.constant 0 : index
    %c0_0 = arith.constant 0 : index
    %0 = vector.load %arg2[%c0, %c0_0] : memref<512x64xf32, #tpu.memory_space<vmem>>, vector<512x64xf32>
    %c0_1 = arith.constant 0 : index
    %c0_2 = arith.constant 0 : index
    %1 = vector.load %arg1[%c0_1, %c0_2] : memref<64x2xf32, #tpu.memory_space<vmem>>, vector<64x2xf32>
    %cst = arith.constant dense<0.000000e+00> : vector<512x2xf32>
    %2 = tpu.matmul %0, %1, %cst {dimension_numbers = #tpu.dot_dimension_numbers<[1], [0], [0], [1], [0, 0, 1, 1], [], []>} : vector<512x64xf32>, vector<64x2xf32>, vector<512x2xf32> -> vector<512x2xf32>
    %c0_3 = arith.constant 0 : index
    %c0_4 = arith.constant 0 : index
    %3 = vector.load %arg3[%c0_3, %c0_4] : memref<512x1xf32, #tpu.memory_space<vmem>>, vector<512x1xf32>
    %4 = vector.broadcast %3 : vector<512x1xf32> to vector<512x2xf32>
    %5 = arith.addf %2, %4 : vector<512x2xf32>
    %6 = vector.extract_strided_slice %5 {offsets = [480, 0], sizes = [32, 2], strides = [1, 1]} : vector<512x2xf32> to vector<32x2xf32>
    %7 = vector.shape_cast %5 : vector<512x2xf32> to vector<16x32x2xf32>
    %8 = vector.shape_cast %6 : vector<32x2xf32> to vector<1x32x2xf32>
    %9 = vector.broadcast %8 : vector<1x32x2xf32> to vector<16x32x2xf32>
    %10 = arith.subf %7, %9 : vector<16x32x2xf32>
    %11 = vector.shape_cast %10 : vector<16x32x2xf32> to vector<512x2xf32>
    %c0_5 = arith.constant 0 : index
    %c0_6 = arith.constant 0 : index
    %12 = vector.load %arg4[%c0_5, %c0_6] : memref<256x512xf32, #tpu.memory_space<vmem>>, vector<256x512xf32>
    %cst_7 = arith.constant dense<0.000000e+00> : vector<256x2xf32>
    %13 = tpu.matmul %12, %11, %cst_7 {dimension_numbers = #tpu.dot_dimension_numbers<[1], [0], [0], [1], [0, 0, 1, 1], [], []>} : vector<256x512xf32>, vector<512x2xf32>, vector<256x2xf32> -> vector<256x2xf32>
    %c0_8 = arith.constant 0 : index
    %c0_9 = arith.constant 0 : index
    %14 = vector.load %arg5[%c0_8, %c0_9] : memref<256x1xf32, #tpu.memory_space<vmem>>, vector<256x1xf32>
    %15 = vector.broadcast %14 : vector<256x1xf32> to vector<256x2xf32>
    %16 = arith.addf %13, %15 : vector<256x2xf32>
    %17 = vector.shape_cast %16 : vector<256x2xf32> to vector<8x32x2xf32>
    %18 = vector.shape_cast %6 : vector<32x2xf32> to vector<1x32x2xf32>
    %19 = vector.broadcast %18 : vector<1x32x2xf32> to vector<8x32x2xf32>
    %20 = arith.addf %17, %19 : vector<8x32x2xf32>
    %21 = vector.shape_cast %20 : vector<8x32x2xf32> to vector<256x2xf32>
    %cst_10 = arith.constant 0.000000e+00 : f32
    %22 = vector.broadcast %cst_10 : f32 to vector<256x2xf32>
    %23 = arith.maximumf %21, %22 : vector<256x2xf32>
    %c0_11 = arith.constant 0 : index
    %c0_12 = arith.constant 0 : index
    %24 = vector.load %arg6[%c0_11, %c0_12] : memref<32x256xf32, #tpu.memory_space<vmem>>, vector<32x256xf32>
    %cst_13 = arith.constant dense<0.000000e+00> : vector<32x2xf32>
    %25 = tpu.matmul %24, %23, %cst_13 {dimension_numbers = #tpu.dot_dimension_numbers<[1], [0], [0], [1], [0, 0, 1, 1], [], []>} : vector<32x256xf32>, vector<256x2xf32>, vector<32x2xf32> -> vector<32x2xf32>
    %c0_14 = arith.constant 0 : index
    %c0_15 = arith.constant 0 : index
    %26 = vector.load %arg7[%c0_14, %c0_15] : memref<32x1xf32, #tpu.memory_space<vmem>>, vector<32x1xf32>
    %27 = vector.broadcast %26 : vector<32x1xf32> to vector<32x2xf32>
    %28 = arith.addf %25, %27 : vector<32x2xf32>
    %c0_16 = arith.constant 0 : index
    %c0_17 = arith.constant 0 : index
    %29 = vector.load %arg8[%c0_16, %c0_17] : memref<32x2xf32, #tpu.memory_space<vmem>>, vector<32x2xf32>
    tpu.vector_store %arg8[%c0_16, %c0_17], %28 {strides = array<i32>} : memref<32x2xf32, #tpu.memory_space<vmem>>, vector<32x2xf32>,
    return
  }
  func.func @transform_0(%arg0: i32) -> (i32, i32) {
    %c0_i32 = arith.constant 0 : i32
    %c0_i32_0 = arith.constant 0 : i32
    return %c0_i32, %arg0 : i32, i32
  }
  func.func @transform_1(%arg0: i32) -> (i32, i32) {
    %c0_i32 = arith.constant 0 : i32
    %c0_i32_0 = arith.constant 0 : i32
    %c0_i32_1 = arith.constant 0 : i32
    return %c0_i32, %c0_i32_0 : i32, i32
  }
  func.func @transform_2(%arg0: i32) -> (i32, i32) {
    %c0_i32 = arith.constant 0 : i32
    %c0_i32_0 = arith.constant 0 : i32
    %c0_i32_1 = arith.constant 0 : i32
    return %c0_i32, %c0_i32_0 : i32, i32
  }
  func.func @transform_3(%arg0: i32) -> (i32, i32) {
    %c0_i32 = arith.constant 0 : i32
    %c0_i32_0 = arith.constant 0 : i32
    %c0_i32_1 = arith.constant 0 : i32
    return %c0_i32, %c0_i32_0 : i32, i32
  }
  func.func @transform_4(%arg0: i32) -> (i32, i32) {
    %c0_i32 = arith.constant 0 : i32
    %c0_i32_0 = arith.constant 0 : i32
    %c0_i32_1 = arith.constant 0 : i32
    return %c0_i32, %c0_i32_0 : i32, i32
  }
  func.func @transform_5(%arg0: i32) -> (i32, i32) {
    %c0_i32 = arith.constant 0 : i32
    %c0_i32_0 = arith.constant 0 : i32
    %c0_i32_1 = arith.constant 0 : i32
    return %c0_i32, %c0_i32_0 : i32, i32
  }
  func.func @transform_6(%arg0: i32) -> (i32, i32) {
    %c0_i32 = arith.constant 0 : i32
    %c0_i32_0 = arith.constant 0 : i32
    %c0_i32_1 = arith.constant 0 : i32
    return %c0_i32, %c0_i32_0 : i32, i32
  }
  func.func @transform_7(%arg0: i32) -> (i32, i32) {
    %c0_i32 = arith.constant 0 : i32
    %c0_i32_0 = arith.constant 0 : i32
    return %c0_i32, %arg0 : i32, i32
  }
}

</mosaic_0001>

<bundles_post_ra>
// kernel: tile.13
= control target key start
LH: loop header
LB: loop body
LE: loop exit
PB: predicated region body
PF: predicated region fallthrough
CT: control target
= control target key end

     0   :  { %s28_s0 = inlined_call_operand.vmem [shape: f32[32], index: 0, kind: input, shape index: {}]   ;;  %s29_s1 = inlined_call_operand.vmem [shape: f32[16,32], index: 1, kind: output, shape index: {}]  }
   0x1   :  { %v4_v0 = vld [vmem:[%s28_s0] ss:$0 sm:$0xff] }
   0x2   :  { %5 = vst [vmem:[%s29_s1] sm:$0xff] %v4_v0  ;;  %8 = vst [vmem:[%s29_s1 + $0x8] sm:$0xff] %v4_v0 }

// kernel: tile.0
= control target key start
LH: loop header
LB: loop body
LE: loop exit
PB: predicated region body
PF: predicated region fallthrough
CT: control target
= control target key end

     0   :  { %s1883_s8 = smov 126   ;;  %s1884_s9 = smov 127   ;;  %vm3_vm0 = vcmask 7168   ;;  %s4050_s0 = inlined_call_operand.vmem [shape: f32[16,32], index: 0, kind: input, shape index: {}]   ;;  %s4051_s1 = inlined_call_operand.vmem [shape: f32[512,1], index: 1, kind: output, shape index: {}]  }
   0x1   :  { %v1927_v0 = vld [vmem:[%s4050_s0] sm:$0xff]   ;;  %v1934_v1 = vld [vmem:[%s4050_s0 + $0x8] sm:$0xff]   ;;  %s1885_s12 = smov 125   ;;  %s1886_s13 = smov 124  }
   0x2   :  { %80 = vrot.lane.b32.xlu1 %v1927_v0, %s1883_s8  ;;  %39 = vrot.lane.b32.xlu0 %v1927_v0, %s1884_s9  ;;  %s1887_s14 = smov 123   ;;  %s1888_s15 = smov 122   ;;  %v2_v2 = vld [vmem:[%s4050_s0] sm:$0xff]   ;;  %v1316_v3 = vld [vmem:[%s4050_s0 + $0x8] sm:$0xff]  }
   0x3   :  { %s1889_s16 = smov 121   ;;  %s1890_s17 = smov 120   ;;  %4 = vst.msk [vmem:[%s4051_s1] sm:$0x1] %vm3_vm0, %v2_v2   ;;  %1309 = vst.msk [vmem:[%s4051_s1 + $0x1f] sm:$0x2] %vm3_vm0, %v2_v2  }
   0x4   :  { %s1891_s18 = smov 119   ;;  %s1892_s19 = smov 118   ;;  %1310 = vst.msk [vmem:[%s4051_s1 + $0x3e] sm:$0x4] %vm3_vm0, %v2_v2   ;;  %1311 = vst.msk [vmem:[%s4051_s1 + $0x5d] sm:$0x8] %vm3_vm0, %v2_v2  }
   0x5   :  { %s1893_s20 = smov 117   ;;  %s1894_s21 = smov 116   ;;  %1312 = vst.msk [vmem:[%s4051_s1 + $0x7c] sm:$0x10] %vm3_vm0, %v2_v2   ;;  %1313 = vst.msk [vmem:[%s4051_s1 + $0x9b] sm:$0x20] %vm3_vm0, %v2_v2  }
   0x6   :  { %101 = vrot.lane.b32.xlu1 %v1934_v1, %s1883_s8  ;;  %60 = vrot.lane.b32.xlu0 %v1934_v1, %s1884_s9  ;;  %s1895_s22 = smov 115   ;;  %s1896_s23 = smov 114   ;;  %1314 = vst.msk [vmem:[%s4051_s1 + $0xba] sm:$0x40] %vm3_vm0, %v2_v2   ;;  %1315 = vst.msk [vmem:[%s4051_s1 + $0xd9] sm:$0x80] %vm3_vm0, %v2_v2  }
   0x7   :  { %s1897_s24 = smov 113   ;;  %s1898_s25 = smov 112   ;;  %1317 = vst.msk [vmem:[%s4051_s1 + $0x100] sm:$0x1] %vm3_vm0, %v1316_v3   ;;  %1318 = vst.msk [vmem:[%s4051_s1 + $0x11f] sm:$0x2] %vm3_vm0, %v1316_v3  }
   0x8   :  { %s1899_s26 = smov 111   ;;  %s1900_s27 = smov 110   ;;  %1319 = vst.msk [vmem:[%s4051_s1 + $0x13e] sm:$0x4] %vm3_vm0, %v1316_v3   ;;  %1320 = vst.msk [vmem:[%s4051_s1 + $0x15d] sm:$0x8] %vm3_vm0, %v1316_v3  }
   0x9   :  { %s1901_s28 = smov 109   ;;  %s1902_s29 = smov 108   ;;  %1321 = vst.msk [vmem:[%s4051_s1 + $0x17c] sm:$0x10] %vm3_vm0, %v1316_v3   ;;  %1322 = vst.msk [vmem:[%s4051_s1 + $0x19b] sm:$0x20] %vm3_vm0, %v1316_v3  }
   0xa   :  { %142 = vrot.lane.b32.xlu1 %v1934_v1, %s1885_s12  ;;  %121 = vrot.lane.b32.xlu0 %v1927_v0, %s1885_s12  ;;  %s1903_s30 = smov 107   ;;  %s1904_s2 = smov 106   ;;  %1323 = vst.msk [vmem:[%s4051_s1 + $0x1ba] sm:$0x40] %vm3_vm0, %v1316_v3   ;;  %1324 = vst.msk [vmem:[%s4051_s1 + $0x1d9] sm:$0x80] %vm3_vm0, %v1316_v3  }
   0xb   :  { %s1905_s3 = smov 105   ;;  %s1906_s4 = smov 104  }
   0xc   :  { %s1907_s5 = smov 103   ;;  %s1908_s6 = smov 102  }
   0xd   :  { %s1909_s7 = smov 101  }
   0xe   :  { %183 = vrot.lane.b32.xlu1 %v1934_v1, %s1886_s13  ;;  %162 = vrot.lane.b32.xlu0 %v1927_v0, %s1886_s13  ;;  %s1910_s13 = smov 100  }
  0x12   :  { %224 = vrot.lane.b32.xlu1 %v1934_v1, %s1887_s14  ;;  %203 = vrot.lane.b32.xlu0 %v1927_v0, %s1887_s14  ;;  %s1911_s14 = smov 99  }
  0x16   :  { %265 = vrot.lane.b32.xlu1 %v1934_v1, %s1888_s15  ;;  %244 = vrot.lane.b32.xlu0 %v1927_v0, %s1888_s15 }
  0x1a   :  { %306 = vrot.lane.b32.xlu1 %v1934_v1, %s1889_s16  ;;  %285 = vrot.lane.b32.xlu0 %v1927_v0, %s1889_s16 }
  0x1e   :  { %347 = vrot.lane.b32.xlu1 %v1934_v1, %s1890_s17  ;;  %326 = vrot.lane.b32.xlu0 %v1927_v0, %s1890_s17  ;;  %s1912_s17 = smov 98  }
  0x22   :  { %388 = vrot.lane.b32.xlu1 %v1934_v1, %s1891_s18  ;;  %367 = vrot.lane.b32.xlu0 %v1927_v0, %s1891_s18 }
  0x26   :  { %429 = vrot.lane.b32.xlu1 %v1934_v1, %s1892_s19  ;;  %408 = vrot.lane.b32.xlu0 %v1927_v0, %s1892_s19 }
  0x2a   :  { %470 = vrot.lane.b32.xlu1 %v1934_v1, %s1893_s20  ;;  %449 = vrot.lane.b32.xlu0 %v1927_v0, %s1893_s20  ;;  %s1913_s20 = smov 97  }
  0x2e   :  { %511 = vrot.lane.b32.xlu1 %v1934_v1, %s1894_s21  ;;  %490 = vrot.lane.b32.xlu0 %v1927_v0, %s1894_s21 }
  0x32   :  { %552 = vrot.lane.b32.xlu1 %v1934_v1, %s1895_s22  ;;  %531 = vrot.lane.b32.xlu0 %v1927_v0, %s1895_s22 }
  0x36   :  { %593 = vrot.lane.b32.xlu1 %v1934_v1, %s1896_s23  ;;  %572 = vrot.lane.b32.xlu0 %v1927_v0, %s1896_s23 }
  0x3a   :  { %634 = vrot.lane.b32.xlu1 %v1934_v1, %s1897_s24  ;;  %613 = vrot.lane.b32.xlu0 %v1927_v0, %s1897_s24 }
  0x3e   :  { %675 = vrot.lane.b32.xlu1 %v1934_v1, %s1898_s25  ;;  %654 = vrot.lane.b32.xlu0 %v1927_v0, %s1898_s25 }
  0x42   :  { %716 = vrot.lane.b32.xlu1 %v1934_v1, %s1899_s26  ;;  %695 = vrot.lane.b32.xlu0 %v1927_v0, %s1899_s26 }
  0x46   :  { %757 = vrot.lane.b32.xlu1 %v1934_v1, %s1900_s27  ;;  %736 = vrot.lane.b32.xlu0 %v1927_v0, %s1900_s27 }
  0x4a   :  { %798 = vrot.lane.b32.xlu1 %v1934_v1, %s1901_s28  ;;  %777 = vrot.lane.b32.xlu0 %v1927_v0, %s1901_s28 }
  0x4e   :  { %839 = vrot.lane.b32.xlu1 %v1934_v1, %s1902_s29  ;;  %818 = vrot.lane.b32.xlu0 %v1927_v0, %s1902_s29 }
  0x52   :  { %880 = vrot.lane.b32.xlu1 %v1934_v1, %s1903_s30  ;;  %859 = vrot.lane.b32.xlu0 %v1927_v0, %s1903_s30 }
  0x56   :  { %921 = vrot.lane.b32.xlu1 %v1934_v1, %s1904_s2  ;;  %900 = vrot.lane.b32.xlu0 %v1927_v0, %s1904_s2 }
  0x5a   :  { %962 = vrot.lane.b32.xlu1 %v1934_v1, %s1905_s3  ;;  %941 = vrot.lane.b32.xlu0 %v1927_v0, %s1905_s3 }
  0x5e   :  { %1003 = vrot.lane.b32.xlu1 %v1934_v1, %s1906_s4  ;;  %982 = vrot.lane.b32.xlu0 %v1927_v0, %s1906_s4 }
  0x62   :  { %1044 = vrot.lane.b32.xlu1 %v1934_v1, %s1907_s5  ;;  %1023 = vrot.lane.b32.xlu0 %v1927_v0, %s1907_s5 }
  0x66   :  { %1085 = vrot.lane.b32.xlu1 %v1934_v1, %s1908_s6  ;;  %1064 = vrot.lane.b32.xlu0 %v1927_v0, %s1908_s6 }
  0x6a   :  { %1126 = vrot.lane.b32.xlu1 %v1934_v1, %s1909_s7  ;;  %1105 = vrot.lane.b32.xlu0 %v1927_v0, %s1909_s7 }
  0x6e   :  { %1167 = vrot.lane.b32.xlu1 %v1934_v1, %s1910_s13  ;;  %1146 = vrot.lane.b32.xlu0 %v1927_v0, %s1910_s13 }
  0x72   :  { %1208 = vrot.lane.b32.xlu1 %v1934_v1, %s1911_s14  ;;  %1187 = vrot.lane.b32.xlu0 %v1927_v0, %s1911_s14 }
  0x74   :  { %v81_v4 = vpop.permute.xlu1 %80   ;;  %v40_v5 = vpop.permute.xlu0 %39  }
  0x75   :  { %1342 = vst.msk [vmem:[%s4051_s1 + $0x2] sm:$0x1] %vm3_vm0, %v81_v4   ;;  %1343 = vst.msk [vmem:[%s4051_s1 + $0x21] sm:$0x2] %vm3_vm0, %v81_v4  }
  0x76   :  { %1344 = vst.msk [vmem:[%s4051_s1 + $0x40] sm:$0x4] %vm3_vm0, %v81_v4   ;;  %1345 = vst.msk [vmem:[%s4051_s1 + $0x5f] sm:$0x8] %vm3_vm0, %v81_v4   ;;  %1249 = vrot.lane.b32.xlu1 %v1934_v1, %s1912_s17  ;;  %1228 = vrot.lane.b32.xlu0 %v1927_v0, %s1912_s17 }
  0x77   :  { %1346 = vst.msk [vmem:[%s4051_s1 + $0x7e] sm:$0x10] %vm3_vm0, %v81_v4   ;;  %1347 = vst.msk [vmem:[%s4051_s1 + $0x9d] sm:$0x20] %vm3_vm0, %v81_v4  }
  0x78   :  { %1348 = vst.msk [vmem:[%s4051_s1 + $0xbc] sm:$0x40] %vm3_vm0, %v81_v4   ;;  %1349 = vst.msk [vmem:[%s4051_s1 + $0xdb] sm:$0x80] %vm3_vm0, %v81_v4   ;;  %v102_v6 = vpop.permute.xlu1 %101   ;;  %v61_v7 = vpop.permute.xlu0 %60  }
  0x79   :  { %1325 = vst.msk [vmem:[%s4051_s1 + $0x1] sm:$0x1] %vm3_vm0, %v40_v5   ;;  %1326 = vst.msk [vmem:[%s4051_s1 + $0x20] sm:$0x2] %vm3_vm0, %v40_v5  }
  0x7a   :  { %1327 = vst.msk [vmem:[%s4051_s1 + $0x3f] sm:$0x4] %vm3_vm0, %v40_v5   ;;  %1328 = vst.msk [vmem:[%s4051_s1 + $0x5e] sm:$0x8] %vm3_vm0, %v40_v5   ;;  %1290 = vrot.lane.b32.xlu1 %v1934_v1, %s1913_s20  ;;  %1269 = vrot.lane.b32.xlu0 %v1927_v0, %s1913_s20 }
  0x7b   :  { %1329 = vst.msk [vmem:[%s4051_s1 + $0x7d] sm:$0x10] %vm3_vm0, %v40_v5   ;;  %1330 = vst.msk [vmem:[%s4051_s1 + $0x9c] sm:$0x20] %vm3_vm0, %v40_v5  }
  0x7c   :  { %1331 = vst.msk [vmem:[%s4051_s1 + $0xbb] sm:$0x40] %vm3_vm0, %v40_v5   ;;  %1332 = vst.msk [vmem:[%s4051_s1 + $0xda] sm:$0x80] %vm3_vm0, %v40_v5   ;;  %v143_v8 = vpop.permute.xlu1 %142   ;;  %v122_v9 = vpop.permute.xlu0 %121  }
  0x7d   :  { %1351 = vst.msk [vmem:[%s4051_s1 + $0x102] sm:$0x1] %vm3_vm0, %v102_v6   ;;  %1352 = vst.msk [vmem:[%s4051_s1 + $0x121] sm:$0x2] %vm3_vm0, %v102_v6  }
  0x7e   :  { %1353 = vst.msk [vmem:[%s4051_s1 + $0x140] sm:$0x4] %vm3_vm0, %v102_v6   ;;  %1354 = vst.msk [vmem:[%s4051_s1 + $0x15f] sm:$0x8] %vm3_vm0, %v102_v6  }
  0x7f   :  { %1355 = vst.msk [vmem:[%s4051_s1 + $0x17e] sm:$0x10] %vm3_vm0, %v102_v6   ;;  %1356 = vst.msk [vmem:[%s4051_s1 + $0x19d] sm:$0x20] %vm3_vm0, %v102_v6  }
  0x80   :  { %1357 = vst.msk [vmem:[%s4051_s1 + $0x1bc] sm:$0x40] %vm3_vm0, %v102_v6   ;;  %1358 = vst.msk [vmem:[%s4051_s1 + $0x1db] sm:$0x80] %vm3_vm0, %v102_v6   ;;  %v184_v10 = vpop.permute.xlu1 %183   ;;  %v163_v11 = vpop.permute.xlu0 %162  }
  0x81   :  { %1334 = vst.msk [vmem:[%s4051_s1 + $0x101] sm:$0x1] %vm3_vm0, %v61_v7   ;;  %1335 = vst.msk [vmem:[%s4051_s1 + $0x120] sm:$0x2] %vm3_vm0, %v61_v7  }
  0x82   :  { %1336 = vst.msk [vmem:[%s4051_s1 + $0x13f] sm:$0x4] %vm3_vm0, %v61_v7   ;;  %1337 = vst.msk [vmem:[%s4051_s1 + $0x15e] sm:$0x8] %vm3_vm0, %v61_v7  }
  0x83   :  { %1338 = vst.msk [vmem:[%s4051_s1 + $0x17d] sm:$0x10] %vm3_vm0, %v61_v7   ;;  %1339 = vst.msk [vmem:[%s4051_s1 + $0x19c] sm:$0x20] %vm3_vm0, %v61_v7  }
  0x84   :  { %1340 = vst.msk [vmem:[%s4051_s1 + $0x1bb] sm:$0x40] %vm3_vm0, %v61_v7   ;;  %1341 = vst.msk [vmem:[%s4051_s1 + $0x1da] sm:$0x80] %vm3_vm0, %v61_v7   ;;  %v225_v12 = vpop.permute.xlu1 %224   ;;  %v204_v13 = vpop.permute.xlu0 %203  }
  0x85   :  { %1368 = vst.msk [vmem:[%s4051_s1 + $0x103] sm:$0x1] %vm3_vm0, %v143_v8   ;;  %1369 = vst.msk [vmem:[%s4051_s1 + $0x122] sm:$0x2] %vm3_vm0, %v143_v8  }
  0x86   :  { %1370 = vst.msk [vmem:[%s4051_s1 + $0x141] sm:$0x4] %vm3_vm0, %v143_v8   ;;  %1371 = vst.msk [vmem:[%s4051_s1 + $0x160] sm:$0x8] %vm3_vm0, %v143_v8  }
  0x87   :  { %1372 = vst.msk [vmem:[%s4051_s1 + $0x17f] sm:$0x10] %vm3_vm0, %v143_v8   ;;  %1373 = vst.msk [vmem:[%s4051_s1 + $0x19e] sm:$0x20] %vm3_vm0, %v143_v8  }
  0x88   :  { %1374 = vst.msk [vmem:[%s4051_s1 + $0x1bd] sm:$0x40] %vm3_vm0, %v143_v8   ;;  %1375 = vst.msk [vmem:[%s4051_s1 + $0x1dc] sm:$0x80] %vm3_vm0, %v143_v8   ;;  %v266_v14 = vpop.permute.xlu1 %265   ;;  %v245_v15 = vpop.permute.xlu0 %244  }
  0x89   :  { %1359 = vst.msk [vmem:[%s4051_s1 + $0x3] sm:$0x1] %vm3_vm0, %v122_v9   ;;  %1360 = vst.msk [vmem:[%s4051_s1 + $0x22] sm:$0x2] %vm3_vm0, %v122_v9  }
  0x8a   :  { %1361 = vst.msk [vmem:[%s4051_s1 + $0x41] sm:$0x4] %vm3_vm0, %v122_v9   ;;  %1362 = vst.msk [vmem:[%s4051_s1 + $0x60] sm:$0x8] %vm3_vm0, %v122_v9  }
  0x8b   :  { %1363 = vst.msk [vmem:[%s4051_s1 + $0x7f] sm:$0x10] %vm3_vm0, %v122_v9   ;;  %1364 = vst.msk [vmem:[%s4051_s1 + $0x9e] sm:$0x20] %vm3_vm0, %v122_v9  }
  0x8c   :  { %1365 = vst.msk [vmem:[%s4051_s1 + $0xbd] sm:$0x40] %vm3_vm0, %v122_v9   ;;  %1366 = vst.msk [vmem:[%s4051_s1 + $0xdc] sm:$0x80] %vm3_vm0, %v122_v9   ;;  %v307_v16 = vpop.permute.xlu1 %306   ;;  %v286_v17 = vpop.permute.xlu0 %285  }
  0x8d   :  { %1385 = vst.msk [vmem:[%s4051_s1 + $0x104] sm:$0x1] %vm3_vm0, %v184_v10   ;;  %1386 = vst.msk [vmem:[%s4051_s1 + $0x123] sm:$0x2] %vm3_vm0, %v184_v10  }
  0x8e   :  { %1387 = vst.msk [vmem:[%s4051_s1 + $0x142] sm:$0x4] %vm3_vm0, %v184_v10   ;;  %1388 = vst.msk [vmem:[%s4051_s1 + $0x161] sm:$0x8] %vm3_vm0, %v184_v10  }
  0x8f   :  { %1389 = vst.msk [vmem:[%s4051_s1 + $0x180] sm:$0x10] %vm3_vm0, %v184_v10   ;;  %1390 = vst.msk [vmem:[%s4051_s1 + $0x19f] sm:$0x20] %vm3_vm0, %v184_v10  }
  0x90   :  { %1391 = vst.msk [vmem:[%s4051_s1 + $0x1be] sm:$0x40] %vm3_vm0, %v184_v10   ;;  %1392 = vst.msk [vmem:[%s4051_s1 + $0x1dd] sm:$0x80] %vm3_vm0, %v184_v10   ;;  %v348_v18 = vpop.permute.xlu1 %347   ;;  %v327_v19 = vpop.permute.xlu0 %326  }
  0x91   :  { %1376 = vst.msk [vmem:[%s4051_s1 + $0x4] sm:$0x1] %vm3_vm0, %v163_v11   ;;  %1377 = vst.msk [vmem:[%s4051_s1 + $0x23] sm:$0x2] %vm3_vm0, %v163_v11  }
  0x92   :  { %1378 = vst.msk [vmem:[%s4051_s1 + $0x42] sm:$0x4] %vm3_vm0, %v163_v11   ;;  %1379 = vst.msk [vmem:[%s4051_s1 + $0x61] sm:$0x8] %vm3_vm0, %v163_v11  }
  0x93   :  { %1380 = vst.msk [vmem:[%s4051_s1 + $0x80] sm:$0x10] %vm3_vm0, %v163_v11   ;;  %1381 = vst.msk [vmem:[%s4051_s1 + $0x9f] sm:$0x20] %vm3_vm0, %v163_v11  }
  0x94   :  { %1382 = vst.msk [vmem:[%s4051_s1 + $0xbe] sm:$0x40] %vm3_vm0, %v163_v11   ;;  %1383 = vst.msk [vmem:[%s4051_s1 + $0xdd] sm:$0x80] %vm3_vm0, %v163_v11   ;;  %v389_v20 = vpop.permute.xlu1 %388   ;;  %v368_v21 = vpop.permute.xlu0 %367  }
  0x95   :  { %1402 = vst.msk [vmem:[%s4051_s1 + $0x105] sm:$0x1] %vm3_vm0, %v225_v12   ;;  %1403 = vst.msk [vmem:[%s4051_s1 + $0x124] sm:$0x2] %vm3_vm0, %v225_v12  }
  0x96   :  { %1404 = vst.msk [vmem:[%s4051_s1 + $0x143] sm:$0x4] %vm3_vm0, %v225_v12   ;;  %1405 = vst.msk [vmem:[%s4051_s1 + $0x162] sm:$0x8] %vm3_vm0, %v225_v12  }
  0x97   :  { %1406 = vst.msk [vmem:[%s4051_s1 + $0x181] sm:$0x10] %vm3_vm0, %v225_v12   ;;  %1407 = vst.msk [vmem:[%s4051_s1 + $0x1a0] sm:$0x20] %vm3_vm0, %v225_v12  }
  0x98   :  { %1408 = vst.msk [vmem:[%s4051_s1 + $0x1bf] sm:$0x40] %vm3_vm0, %v225_v12   ;;  %1409 = vst.msk [vmem:[%s4051_s1 + $0x1de] sm:$0x80] %vm3_vm0, %v225_v12   ;;  %v430_v22 = vpop.permute.xlu1 %429   ;;  %v409_v23 = vpop.permute.xlu0 %408  }
  0x99   :  { %1393 = vst.msk [vmem:[%s4051_s1 + $0x5] sm:$0x1] %vm3_vm0, %v204_v13   ;;  %1394 = vst.msk [vmem:[%s4051_s1 + $0x24] sm:$0x2] %vm3_vm0, %v204_v13  }
  0x9a   :  { %1395 = vst.msk [vmem:[%s4051_s1 + $0x43] sm:$0x4] %vm3_vm0, %v204_v13   ;;  %1396 = vst.msk [vmem:[%s4051_s1 + $0x62] sm:$0x8] %vm3_vm0, %v204_v13  }
  0x9b   :  { %1397 = vst.msk [vmem:[%s4051_s1 + $0x81] sm:$0x10] %vm3_vm0, %v204_v13   ;;  %1398 = vst.msk [vmem:[%s4051_s1 + $0xa0] sm:$0x20] %vm3_vm0, %v204_v13  }
  0x9c   :  { %1399 = vst.msk [vmem:[%s4051_s1 + $0xbf] sm:$0x40] %vm3_vm0, %v204_v13   ;;  %1400 = vst.msk [vmem:[%s4051_s1 + $0xde] sm:$0x80] %vm3_vm0, %v204_v13   ;;  %v471_v24 = vpop.permute.xlu1 %470   ;;  %v450_v25 = vpop.permute.xlu0 %449  }
  0x9d   :  { %1419 = vst.msk [vmem:[%s4051_s1 + $0x106] sm:$0x1] %vm3_vm0, %v266_v14   ;;  %1420 = vst.msk [vmem:[%s4051_s1 + $0x125] sm:$0x2] %vm3_vm0, %v266_v14  }
  0x9e   :  { %1421 = vst.msk [vmem:[%s4051_s1 + $0x144] sm:$0x4] %vm3_vm0, %v266_v14   ;;  %1422 = vst.msk [vmem:[%s4051_s1 + $0x163] sm:$0x8] %vm3_vm0, %v266_v14  }
  0x9f   :  { %1423 = vst.msk [vmem:[%s4051_s1 + $0x182] sm:$0x10] %vm3_vm0, %v266_v14   ;;  %1424 = vst.msk [vmem:[%s4051_s1 + $0x1a1] sm:$0x20] %vm3_vm0, %v266_v14  }
  0xa0   :  { %1425 = vst.msk [vmem:[%s4051_s1 + $0x1c0] sm:$0x40] %vm3_vm0, %v266_v14   ;;  %1426 = vst.msk [vmem:[%s4051_s1 + $0x1df] sm:$0x80] %vm3_vm0, %v266_v14   ;;  %v512_v26 = vpop.permute.xlu1 %511   ;;  %v491_v27 = vpop.permute.xlu0 %490  }
  0xa1   :  { %1410 = vst.msk [vmem:[%s4051_s1 + $0x6] sm:$0x1] %vm3_vm0, %v245_v15   ;;  %1411 = vst.msk [vmem:[%s4051_s1 + $0x25] sm:$0x2] %vm3_vm0, %v245_v15  }
  0xa2   :  { %1412 = vst.msk [vmem:[%s4051_s1 + $0x44] sm:$0x4] %vm3_vm0, %v245_v15   ;;  %1413 = vst.msk [vmem:[%s4051_s1 + $0x63] sm:$0x8] %vm3_vm0, %v245_v15  }
  0xa3   :  { %1414 = vst.msk [vmem:[%s4051_s1 + $0x82] sm:$0x10] %vm3_vm0, %v245_v15   ;;  %1415 = vst.msk [vmem:[%s4051_s1 + $0xa1] sm:$0x20] %vm3_vm0, %v245_v15  }
  0xa4   :  { %1416 = vst.msk [vmem:[%s4051_s1 + $0xc0] sm:$0x40] %vm3_vm0, %v245_v15   ;;  %1417 = vst.msk [vmem:[%s4051_s1 + $0xdf] sm:$0x80] %vm3_vm0, %v245_v15   ;;  %v553_v28 = vpop.permute.xlu1 %552   ;;  %v532_v29 = vpop.permute.xlu0 %531  }
  0xa5   :  { %1436 = vst.msk [vmem:[%s4051_s1 + $0x107] sm:$0x1] %vm3_vm0, %v307_v16   ;;  %1437 = vst.msk [vmem:[%s4051_s1 + $0x126] sm:$0x2] %vm3_vm0, %v307_v16  }
  0xa6   :  { %1438 = vst.msk [vmem:[%s4051_s1 + $0x145] sm:$0x4] %vm3_vm0, %v307_v16   ;;  %1439 = vst.msk [vmem:[%s4051_s1 + $0x164] sm:$0x8] %vm3_vm0, %v307_v16  }
  0xa7   :  { %1440 = vst.msk [vmem:[%s4051_s1 + $0x183] sm:$0x10] %vm3_vm0, %v307_v16   ;;  %1441 = vst.msk [vmem:[%s4051_s1 + $0x1a2] sm:$0x20] %vm3_vm0, %v307_v16  }
  0xa8   :  { %1442 = vst.msk [vmem:[%s4051_s1 + $0x1c1] sm:$0x40] %vm3_vm0, %v307_v16   ;;  %1443 = vst.msk [vmem:[%s4051_s1 + $0x1e0] sm:$0x80] %vm3_vm0, %v307_v16   ;;  %v594_v30 = vpop.permute.xlu1 %593   ;;  %v573_v31 = vpop.permute.xlu0 %572  }
  0xa9   :  { %1427 = vst.msk [vmem:[%s4051_s1 + $0x7] sm:$0x1] %vm3_vm0, %v286_v17   ;;  %1428 = vst.msk [vmem:[%s4051_s1 + $0x26] sm:$0x2] %vm3_vm0, %v286_v17  }
  0xaa   :  { %1429 = vst.msk [vmem:[%s4051_s1 + $0x45] sm:$0x4] %vm3_vm0, %v286_v17   ;;  %1430 = vst.msk [vmem:[%s4051_s1 + $0x64] sm:$0x8] %vm3_vm0, %v286_v17  }
  0xab   :  { %1431 = vst.msk [vmem:[%s4051_s1 + $0x83] sm:$0x10] %vm3_vm0, %v286_v17   ;;  %1432 = vst.msk [vmem:[%s4051_s1 + $0xa2] sm:$0x20] %vm3_vm0, %v286_v17  }
  0xac   :  { %1433 = vst.msk [vmem:[%s4051_s1 + $0xc1] sm:$0x40] %vm3_vm0, %v286_v17   ;;  %1434 = vst.msk [vmem:[%s4051_s1 + $0xe0] sm:$0x80] %vm3_vm0, %v286_v17   ;;  %v635_v32 = vpop.permute.xlu1 %634   ;;  %v614_v33 = vpop.permute.xlu0 %613  }
  0xad   :  { %1453 = vst.msk [vmem:[%s4051_s1 + $0x108] sm:$0x1] %vm3_vm0, %v348_v18   ;;  %1454 = vst.msk [vmem:[%s4051_s1 + $0x127] sm:$0x2] %vm3_vm0, %v348_v18  }
  0xae   :  { %1455 = vst.msk [vmem:[%s4051_s1 + $0x146] sm:$0x4] %vm3_vm0, %v348_v18   ;;  %1456 = vst.msk [vmem:[%s4051_s1 + $0x165] sm:$0x8] %vm3_vm0, %v348_v18  }
  0xaf   :  { %1457 = vst.msk [vmem:[%s4051_s1 + $0x184] sm:$0x10] %vm3_vm0, %v348_v18   ;;  %1458 = vst.msk [vmem:[%s4051_s1 + $0x1a3] sm:$0x20] %vm3_vm0, %v348_v18  }
  0xb0   :  { %1459 = vst.msk [vmem:[%s4051_s1 + $0x1c2] sm:$0x40] %vm3_vm0, %v348_v18   ;;  %1460 = vst.msk [vmem:[%s4051_s1 + $0x1e1] sm:$0x80] %vm3_vm0, %v348_v18   ;;  %v676_v34 = vpop.permute.xlu1 %675   ;;  %v655_v35 = vpop.permute.xlu0 %654  }
  0xb1   :  { %1444 = vst.msk [vmem:[%s4051_s1 + $0x8] sm:$0x1] %vm3_vm0, %v327_v19   ;;  %1445 = vst.msk [vmem:[%s4051_s1 + $0x27] sm:$0x2] %vm3_vm0, %v327_v19  }
  0xb2   :  { %1446 = vst.msk [vmem:[%s4051_s1 + $0x46] sm:$0x4] %vm3_vm0, %v327_v19   ;;  %1447 = vst.msk [vmem:[%s4051_s1 + $0x65] sm:$0x8] %vm3_vm0, %v327_v19  }
  0xb3   :  { %1448 = vst.msk [vmem:[%s4051_s1 + $0x84] sm:$0x10] %vm3_vm0, %v327_v19   ;;  %1449 = vst.msk [vmem:[%s4051_s1 + $0xa3] sm:$0x20] %vm3_vm0, %v327_v19  }
  0xb4   :  { %1450 = vst.msk [vmem:[%s4051_s1 + $0xc2] sm:$0x40] %vm3_vm0, %v327_v19   ;;  %1451 = vst.msk [vmem:[%s4051_s1 + $0xe1] sm:$0x80] %vm3_vm0, %v327_v19   ;;  %v717_v36 = vpop.permute.xlu1 %716   ;;  %v696_v37 = vpop.permute.xlu0 %695  }
  0xb5   :  { %1470 = vst.msk [vmem:[%s4051_s1 + $0x109] sm:$0x1] %vm3_vm0, %v389_v20   ;;  %1471 = vst.msk [vmem:[%s4051_s1 + $0x128] sm:$0x2] %vm3_vm0, %v389_v20  }
  0xb6   :  { %1472 = vst.msk [vmem:[%s4051_s1 + $0x147] sm:$0x4] %vm3_vm0, %v389_v20   ;;  %1473 = vst.msk [vmem:[%s4051_s1 + $0x166] sm:$0x8] %vm3_vm0, %v389_v20  }
  0xb7   :  { %1474 = vst.msk [vmem:[%s4051_s1 + $0x185] sm:$0x10] %vm3_vm0, %v389_v20   ;;  %1475 = vst.msk [vmem:[%s4051_s1 + $0x1a4] sm:$0x20] %vm3_vm0, %v389_v20  }
  0xb8   :  { %1476 = vst.msk [vmem:[%s4051_s1 + $0x1c3] sm:$0x40] %vm3_vm0, %v389_v20   ;;  %1477 = vst.msk [vmem:[%s4051_s1 + $0x1e2] sm:$0x80] %vm3_vm0, %v389_v20   ;;  %v758_v38 = vpop.permute.xlu1 %757   ;;  %v737_v39 = vpop.permute.xlu0 %736  }
  0xb9   :  { %1461 = vst.msk [vmem:[%s4051_s1 + $0x9] sm:$0x1] %vm3_vm0, %v368_v21   ;;  %1462 = vst.msk [vmem:[%s4051_s1 + $0x28] sm:$0x2] %vm3_vm0, %v368_v21  }
  0xba   :  { %1463 = vst.msk [vmem:[%s4051_s1 + $0x47] sm:$0x4] %vm3_vm0, %v368_v21   ;;  %1464 = vst.msk [vmem:[%s4051_s1 + $0x66] sm:$0x8] %vm3_vm0, %v368_v21  }
  0xbb   :  { %1465 = vst.msk [vmem:[%s4051_s1 + $0x85] sm:$0x10] %vm3_vm0, %v368_v21   ;;  %1466 = vst.msk [vmem:[%s4051_s1 + $0xa4] sm:$0x20] %vm3_vm0, %v368_v21  }
  0xbc   :  { %1467 = vst.msk [vmem:[%s4051_s1 + $0xc3] sm:$0x40] %vm3_vm0, %v368_v21   ;;  %1468 = vst.msk [vmem:[%s4051_s1 + $0xe2] sm:$0x80] %vm3_vm0, %v368_v21   ;;  %v799_v40 = vpop.permute.xlu1 %798   ;;  %v778_v41 = vpop.permute.xlu0 %777  }
  0xbd   :  { %1487 = vst.msk [vmem:[%s4051_s1 + $0x10a] sm:$0x1] %vm3_vm0, %v430_v22   ;;  %1488 = vst.msk [vmem:[%s4051_s1 + $0x129] sm:$0x2] %vm3_vm0, %v430_v22  }
  0xbe   :  { %1489 = vst.msk [vmem:[%s4051_s1 + $0x148] sm:$0x4] %vm3_vm0, %v430_v22   ;;  %1490 = vst.msk [vmem:[%s4051_s1 + $0x167] sm:$0x8] %vm3_vm0, %v430_v22  }
  0xbf   :  { %1491 = vst.msk [vmem:[%s4051_s1 + $0x186] sm:$0x10] %vm3_vm0, %v430_v22   ;;  %1492 = vst.msk [vmem:[%s4051_s1 + $0x1a5] sm:$0x20] %vm3_vm0, %v430_v22  }
  0xc0   :  { %1493 = vst.msk [vmem:[%s4051_s1 + $0x1c4] sm:$0x40] %vm3_vm0, %v430_v22   ;;  %1494 = vst.msk [vmem:[%s4051_s1 + $0x1e3] sm:$0x80] %vm3_vm0, %v430_v22   ;;  %v840_v42 = vpop.permute.xlu1 %839   ;;  %v819_v43 = vpop.permute.xlu0 %818  }
  0xc1   :  { %1478 = vst.msk [vmem:[%s4051_s1 + $0xa] sm:$0x1] %vm3_vm0, %v409_v23   ;;  %1479 = vst.msk [vmem:[%s4051_s1 + $0x29] sm:$0x2] %vm3_vm0, %v409_v23  }
  0xc2   :  { %1480 = vst.msk [vmem:[%s4051_s1 + $0x48] sm:$0x4] %vm3_vm0, %v409_v23   ;;  %1481 = vst.msk [vmem:[%s4051_s1 + $0x67] sm:$0x8] %vm3_vm0, %v409_v23  }
  0xc3   :  { %1482 = vst.msk [vmem:[%s4051_s1 + $0x86] sm:$0x10] %vm3_vm0, %v409_v23   ;;  %1483 = vst.msk [vmem:[%s4051_s1 + $0xa5] sm:$0x20] %vm3_vm0, %v409_v23  }
  0xc4   :  { %1484 = vst.msk [vmem:[%s4051_s1 + $0xc4] sm:$0x40] %vm3_vm0, %v409_v23   ;;  %1485 = vst.msk [vmem:[%s4051_s1 + $0xe3] sm:$0x80] %vm3_vm0, %v409_v23   ;;  %v881_v44 = vpop.permute.xlu1 %880   ;;  %v860_v45 = vpop.permute.xlu0 %859  }
  0xc5   :  { %1504 = vst.msk [vmem:[%s4051_s1 + $0x10b] sm:$0x1] %vm3_vm0, %v471_v24   ;;  %1505 = vst.msk [vmem:[%s4051_s1 + $0x12a] sm:$0x2] %vm3_vm0, %v471_v24  }
  0xc6   :  { %1506 = vst.msk [vmem:[%s4051_s1 + $0x149] sm:$0x4] %vm3_vm0, %v471_v24   ;;  %1507 = vst.msk [vmem:[%s4051_s1 + $0x168] sm:$0x8] %vm3_vm0, %v471_v24  }
  0xc7   :  { %1508 = vst.msk [vmem:[%s4051_s1 + $0x187] sm:$0x10] %vm3_vm0, %v471_v24   ;;  %1509 = vst.msk [vmem:[%s4051_s1 + $0x1a6] sm:$0x20] %vm3_vm0, %v471_v24  }
  0xc8   :  { %1510 = vst.msk [vmem:[%s4051_s1 + $0x1c5] sm:$0x40] %vm3_vm0, %v471_v24   ;;  %1511 = vst.msk [vmem:[%s4051_s1 + $0x1e4] sm:$0x80] %vm3_vm0, %v471_v24   ;;  %v922_v46 = vpop.permute.xlu1 %921   ;;  %v901_v47 = vpop.permute.xlu0 %900  }
  0xc9   :  { %1495 = vst.msk [vmem:[%s4051_s1 + $0xb] sm:$0x1] %vm3_vm0, %v450_v25   ;;  %1496 = vst.msk [vmem:[%s4051_s1 + $0x2a] sm:$0x2] %vm3_vm0, %v450_v25  }
  0xca   :  { %1497 = vst.msk [vmem:[%s4051_s1 + $0x49] sm:$0x4] %vm3_vm0, %v450_v25   ;;  %1498 = vst.msk [vmem:[%s4051_s1 + $0x68] sm:$0x8] %vm3_vm0, %v450_v25  }
  0xcb   :  { %1499 = vst.msk [vmem:[%s4051_s1 + $0x87] sm:$0x10] %vm3_vm0, %v450_v25   ;;  %1500 = vst.msk [vmem:[%s4051_s1 + $0xa6] sm:$0x20] %vm3_vm0, %v450_v25  }
  0xcc   :  { %1501 = vst.msk [vmem:[%s4051_s1 + $0xc5] sm:$0x40] %vm3_vm0, %v450_v25   ;;  %1502 = vst.msk [vmem:[%s4051_s1 + $0xe4] sm:$0x80] %vm3_vm0, %v450_v25   ;;  %v963_v48 = vpop.permute.xlu1 %962   ;;  %v942_v49 = vpop.permute.xlu0 %941  }
  0xcd   :  { %1521 = vst.msk [vmem:[%s4051_s1 + $0x10c] sm:$0x1] %vm3_vm0, %v512_v26   ;;  %1522 = vst.msk [vmem:[%s4051_s1 + $0x12b] sm:$0x2] %vm3_vm0, %v512_v26  }
  0xce   :  { %1523 = vst.msk [vmem:[%s4051_s1 + $0x14a] sm:$0x4] %vm3_vm0, %v512_v26   ;;  %1524 = vst.msk [vmem:[%s4051_s1 + $0x169] sm:$0x8] %vm3_vm0, %v512_v26  }
  0xcf   :  { %1525 = vst.msk [vmem:[%s4051_s1 + $0x188] sm:$0x10] %vm3_vm0, %v512_v26   ;;  %1526 = vst.msk [vmem:[%s4051_s1 + $0x1a7] sm:$0x20] %vm3_vm0, %v512_v26  }
  0xd0   :  { %1527 = vst.msk [vmem:[%s4051_s1 + $0x1c6] sm:$0x40] %vm3_vm0, %v512_v26   ;;  %1528 = vst.msk [vmem:[%s4051_s1 + $0x1e5] sm:$0x80] %vm3_vm0, %v512_v26   ;;  %v1004_v50 = vpop.permute.xlu1 %1003   ;;  %v983_v51 = vpop.permute.xlu0 %982  }
  0xd1   :  { %1512 = vst.msk [vmem:[%s4051_s1 + $0xc] sm:$0x1] %vm3_vm0, %v491_v27   ;;  %1513 = vst.msk [vmem:[%s4051_s1 + $0x2b] sm:$0x2] %vm3_vm0, %v491_v27  }
  0xd2   :  { %1514 = vst.msk [vmem:[%s4051_s1 + $0x4a] sm:$0x4] %vm3_vm0, %v491_v27   ;;  %1515 = vst.msk [vmem:[%s4051_s1 + $0x69] sm:$0x8] %vm3_vm0, %v491_v27  }
  0xd3   :  { %1516 = vst.msk [vmem:[%s4051_s1 + $0x88] sm:$0x10] %vm3_vm0, %v491_v27   ;;  %1517 = vst.msk [vmem:[%s4051_s1 + $0xa7] sm:$0x20] %vm3_vm0, %v491_v27  }
  0xd4   :  { %1518 = vst.msk [vmem:[%s4051_s1 + $0xc6] sm:$0x40] %vm3_vm0, %v491_v27   ;;  %1519 = vst.msk [vmem:[%s4051_s1 + $0xe5] sm:$0x80] %vm3_vm0, %v491_v27   ;;  %v1045_v52 = vpop.permute.xlu1 %1044   ;;  %v1024_v53 = vpop.permute.xlu0 %1023  }
  0xd5   :  { %1538 = vst.msk [vmem:[%s4051_s1 + $0x10d] sm:$0x1] %vm3_vm0, %v553_v28   ;;  %1539 = vst.msk [vmem:[%s4051_s1 + $0x12c] sm:$0x2] %vm3_vm0, %v553_v28  }
  0xd6   :  { %1540 = vst.msk [vmem:[%s4051_s1 + $0x14b] sm:$0x4] %vm3_vm0, %v553_v28   ;;  %1541 = vst.msk [vmem:[%s4051_s1 + $0x16a] sm:$0x8] %vm3_vm0, %v553_v28  }
  0xd7   :  { %1542 = vst.msk [vmem:[%s4051_s1 + $0x189] sm:$0x10] %vm3_vm0, %v553_v28   ;;  %1543 = vst.msk [vmem:[%s4051_s1 + $0x1a8] sm:$0x20] %vm3_vm0, %v553_v28  }
  0xd8   :  { %1544 = vst.msk [vmem:[%s4051_s1 + $0x1c7] sm:$0x40] %vm3_vm0, %v553_v28   ;;  %1545 = vst.msk [vmem:[%s4051_s1 + $0x1e6] sm:$0x80] %vm3_vm0, %v553_v28   ;;  %v1086_v54 = vpop.permute.xlu1 %1085   ;;  %v1065_v55 = vpop.permute.xlu0 %1064  }
  0xd9   :  { %1529 = vst.msk [vmem:[%s4051_s1 + $0xd] sm:$0x1] %vm3_vm0, %v532_v29   ;;  %1530 = vst.msk [vmem:[%s4051_s1 + $0x2c] sm:$0x2] %vm3_vm0, %v532_v29  }
  0xda   :  { %1531 = vst.msk [vmem:[%s4051_s1 + $0x4b] sm:$0x4] %vm3_vm0, %v532_v29   ;;  %1532 = vst.msk [vmem:[%s4051_s1 + $0x6a] sm:$0x8] %vm3_vm0, %v532_v29  }
  0xdb   :  { %1533 = vst.msk [vmem:[%s4051_s1 + $0x89] sm:$0x10] %vm3_vm0, %v532_v29   ;;  %1534 = vst.msk [vmem:[%s4051_s1 + $0xa8] sm:$0x20] %vm3_vm0, %v532_v29  }
  0xdc   :  { %1535 = vst.msk [vmem:[%s4051_s1 + $0xc7] sm:$0x40] %vm3_vm0, %v532_v29   ;;  %1536 = vst.msk [vmem:[%s4051_s1 + $0xe6] sm:$0x80] %vm3_vm0, %v532_v29   ;;  %v1127_v56 = vpop.permute.xlu1 %1126   ;;  %v1106_v57 = vpop.permute.xlu0 %1105  }
  0xdd   :  { %1555 = vst.msk [vmem:[%s4051_s1 + $0x10e] sm:$0x1] %vm3_vm0, %v594_v30   ;;  %1556 = vst.msk [vmem:[%s4051_s1 + $0x12d] sm:$0x2] %vm3_vm0, %v594_v30  }
  0xde   :  { %1557 = vst.msk [vmem:[%s4051_s1 + $0x14c] sm:$0x4] %vm3_vm0, %v594_v30   ;;  %1558 = vst.msk [vmem:[%s4051_s1 + $0x16b] sm:$0x8] %vm3_vm0, %v594_v30  }
  0xdf   :  { %1559 = vst.msk [vmem:[%s4051_s1 + $0x18a] sm:$0x10] %vm3_vm0, %v594_v30   ;;  %1560 = vst.msk [vmem:[%s4051_s1 + $0x1a9] sm:$0x20] %vm3_vm0, %v594_v30  }
  0xe0   :  { %1561 = vst.msk [vmem:[%s4051_s1 + $0x1c8] sm:$0x40] %vm3_vm0, %v594_v30   ;;  %1562 = vst.msk [vmem:[%s4051_s1 + $0x1e7] sm:$0x80] %vm3_vm0, %v594_v30   ;;  %v1168_v58 = vpop.permute.xlu1 %1167   ;;  %v1147_v59 = vpop.permute.xlu0 %1146  }
  0xe1   :  { %1546 = vst.msk [vmem:[%s4051_s1 + $0xe] sm:$0x1] %vm3_vm0, %v573_v31   ;;  %1547 = vst.msk [vmem:[%s4051_s1 + $0x2d] sm:$0x2] %vm3_vm0, %v573_v31  }
  0xe2   :  { %1548 = vst.msk [vmem:[%s4051_s1 + $0x4c] sm:$0x4] %vm3_vm0, %v573_v31   ;;  %1549 = vst.msk [vmem:[%s4051_s1 + $0x6b] sm:$0x8] %vm3_vm0, %v573_v31  }
  0xe3   :  { %1550 = vst.msk [vmem:[%s4051_s1 + $0x8a] sm:$0x10] %vm3_vm0, %v573_v31   ;;  %1551 = vst.msk [vmem:[%s4051_s1 + $0xa9] sm:$0x20] %vm3_vm0, %v573_v31  }
  0xe4   :  { %1552 = vst.msk [vmem:[%s4051_s1 + $0xc8] sm:$0x40] %vm3_vm0, %v573_v31   ;;  %1553 = vst.msk [vmem:[%s4051_s1 + $0xe7] sm:$0x80] %vm3_vm0, %v573_v31   ;;  %v1209_v60 = vpop.permute.xlu1 %1208   ;;  %v1188_v61 = vpop.permute.xlu0 %1187  }
  0xe5   :  { %1572 = vst.msk [vmem:[%s4051_s1 + $0x10f] sm:$0x1] %vm3_vm0, %v635_v32   ;;  %1573 = vst.msk [vmem:[%s4051_s1 + $0x12e] sm:$0x2] %vm3_vm0, %v635_v32  }
  0xe6   :  { %1574 = vst.msk [vmem:[%s4051_s1 + $0x14d] sm:$0x4] %vm3_vm0, %v635_v32   ;;  %1575 = vst.msk [vmem:[%s4051_s1 + $0x16c] sm:$0x8] %vm3_vm0, %v635_v32  }
  0xe7   :  { %1576 = vst.msk [vmem:[%s4051_s1 + $0x18b] sm:$0x10] %vm3_vm0, %v635_v32   ;;  %1577 = vst.msk [vmem:[%s4051_s1 + $0x1aa] sm:$0x20] %vm3_vm0, %v635_v32  }
  0xe8   :  { %1578 = vst.msk [vmem:[%s4051_s1 + $0x1c9] sm:$0x40] %vm3_vm0, %v635_v32   ;;  %1579 = vst.msk [vmem:[%s4051_s1 + $0x1e8] sm:$0x80] %vm3_vm0, %v635_v32   ;;  %v1250_v62 = vpop.permute.xlu1 %1249   ;;  %v1229_v63 = vpop.permute.xlu0 %1228  }
  0xe9   :  { %1563 = vst.msk [vmem:[%s4051_s1 + $0xf] sm:$0x1] %vm3_vm0, %v614_v33   ;;  %1564 = vst.msk [vmem:[%s4051_s1 + $0x2e] sm:$0x2] %vm3_vm0, %v614_v33  }
  0xea   :  { %1565 = vst.msk [vmem:[%s4051_s1 + $0x4d] sm:$0x4] %vm3_vm0, %v614_v33   ;;  %1566 = vst.msk [vmem:[%s4051_s1 + $0x6c] sm:$0x8] %vm3_vm0, %v614_v33  }
  0xeb   :  { %1567 = vst.msk [vmem:[%s4051_s1 + $0x8b] sm:$0x10] %vm3_vm0, %v614_v33   ;;  %1568 = vst.msk [vmem:[%s4051_s1 + $0xaa] sm:$0x20] %vm3_vm0, %v614_v33  }
  0xec   :  { %1569 = vst.msk [vmem:[%s4051_s1 + $0xc9] sm:$0x40] %vm3_vm0, %v614_v33   ;;  %1570 = vst.msk [vmem:[%s4051_s1 + $0xe8] sm:$0x80] %vm3_vm0, %v614_v33   ;;  %v1291_v0 = vpop.permute.xlu1 %1290   ;;  %v1270_v1 = vpop.permute.xlu0 %1269  }
  0xed   :  { %1589 = vst.msk [vmem:[%s4051_s1 + $0x110] sm:$0x1] %vm3_vm0, %v676_v34   ;;  %1590 = vst.msk [vmem:[%s4051_s1 + $0x12f] sm:$0x2] %vm3_vm0, %v676_v34  }
  0xee   :  { %1591 = vst.msk [vmem:[%s4051_s1 + $0x14e] sm:$0x4] %vm3_vm0, %v676_v34   ;;  %1592 = vst.msk [vmem:[%s4051_s1 + $0x16d] sm:$0x8] %vm3_vm0, %v676_v34  }
  0xef   :  { %1593 = vst.msk [vmem:[%s4051_s1 + $0x18c] sm:$0x10] %vm3_vm0, %v676_v34   ;;  %1594 = vst.msk [vmem:[%s4051_s1 + $0x1ab] sm:$0x20] %vm3_vm0, %v676_v34  }
  0xf0   :  { %1595 = vst.msk [vmem:[%s4051_s1 + $0x1ca] sm:$0x40] %vm3_vm0, %v676_v34   ;;  %1596 = vst.msk [vmem:[%s4051_s1 + $0x1e9] sm:$0x80] %vm3_vm0, %v676_v34  }
  0xf1   :  { %1580 = vst.msk [vmem:[%s4051_s1 + $0x10] sm:$0x1] %vm3_vm0, %v655_v35   ;;  %1581 = vst.msk [vmem:[%s4051_s1 + $0x2f] sm:$0x2] %vm3_vm0, %v655_v35  }
  0xf2   :  { %1582 = vst.msk [vmem:[%s4051_s1 + $0x4e] sm:$0x4] %vm3_vm0, %v655_v35   ;;  %1583 = vst.msk [vmem:[%s4051_s1 + $0x6d] sm:$0x8] %vm3_vm0, %v655_v35  }
  0xf3   :  { %1584 = vst.msk [vmem:[%s4051_s1 + $0x8c] sm:$0x10] %vm3_vm0, %v655_v35   ;;  %1585 = vst.msk [vmem:[%s4051_s1 + $0xab] sm:$0x20] %vm3_vm0, %v655_v35  }
  0xf4   :  { %1586 = vst.msk [vmem:[%s4051_s1 + $0xca] sm:$0x40] %vm3_vm0, %v655_v35   ;;  %1587 = vst.msk [vmem:[%s4051_s1 + $0xe9] sm:$0x80] %vm3_vm0, %v655_v35  }
  0xf5   :  { %1606 = vst.msk [vmem:[%s4051_s1 + $0x111] sm:$0x1] %vm3_vm0, %v717_v36   ;;  %1607 = vst.msk [vmem:[%s4051_s1 + $0x130] sm:$0x2] %vm3_vm0, %v717_v36  }
  0xf6   :  { %1608 = vst.msk [vmem:[%s4051_s1 + $0x14f] sm:$0x4] %vm3_vm0, %v717_v36   ;;  %1609 = vst.msk [vmem:[%s4051_s1 + $0x16e] sm:$0x8] %vm3_vm0, %v717_v36  }
  0xf7   :  { %1610 = vst.msk [vmem:[%s4051_s1 + $0x18d] sm:$0x10] %vm3_vm0, %v717_v36   ;;  %1611 = vst.msk [vmem:[%s4051_s1 + $0x1ac] sm:$0x20] %vm3_vm0, %v717_v36  }
  0xf8   :  { %1612 = vst.msk [vmem:[%s4051_s1 + $0x1cb] sm:$0x40] %vm3_vm0, %v717_v36   ;;  %1613 = vst.msk [vmem:[%s4051_s1 + $0x1ea] sm:$0x80] %vm3_vm0, %v717_v36  }
  0xf9   :  { %1597 = vst.msk [vmem:[%s4051_s1 + $0x11] sm:$0x1] %vm3_vm0, %v696_v37   ;;  %1598 = vst.msk [vmem:[%s4051_s1 + $0x30] sm:$0x2] %vm3_vm0, %v696_v37  }
  0xfa   :  { %1599 = vst.msk [vmem:[%s4051_s1 + $0x4f] sm:$0x4] %vm3_vm0, %v696_v37   ;;  %1600 = vst.msk [vmem:[%s4051_s1 + $0x6e] sm:$0x8] %vm3_vm0, %v696_v37  }
  0xfb   :  { %1601 = vst.msk [vmem:[%s4051_s1 + $0x8d] sm:$0x10] %vm3_vm0, %v696_v37   ;;  %1602 = vst.msk [vmem:[%s4051_s1 + $0xac] sm:$0x20] %vm3_vm0, %v696_v37  }
  0xfc   :  { %1603 = vst.msk [vmem:[%s4051_s1 + $0xcb] sm:$0x40] %vm3_vm0, %v696_v37   ;;  %1604 = vst.msk [vmem:[%s4051_s1 + $0xea] sm:$0x80] %vm3_vm0, %v696_v37  }
  0xfd   :  { %1623 = vst.msk [vmem:[%s4051_s1 + $0x112] sm:$0x1] %vm3_vm0, %v758_v38   ;;  %1624 = vst.msk [vmem:[%s4051_s1 + $0x131] sm:$0x2] %vm3_vm0, %v758_v38  }
  0xfe   :  { %1625 = vst.msk [vmem:[%s4051_s1 + $0x150] sm:$0x4] %vm3_vm0, %v758_v38   ;;  %1626 = vst.msk [vmem:[%s4051_s1 + $0x16f] sm:$0x8] %vm3_vm0, %v758_v38  }
  0xff   :  { %1627 = vst.msk [vmem:[%s4051_s1 + $0x18e] sm:$0x10] %vm3_vm0, %v758_v38   ;;  %1628 = vst.msk [vmem:[%s4051_s1 + $0x1ad] sm:$0x20] %vm3_vm0, %v758_v38  }
 0x100   :  { %1629 = vst.msk [vmem:[%s4051_s1 + $0x1cc] sm:$0x40] %vm3_vm0, %v758_v38   ;;  %1630 = vst.msk [vmem:[%s4051_s1 + $0x1eb] sm:$0x80] %vm3_vm0, %v758_v38  }
 0x101   :  { %1614 = vst.msk [vmem:[%s4051_s1 + $0x12] sm:$0x1] %vm3_vm0, %v737_v39   ;;  %1615 = vst.msk [vmem:[%s4051_s1 + $0x31] sm:$0x2] %vm3_vm0, %v737_v39  }
 0x102   :  { %1616 = vst.msk [vmem:[%s4051_s1 + $0x50] sm:$0x4] %vm3_vm0, %v737_v39   ;;  %1617 = vst.msk [vmem:[%s4051_s1 + $0x6f] sm:$0x8] %vm3_vm0, %v737_v39  }
 0x103   :  { %1618 = vst.msk [vmem:[%s4051_s1 + $0x8e] sm:$0x10] %vm3_vm0, %v737_v39   ;;  %1619 = vst.msk [vmem:[%s4051_s1 + $0xad] sm:$0x20] %vm3_vm0, %v737_v39  }
 0x104   :  { %1620 = vst.msk [vmem:[%s4051_s1 + $0xcc] sm:$0x40] %vm3_vm0, %v737_v39   ;;  %1621 = vst.msk [vmem:[%s4051_s1 + $0xeb] sm:$0x80] %vm3_vm0, %v737_v39  }
 0x105   :  { %1640 = vst.msk [vmem:[%s4051_s1 + $0x113] sm:$0x1] %vm3_vm0, %v799_v40   ;;  %1641 = vst.msk [vmem:[%s4051_s1 + $0x132] sm:$0x2] %vm3_vm0, %v799_v40  }
 0x106   :  { %1642 = vst.msk [vmem:[%s4051_s1 + $0x151] sm:$0x4] %vm3_vm0, %v799_v40   ;;  %1643 = vst.msk [vmem:[%s4051_s1 + $0x170] sm:$0x8] %vm3_vm0, %v799_v40  }
 0x107   :  { %1644 = vst.msk [vmem:[%s4051_s1 + $0x18f] sm:$0x10] %vm3_vm0, %v799_v40   ;;  %1645 = vst.msk [vmem:[%s4051_s1 + $0x1ae] sm:$0x20] %vm3_vm0, %v799_v40  }
 0x108   :  { %1646 = vst.msk [vmem:[%s4051_s1 + $0x1cd] sm:$0x40] %vm3_vm0, %v799_v40   ;;  %1647 = vst.msk [vmem:[%s4051_s1 + $0x1ec] sm:$0x80] %vm3_vm0, %v799_v40  }
 0x109   :  { %1631 = vst.msk [vmem:[%s4051_s1 + $0x13] sm:$0x1] %vm3_vm0, %v778_v41   ;;  %1632 = vst.msk [vmem:[%s4051_s1 + $0x32] sm:$0x2] %vm3_vm0, %v778_v41  }
 0x10a   :  { %1633 = vst.msk [vmem:[%s4051_s1 + $0x51] sm:$0x4] %vm3_vm0, %v778_v41   ;;  %1634 = vst.msk [vmem:[%s4051_s1 + $0x70] sm:$0x8] %vm3_vm0, %v778_v41  }
 0x10b   :  { %1635 = vst.msk [vmem:[%s4051_s1 + $0x8f] sm:$0x10] %vm3_vm0, %v778_v41   ;;  %1636 = vst.msk [vmem:[%s4051_s1 + $0xae] sm:$0x20] %vm3_vm0, %v778_v41  }
 0x10c   :  { %1637 = vst.msk [vmem:[%s4051_s1 + $0xcd] sm:$0x40] %vm3_vm0, %v778_v41   ;;  %1638 = vst.msk [vmem:[%s4051_s1 + $0xec] sm:$0x80] %vm3_vm0, %v778_v41  }
 0x10d   :  { %1657 = vst.msk [vmem:[%s4051_s1 + $0x114] sm:$0x1] %vm3_vm0, %v840_v42   ;;  %1658 = vst.msk [vmem:[%s4051_s1 + $0x133] sm:$0x2] %vm3_vm0, %v840_v42  }
 0x10e   :  { %1659 = vst.msk [vmem:[%s4051_s1 + $0x152] sm:$0x4] %vm3_vm0, %v840_v42   ;;  %1660 = vst.msk [vmem:[%s4051_s1 + $0x171] sm:$0x8] %vm3_vm0, %v840_v42  }
 0x10f   :  { %1661 = vst.msk [vmem:[%s4051_s1 + $0x190] sm:$0x10] %vm3_vm0, %v840_v42   ;;  %1662 = vst.msk [vmem:[%s4051_s1 + $0x1af] sm:$0x20] %vm3_vm0, %v840_v42  }
 0x110   :  { %1663 = vst.msk [vmem:[%s4051_s1 + $0x1ce] sm:$0x40] %vm3_vm0, %v840_v42   ;;  %1664 = vst.msk [vmem:[%s4051_s1 + $0x1ed] sm:$0x80] %vm3_vm0, %v840_v42  }
 0x111   :  { %1648 = vst.msk [vmem:[%s4051_s1 + $0x14] sm:$0x1] %vm3_vm0, %v819_v43   ;;  %1649 = vst.msk [vmem:[%s4051_s1 + $0x33] sm:$0x2] %vm3_vm0, %v819_v43  }
 0x112   :  { %1650 = vst.msk [vmem:[%s4051_s1 + $0x52] sm:$0x4] %vm3_vm0, %v819_v43   ;;  %1651 = vst.msk [vmem:[%s4051_s1 + $0x71] sm:$0x8] %vm3_vm0, %v819_v43  }
 0x113   :  { %1652 = vst.msk [vmem:[%s4051_s1 + $0x90] sm:$0x10] %vm3_vm0, %v819_v43   ;;  %1653 = vst.msk [vmem:[%s4051_s1 + $0xaf] sm:$0x20] %vm3_vm0, %v819_v43  }
 0x114   :  { %1654 = vst.msk [vmem:[%s4051_s1 + $0xce] sm:$0x40] %vm3_vm0, %v819_v43   ;;  %1655 = vst.msk [vmem:[%s4051_s1 + $0xed] sm:$0x80] %vm3_vm0, %v819_v43  }
 0x115   :  { %1674 = vst.msk [vmem:[%s4051_s1 + $0x115] sm:$0x1] %vm3_vm0, %v881_v44   ;;  %1675 = vst.msk [vmem:[%s4051_s1 + $0x134] sm:$0x2] %vm3_vm0, %v881_v44  }
 0x116   :  { %1676 = vst.msk [vmem:[%s4051_s1 + $0x153] sm:$0x4] %vm3_vm0, %v881_v44   ;;  %1677 = vst.msk [vmem:[%s4051_s1 + $0x172] sm:$0x8] %vm3_vm0, %v881_v44  }
 0x117   :  { %1678 = vst.msk [vmem:[%s4051_s1 + $0x191] sm:$0x10] %vm3_vm0, %v881_v44   ;;  %1679 = vst.msk [vmem:[%s4051_s1 + $0x1b0] sm:$0x20] %vm3_vm0, %v881_v44  }
 0x118   :  { %1680 = vst.msk [vmem:[%s4051_s1 + $0x1cf] sm:$0x40] %vm3_vm0, %v881_v44   ;;  %1681 = vst.msk [vmem:[%s4051_s1 + $0x1ee] sm:$0x80] %vm3_vm0, %v881_v44  }
 0x119   :  { %1665 = vst.msk [vmem:[%s4051_s1 + $0x15] sm:$0x1] %vm3_vm0, %v860_v45   ;;  %1666 = vst.msk [vmem:[%s4051_s1 + $0x34] sm:$0x2] %vm3_vm0, %v860_v45  }
 0x11a   :  { %1667 = vst.msk [vmem:[%s4051_s1 + $0x53] sm:$0x4] %vm3_vm0, %v860_v45   ;;  %1668 = vst.msk [vmem:[%s4051_s1 + $0x72] sm:$0x8] %vm3_vm0, %v860_v45  }
 0x11b   :  { %1669 = vst.msk [vmem:[%s4051_s1 + $0x91] sm:$0x10] %vm3_vm0, %v860_v45   ;;  %1670 = vst.msk [vmem:[%s4051_s1 + $0xb0] sm:$0x20] %vm3_vm0, %v860_v45  }
 0x11c   :  { %1671 = vst.msk [vmem:[%s4051_s1 + $0xcf] sm:$0x40] %vm3_vm0, %v860_v45   ;;  %1672 = vst.msk [vmem:[%s4051_s1 + $0xee] sm:$0x80] %vm3_vm0, %v860_v45  }
 0x11d   :  { %1691 = vst.msk [vmem:[%s4051_s1 + $0x116] sm:$0x1] %vm3_vm0, %v922_v46   ;;  %1692 = vst.msk [vmem:[%s4051_s1 + $0x135] sm:$0x2] %vm3_vm0, %v922_v46  }
 0x11e   :  { %1693 = vst.msk [vmem:[%s4051_s1 + $0x154] sm:$0x4] %vm3_vm0, %v922_v46   ;;  %1694 = vst.msk [vmem:[%s4051_s1 + $0x173] sm:$0x8] %vm3_vm0, %v922_v46  }
 0x11f   :  { %1695 = vst.msk [vmem:[%s4051_s1 + $0x192] sm:$0x10] %vm3_vm0, %v922_v46   ;;  %1696 = vst.msk [vmem:[%s4051_s1 + $0x1b1] sm:$0x20] %vm3_vm0, %v922_v46  }
 0x120   :  { %1697 = vst.msk [vmem:[%s4051_s1 + $0x1d0] sm:$0x40] %vm3_vm0, %v922_v46   ;;  %1698 = vst.msk [vmem:[%s4051_s1 + $0x1ef] sm:$0x80] %vm3_vm0, %v922_v46  }
 0x121   :  { %1682 = vst.msk [vmem:[%s4051_s1 + $0x16] sm:$0x1] %vm3_vm0, %v901_v47   ;;  %1683 = vst.msk [vmem:[%s4051_s1 + $0x35] sm:$0x2] %vm3_vm0, %v901_v47  }
 0x122   :  { %1684 = vst.msk [vmem:[%s4051_s1 + $0x54] sm:$0x4] %vm3_vm0, %v901_v47   ;;  %1685 = vst.msk [vmem:[%s4051_s1 + $0x73] sm:$0x8] %vm3_vm0, %v901_v47  }
 0x123   :  { %1686 = vst.msk [vmem:[%s4051_s1 + $0x92] sm:$0x10] %vm3_vm0, %v901_v47   ;;  %1687 = vst.msk [vmem:[%s4051_s1 + $0xb1] sm:$0x20] %vm3_vm0, %v901_v47  }
 0x124   :  { %1688 = vst.msk [vmem:[%s4051_s1 + $0xd0] sm:$0x40] %vm3_vm0, %v901_v47   ;;  %1689 = vst.msk [vmem:[%s4051_s1 + $0xef] sm:$0x80] %vm3_vm0, %v901_v47  }
 0x125   :  { %1708 = vst.msk [vmem:[%s4051_s1 + $0x117] sm:$0x1] %vm3_vm0, %v963_v48   ;;  %1709 = vst.msk [vmem:[%s4051_s1 + $0x136] sm:$0x2] %vm3_vm0, %v963_v48  }
 0x126   :  { %1710 = vst.msk [vmem:[%s4051_s1 + $0x155] sm:$0x4] %vm3_vm0, %v963_v48   ;;  %1711 = vst.msk [vmem:[%s4051_s1 + $0x174] sm:$0x8] %vm3_vm0, %v963_v48  }
 0x127   :  { %1712 = vst.msk [vmem:[%s4051_s1 + $0x193] sm:$0x10] %vm3_vm0, %v963_v48   ;;  %1713 = vst.msk [vmem:[%s4051_s1 + $0x1b2] sm:$0x20] %vm3_vm0, %v963_v48  }
 0x128   :  { %1714 = vst.msk [vmem:[%s4051_s1 + $0x1d1] sm:$0x40] %vm3_vm0, %v963_v48   ;;  %1715 = vst.msk [vmem:[%s4051_s1 + $0x1f0] sm:$0x80] %vm3_vm0, %v963_v48  }
 0x129   :  { %1699 = vst.msk [vmem:[%s4051_s1 + $0x17] sm:$0x1] %vm3_vm0, %v942_v49   ;;  %1700 = vst.msk [vmem:[%s4051_s1 + $0x36] sm:$0x2] %vm3_vm0, %v942_v49  }
 0x12a   :  { %1701 = vst.msk [vmem:[%s4051_s1 + $0x55] sm:$0x4] %vm3_vm0, %v942_v49   ;;  %1702 = vst.msk [vmem:[%s4051_s1 + $0x74] sm:$0x8] %vm3_vm0, %v942_v49  }
 0x12b   :  { %1703 = vst.msk [vmem:[%s4051_s1 + $0x93] sm:$0x10] %vm3_vm0, %v942_v49   ;;  %1704 = vst.msk [vmem:[%s4051_s1 + $0xb2] sm:$0x20] %vm3_vm0, %v942_v49  }
 0x12c   :  { %1705 = vst.msk [vmem:[%s4051_s1 + $0xd1] sm:$0x40] %vm3_vm0, %v942_v49   ;;  %1706 = vst.msk [vmem:[%s4051_s1 + $0xf0] sm:$0x80] %vm3_vm0, %v942_v49  }
 0x12d   :  { %1725 = vst.msk [vmem:[%s4051_s1 + $0x118] sm:$0x1] %vm3_vm0, %v1004_v50   ;;  %1726 = vst.msk [vmem:[%s4051_s1 + $0x137] sm:$0x2] %vm3_vm0, %v1004_v50  }
 0x12e   :  { %1727 = vst.msk [vmem:[%s4051_s1 + $0x156] sm:$0x4] %vm3_vm0, %v1004_v50   ;;  %1728 = vst.msk [vmem:[%s4051_s1 + $0x175] sm:$0x8] %vm3_vm0, %v1004_v50  }
 0x12f   :  { %1729 = vst.msk [vmem:[%s4051_s1 + $0x194] sm:$0x10] %vm3_vm0, %v1004_v50   ;;  %1730 = vst.msk [vmem:[%s4051_s1 + $0x1b3] sm:$0x20] %vm3_vm0, %v1004_v50  }
 0x130   :  { %1731 = vst.msk [vmem:[%s4051_s1 + $0x1d2] sm:$0x40] %vm3_vm0, %v1004_v50   ;;  %1732 = vst.msk [vmem:[%s4051_s1 + $0x1f1] sm:$0x80] %vm3_vm0, %v1004_v50  }
 0x131   :  { %1716 = vst.msk [vmem:[%s4051_s1 + $0x18] sm:$0x1] %vm3_vm0, %v983_v51   ;;  %1717 = vst.msk [vmem:[%s4051_s1 + $0x37] sm:$0x2] %vm3_vm0, %v983_v51  }
 0x132   :  { %1718 = vst.msk [vmem:[%s4051_s1 + $0x56] sm:$0x4] %vm3_vm0, %v983_v51   ;;  %1719 = vst.msk [vmem:[%s4051_s1 + $0x75] sm:$0x8] %vm3_vm0, %v983_v51  }
 0x133   :  { %1720 = vst.msk [vmem:[%s4051_s1 + $0x94] sm:$0x10] %vm3_vm0, %v983_v51   ;;  %1721 = vst.msk [vmem:[%s4051_s1 + $0xb3] sm:$0x20] %vm3_vm0, %v983_v51  }
 0x134   :  { %1722 = vst.msk [vmem:[%s4051_s1 + $0xd2] sm:$0x40] %vm3_vm0, %v983_v51   ;;  %1723 = vst.msk [vmem:[%s4051_s1 + $0xf1] sm:$0x80] %vm3_vm0, %v983_v51  }
 0x135   :  { %1742 = vst.msk [vmem:[%s4051_s1 + $0x119] sm:$0x1] %vm3_vm0, %v1045_v52   ;;  %1743 = vst.msk [vmem:[%s4051_s1 + $0x138] sm:$0x2] %vm3_vm0, %v1045_v52  }
 0x136   :  { %1744 = vst.msk [vmem:[%s4051_s1 + $0x157] sm:$0x4] %vm3_vm0, %v1045_v52   ;;  %1745 = vst.msk [vmem:[%s4051_s1 + $0x176] sm:$0x8] %vm3_vm0, %v1045_v52  }
 0x137   :  { %1746 = vst.msk [vmem:[%s4051_s1 + $0x195] sm:$0x10] %vm3_vm0, %v1045_v52   ;;  %1747 = vst.msk [vmem:[%s4051_s1 + $0x1b4] sm:$0x20] %vm3_vm0, %v1045_v52  }
 0x138   :  { %1748 = vst.msk [vmem:[%s4051_s1 + $0x1d3] sm:$0x40] %vm3_vm0, %v1045_v52   ;;  %1749 = vst.msk [vmem:[%s4051_s1 + $0x1f2] sm:$0x80] %vm3_vm0, %v1045_v52  }
 0x139   :  { %1733 = vst.msk [vmem:[%s4051_s1 + $0x19] sm:$0x1] %vm3_vm0, %v1024_v53   ;;  %1734 = vst.msk [vmem:[%s4051_s1 + $0x38] sm:$0x2] %vm3_vm0, %v1024_v53  }
 0x13a   :  { %1735 = vst.msk [vmem:[%s4051_s1 + $0x57] sm:$0x4] %vm3_vm0, %v1024_v53   ;;  %1736 = vst.msk [vmem:[%s4051_s1 + $0x76] sm:$0x8] %vm3_vm0, %v1024_v53  }
 0x13b   :  { %1737 = vst.msk [vmem:[%s4051_s1 + $0x95] sm:$0x10] %vm3_vm0, %v1024_v53   ;;  %1738 = vst.msk [vmem:[%s4051_s1 + $0xb4] sm:$0x20] %vm3_vm0, %v1024_v53  }
 0x13c   :  { %1739 = vst.msk [vmem:[%s4051_s1 + $0xd3] sm:$0x40] %vm3_vm0, %v1024_v53   ;;  %1740 = vst.msk [vmem:[%s4051_s1 + $0xf2] sm:$0x80] %vm3_vm0, %v1024_v53  }
 0x13d   :  { %1759 = vst.msk [vmem:[%s4051_s1 + $0x11a] sm:$0x1] %vm3_vm0, %v1086_v54   ;;  %1760 = vst.msk [vmem:[%s4051_s1 + $0x139] sm:$0x2] %vm3_vm0, %v1086_v54  }
 0x13e   :  { %1761 = vst.msk [vmem:[%s4051_s1 + $0x158] sm:$0x4] %vm3_vm0, %v1086_v54   ;;  %1762 = vst.msk [vmem:[%s4051_s1 + $0x177] sm:$0x8] %vm3_vm0, %v1086_v54  }
 0x13f   :  { %1763 = vst.msk [vmem:[%s4051_s1 + $0x196] sm:$0x10] %vm3_vm0, %v1086_v54   ;;  %1764 = vst.msk [vmem:[%s4051_s1 + $0x1b5] sm:$0x20] %vm3_vm0, %v1086_v54  }
 0x140   :  { %1765 = vst.msk [vmem:[%s4051_s1 + $0x1d4] sm:$0x40] %vm3_vm0, %v1086_v54   ;;  %1766 = vst.msk [vmem:[%s4051_s1 + $0x1f3] sm:$0x80] %vm3_vm0, %v1086_v54  }
 0x141   :  { %1750 = vst.msk [vmem:[%s4051_s1 + $0x1a] sm:$0x1] %vm3_vm0, %v1065_v55   ;;  %1751 = vst.msk [vmem:[%s4051_s1 + $0x39] sm:$0x2] %vm3_vm0, %v1065_v55  }
 0x142   :  { %1752 = vst.msk [vmem:[%s4051_s1 + $0x58] sm:$0x4] %vm3_vm0, %v1065_v55   ;;  %1753 = vst.msk [vmem:[%s4051_s1 + $0x77] sm:$0x8] %vm3_vm0, %v1065_v55  }
 0x143   :  { %1754 = vst.msk [vmem:[%s4051_s1 + $0x96] sm:$0x10] %vm3_vm0, %v1065_v55   ;;  %1755 = vst.msk [vmem:[%s4051_s1 + $0xb5] sm:$0x20] %vm3_vm0, %v1065_v55  }
 0x144   :  { %1756 = vst.msk [vmem:[%s4051_s1 + $0xd4] sm:$0x40] %vm3_vm0, %v1065_v55   ;;  %1757 = vst.msk [vmem:[%s4051_s1 + $0xf3] sm:$0x80] %vm3_vm0, %v1065_v55  }
 0x145   :  { %1776 = vst.msk [vmem:[%s4051_s1 + $0x11b] sm:$0x1] %vm3_vm0, %v1127_v56   ;;  %1777 = vst.msk [vmem:[%s4051_s1 + $0x13a] sm:$0x2] %vm3_vm0, %v1127_v56  }
 0x146   :  { %1778 = vst.msk [vmem:[%s4051_s1 + $0x159] sm:$0x4] %vm3_vm0, %v1127_v56   ;;  %1779 = vst.msk [vmem:[%s4051_s1 + $0x178] sm:$0x8] %vm3_vm0, %v1127_v56  }
 0x147   :  { %1780 = vst.msk [vmem:[%s4051_s1 + $0x197] sm:$0x10] %vm3_vm0, %v1127_v56   ;;  %1781 = vst.msk [vmem:[%s4051_s1 + $0x1b6] sm:$0x20] %vm3_vm0, %v1127_v56  }
 0x148   :  { %1782 = vst.msk [vmem:[%s4051_s1 + $0x1d5] sm:$0x40] %vm3_vm0, %v1127_v56   ;;  %1783 = vst.msk [vmem:[%s4051_s1 + $0x1f4] sm:$0x80] %vm3_vm0, %v1127_v56  }
 0x149   :  { %1767 = vst.msk [vmem:[%s4051_s1 + $0x1b] sm:$0x1] %vm3_vm0, %v1106_v57   ;;  %1768 = vst.msk [vmem:[%s4051_s1 + $0x3a] sm:$0x2] %vm3_vm0, %v1106_v57  }
 0x14a   :  { %1769 = vst.msk [vmem:[%s4051_s1 + $0x59] sm:$0x4] %vm3_vm0, %v1106_v57   ;;  %1770 = vst.msk [vmem:[%s4051_s1 + $0x78] sm:$0x8] %vm3_vm0, %v1106_v57  }
 0x14b   :  { %1771 = vst.msk [vmem:[%s4051_s1 + $0x97] sm:$0x10] %vm3_vm0, %v1106_v57   ;;  %1772 = vst.msk [vmem:[%s4051_s1 + $0xb6] sm:$0x20] %vm3_vm0, %v1106_v57  }
 0x14c   :  { %1773 = vst.msk [vmem:[%s4051_s1 + $0xd5] sm:$0x40] %vm3_vm0, %v1106_v57   ;;  %1774 = vst.msk [vmem:[%s4051_s1 + $0xf4] sm:$0x80] %vm3_vm0, %v1106_v57  }
 0x14d   :  { %1793 = vst.msk [vmem:[%s4051_s1 + $0x11c] sm:$0x1] %vm3_vm0, %v1168_v58   ;;  %1794 = vst.msk [vmem:[%s4051_s1 + $0x13b] sm:$0x2] %vm3_vm0, %v1168_v58  }
 0x14e   :  { %1795 = vst.msk [vmem:[%s4051_s1 + $0x15a] sm:$0x4] %vm3_vm0, %v1168_v58   ;;  %1796 = vst.msk [vmem:[%s4051_s1 + $0x179] sm:$0x8] %vm3_vm0, %v1168_v58  }
 0x14f   :  { %1797 = vst.msk [vmem:[%s4051_s1 + $0x198] sm:$0x10] %vm3_vm0, %v1168_v58   ;;  %1798 = vst.msk [vmem:[%s4051_s1 + $0x1b7] sm:$0x20] %vm3_vm0, %v1168_v58  }
 0x150   :  { %1799 = vst.msk [vmem:[%s4051_s1 + $0x1d6] sm:$0x40] %vm3_vm0, %v1168_v58   ;;  %1800 = vst.msk [vmem:[%s4051_s1 + $0x1f5] sm:$0x80] %vm3_vm0, %v1168_v58  }
 0x151   :  { %1784 = vst.msk [vmem:[%s4051_s1 + $0x1c] sm:$0x1] %vm3_vm0, %v1147_v59   ;;  %1785 = vst.msk [vmem:[%s4051_s1 + $0x3b] sm:$0x2] %vm3_vm0, %v1147_v59  }
 0x152   :  { %1786 = vst.msk [vmem:[%s4051_s1 + $0x5a] sm:$0x4] %vm3_vm0, %v1147_v59   ;;  %1787 = vst.msk [vmem:[%s4051_s1 + $0x79] sm:$0x8] %vm3_vm0, %v1147_v59  }
 0x153   :  { %1788 = vst.msk [vmem:[%s4051_s1 + $0x98] sm:$0x10] %vm3_vm0, %v1147_v59   ;;  %1789 = vst.msk [vmem:[%s4051_s1 + $0xb7] sm:$0x20] %vm3_vm0, %v1147_v59  }
 0x154   :  { %1790 = vst.msk [vmem:[%s4051_s1 + $0xd6] sm:$0x40] %vm3_vm0, %v1147_v59   ;;  %1791 = vst.msk [vmem:[%s4051_s1 + $0xf5] sm:$0x80] %vm3_vm0, %v1147_v59  }
 0x155   :  { %1810 = vst.msk [vmem:[%s4051_s1 + $0x11d] sm:$0x1] %vm3_vm0, %v1209_v60   ;;  %1811 = vst.msk [vmem:[%s4051_s1 + $0x13c] sm:$0x2] %vm3_vm0, %v1209_v60  }
 0x156   :  { %1812 = vst.msk [vmem:[%s4051_s1 + $0x15b] sm:$0x4] %vm3_vm0, %v1209_v60   ;;  %1813 = vst.msk [vmem:[%s4051_s1 + $0x17a] sm:$0x8] %vm3_vm0, %v1209_v60  }
 0x157   :  { %1814 = vst.msk [vmem:[%s4051_s1 + $0x199] sm:$0x10] %vm3_vm0, %v1209_v60   ;;  %1815 = vst.msk [vmem:[%s4051_s1 + $0x1b8] sm:$0x20] %vm3_vm0, %v1209_v60  }
 0x158   :  { %1816 = vst.msk [vmem:[%s4051_s1 + $0x1d7] sm:$0x40] %vm3_vm0, %v1209_v60   ;;  %1817 = vst.msk [vmem:[%s4051_s1 + $0x1f6] sm:$0x80] %vm3_vm0, %v1209_v60  }
 0x159   :  { %1801 = vst.msk [vmem:[%s4051_s1 + $0x1d] sm:$0x1] %vm3_vm0, %v1188_v61   ;;  %1802 = vst.msk [vmem:[%s4051_s1 + $0x3c] sm:$0x2] %vm3_vm0, %v1188_v61  }
 0x15a   :  { %1803 = vst.msk [vmem:[%s4051_s1 + $0x5b] sm:$0x4] %vm3_vm0, %v1188_v61   ;;  %1804 = vst.msk [vmem:[%s4051_s1 + $0x7a] sm:$0x8] %vm3_vm0, %v1188_v61  }
 0x15b   :  { %1805 = vst.msk [vmem:[%s4051_s1 + $0x99] sm:$0x10] %vm3_vm0, %v1188_v61   ;;  %1806 = vst.msk [vmem:[%s4051_s1 + $0xb8] sm:$0x20] %vm3_vm0, %v1188_v61  }
 0x15c   :  { %1807 = vst.msk [vmem:[%s4051_s1 + $0xd7] sm:$0x40] %vm3_vm0, %v1188_v61   ;;  %1808 = vst.msk [vmem:[%s4051_s1 + $0xf6] sm:$0x80] %vm3_vm0, %v1188_v61  }
 0x15d   :  { %1827 = vst.msk [vmem:[%s4051_s1 + $0x11e] sm:$0x1] %vm3_vm0, %v1250_v62   ;;  %1828 = vst.msk [vmem:[%s4051_s1 + $0x13d] sm:$0x2] %vm3_vm0, %v1250_v62  }
 0x15e   :  { %1829 = vst.msk [vmem:[%s4051_s1 + $0x15c] sm:$0x4] %vm3_vm0, %v1250_v62   ;;  %1830 = vst.msk [vmem:[%s4051_s1 + $0x17b] sm:$0x8] %vm3_vm0, %v1250_v62  }
 0x15f   :  { %1831 = vst.msk [vmem:[%s4051_s1 + $0x19a] sm:$0x10] %vm3_vm0, %v1250_v62   ;;  %1832 = vst.msk [vmem:[%s4051_s1 + $0x1b9] sm:$0x20] %vm3_vm0, %v1250_v62  }
 0x160   :  { %1833 = vst.msk [vmem:[%s4051_s1 + $0x1d8] sm:$0x40] %vm3_vm0, %v1250_v62   ;;  %1834 = vst.msk [vmem:[%s4051_s1 + $0x1f7] sm:$0x80] %vm3_vm0, %v1250_v62  }
 0x161   :  { %1818 = vst.msk [vmem:[%s4051_s1 + $0x1e] sm:$0x1] %vm3_vm0, %v1229_v63   ;;  %1819 = vst.msk [vmem:[%s4051_s1 + $0x3d] sm:$0x2] %vm3_vm0, %v1229_v63  }
 0x162   :  { %1820 = vst.msk [vmem:[%s4051_s1 + $0x5c] sm:$0x4] %vm3_vm0, %v1229_v63   ;;  %1821 = vst.msk [vmem:[%s4051_s1 + $0x7b] sm:$0x8] %vm3_vm0, %v1229_v63  }
 0x163   :  { %1822 = vst.msk [vmem:[%s4051_s1 + $0x9a] sm:$0x10] %vm3_vm0, %v1229_v63   ;;  %1823 = vst.msk [vmem:[%s4051_s1 + $0xb9] sm:$0x20] %vm3_vm0, %v1229_v63  }
 0x164   :  { %1824 = vst.msk [vmem:[%s4051_s1 + $0xd8] sm:$0x40] %vm3_vm0, %v1229_v63   ;;  %1825 = vst.msk [vmem:[%s4051_s1 + $0xf7] sm:$0x80] %vm3_vm0, %v1229_v63  }
 0x165   :  { %1844 = vst.msk [vmem:[%s4051_s1 + $0x11f] sm:$0x1] %vm3_vm0, %v1291_v0   ;;  %1845 = vst.msk [vmem:[%s4051_s1 + $0x13e] sm:$0x2] %vm3_vm0, %v1291_v0  }
 0x166   :  { %1846 = vst.msk [vmem:[%s4051_s1 + $0x15d] sm:$0x4] %vm3_vm0, %v1291_v0   ;;  %1847 = vst.msk [vmem:[%s4051_s1 + $0x17c] sm:$0x8] %vm3_vm0, %v1291_v0  }
 0x167   :  { %1848 = vst.msk [vmem:[%s4051_s1 + $0x19b] sm:$0x10] %vm3_vm0, %v1291_v0   ;;  %1849 = vst.msk [vmem:[%s4051_s1 + $0x1ba] sm:$0x20] %vm3_vm0, %v1291_v0  }
 0x168   :  { %1850 = vst.msk [vmem:[%s4051_s1 + $0x1d9] sm:$0x40] %vm3_vm0, %v1291_v0   ;;  %1851 = vst.msk [vmem:[%s4051_s1 + $0x1f8] sm:$0x80] %vm3_vm0, %v1291_v0  }
 0x169   :  { %1835 = vst.msk [vmem:[%s4051_s1 + $0x1f] sm:$0x1] %vm3_vm0, %v1270_v1   ;;  %1836 = vst.msk [vmem:[%s4051_s1 + $0x3e] sm:$0x2] %vm3_vm0, %v1270_v1  }
 0x16a   :  { %1837 = vst.msk [vmem:[%s4051_s1 + $0x5d] sm:$0x4] %vm3_vm0, %v1270_v1   ;;  %1838 = vst.msk [vmem:[%s4051_s1 + $0x7c] sm:$0x8] %vm3_vm0, %v1270_v1  }
 0x16b   :  { %1839 = vst.msk [vmem:[%s4051_s1 + $0x9b] sm:$0x10] %vm3_vm0, %v1270_v1   ;;  %1840 = vst.msk [vmem:[%s4051_s1 + $0xba] sm:$0x20] %vm3_vm0, %v1270_v1  }
 0x16c   :  { %1841 = vst.msk [vmem:[%s4051_s1 + $0xd9] sm:$0x40] %vm3_vm0, %v1270_v1   ;;  %1842 = vst.msk [vmem:[%s4051_s1 + $0xf8] sm:$0x80] %vm3_vm0, %v1270_v1  }

// kernel: tile.18
= control target key start
LH: loop header
LB: loop body
LE: loop exit
PB: predicated region body
PF: predicated region fallthrough
CT: control target
= control target key end

     0   :  { %s22_s0 = inlined_call_operand.vmem [shape: f32[4], index: 0, kind: input, shape index: {}]   ;;  %s23_s1 = inlined_call_operand.vmem [shape: f32[8,4], index: 1, kind: output, shape index: {}]  }
   0x1   :  { %v4_v0 = vld [vmem:[%s22_s0] ss:$0 sm:$0xff] }
   0x2   :  { %5 = vst [vmem:[%s23_s1] sm:$0xff] %v4_v0 }

// kernel: tile.1
= control target key start
LH: loop header
LB: loop body
LE: loop exit
PB: predicated region body
PF: predicated region fallthrough
CT: control target
= control target key end

     0   :  { %vm3_vm0 = vcmask 7168   ;;  %s30_s8 = smov 125   ;;  %s31_s11 = smov 126   ;;  %s57_s0 = inlined_call_operand.vmem [shape: f32[8,4], index: 0, kind: input, shape index: {}]   ;;  %s58_s1 = inlined_call_operand.vmem [shape: f32[32,1], index: 1, kind: output, shape index: {}]  }
   0x1   :  { %v5_v0 = vld [vmem:[%s57_s0] sm:$0xff]   ;;  %s29_s0 = smov 127  }
   0x2   :  { %6 = vrot.lane.b32.xlu0 %v5_v0, %s29_s0  ;;  %18 = vrot.lane.b32.xlu1 %v5_v0, %s30_s8  ;;  %4 = vst.msk [vmem:[%s58_s1] ss:$4 sm:$0xff] %vm3_vm0, %v5_v0  }
   0x6   :  { %12 = vrot.lane.b32.xlu0 %v5_v0, %s31_s11 }
  0x74   :  { %v7_v1 = vpop.permute.xlu0 %6   ;;  %v19_v2 = vpop.permute.xlu1 %18  }
  0x75   :  { %23 = vst.msk [vmem:[%s58_s1 + $0x1] ss:$4 sm:$0xff] %vm3_vm0, %v7_v1   ;;  %25 = vst.msk [vmem:[%s58_s1 + $0x3] ss:$4 sm:$0xff] %vm3_vm0, %v19_v2  }
  0x78   :  { %v13_v3 = vpop.permute.xlu0 %12  }
  0x79   :  { %24 = vst.msk [vmem:[%s58_s1 + $0x2] ss:$4 sm:$0xff] %vm3_vm0, %v13_v3  }

// kernel: nlinear_forward.1
= control target key start
LH: loop header
LB: loop body
LE: loop exit
PB: predicated region body
PF: predicated region fallthrough
CT: control target
= control target key end

     0   :  { %v2428_v0 = vmov 0   ;;  %vm482_vm0 = vcmask 523264   ;;  %vm2075_vm1 = vcmask 15360   ;;  %s4113_s2 = inlined_call_operand.vmem [shape: f32[512,1], index: 2, kind: input, shape index: {}]   ;;  %s4114_s0 = inlined_call_operand.vmem [shape: f32[64,2], index: 0, kind: input, shape index: {}]   ;;  %s4115_s1 = inlined_call_operand.vmem [shape: f32[512,64], index: 1, kind: input, shape index: {}]   ;;  %s4116_s4 = inlined_call_operand.vmem [shape: f32[256,1], index: 4, kind: input, shape index: {}]   ;;  %s4117_s6 = inlined_call_operand.vmem [shape: f32[32,1], index: 6, kind: input, shape index: {}]   ;;  %s4118_s3 = inlined_call_operand.vmem [shape: f32[256,512], index: 3, kind: input, shape index: {}]   ;;  %s4119_s5 = inlined_call_operand.vmem [shape: f32[32,256], index: 5, kind: input, shape index: {}]   ;;  %s4120_s7 = inlined_call_operand.vmem [shape: f32[32,2], index: 7, kind: output, shape index: {}]  }
   0x1   :  { %2427 = vset.pattern.permute.xlu1 %v2428_v0  ;;  %2426 = vset.pattern.permute.xlu0 %v2428_v0  ;;  %v113_v1 = vld [vmem:[%s4113_s2 + $0x78] sm:$0xff]  ;;  %v112_v2 = vld [vmem:[%s4113_s2 + $0x70] sm:$0xff]  ;;  %v95_v7 = vld [vmem:[%s4114_s0 + $0x28] sm:$0xff] }
   0x2   :  { %v97_v3 = vld [vmem:[%s4114_s0 + $0x38] sm:$0xff]  ;;  %239 = vperm.xlu0 %2426, %v113_v1   ;;  %234 = vperm.xlu1 %2427, %v112_v2   ;;  %v96_v4 = vld [vmem:[%s4114_s0 + $0x30] sm:$0xff]  ;;  %v94_v8 = vld [vmem:[%s4114_s0 + $0x20] sm:$0xff] }
   0x3   :  { %2264 = vmatprep.subr.mxu0 %v97_v3  ;;  %2376 = vmatprep.subr.mxu1 %v97_v3  ;;  %v161_v5 = vld [vmem:[%s4113_s2 + $0x1f8] sm:$0xff]  ;;  %v160_v9 = vld [vmem:[%s4113_s2 + $0x1f0] sm:$0xff]  ;;  %v111_v10 = vld [vmem:[%s4113_s2 + $0x68] sm:$0xff] }
   0x4   :  { %2265 = vmatpush3.msra.mxu0 %v97_v3  ;;  %2384 = vmatpush3.msra.mxu1 %v97_v3  ;;  %v145_v6 = vld [vmem:[%s4113_s2 + $0x178] sm:$0xff]  ;;  %v92_v12 = vld [vmem:[%s4114_s0 + $0x10] sm:$0xff]  ;;  %v159_v14 = vld [vmem:[%s4113_s2 + $0x1e8] sm:$0xff] }
   0x5   :  { %2266 = vmatprep.subr.mxu0 %v96_v4  ;;  %2377 = vmatprep.subr.mxu1 %v96_v4  ;;  %v93_v11 = vld [vmem:[%s4114_s0 + $0x18] sm:$0xff]  ;;  %v144_v13 = vld [vmem:[%s4113_s2 + $0x170] sm:$0xff]  ;;  %v91_v15 = vld [vmem:[%s4114_s0 + $0x8] sm:$0xff] }
   0x6   :  { %2267 = vmatpush3.msra.mxu0 %v96_v4  ;;  %2385 = vmatpush3.msra.mxu1 %v96_v4  ;;  %v90_v16 = vld [vmem:[%s4114_s0] sm:$0xff]  ;;  %v143_v19 = vld [vmem:[%s4113_s2 + $0x168] sm:$0xff]  ;;  %v28_v23 = vld [vmem:[%s4115_s1 + $0x10] sm:$0xff] }
   0x7   :  { %479 = vperm.xlu0 %2426, %v161_v5   ;;  %399 = vperm.xlu1 %2427, %v145_v6   ;;  %v26_v17 = vld [vmem:[%s4115_s1] sm:$0xff]  ;;  %v27_v21 = vld [vmem:[%s4115_s1 + $0x8] sm:$0xff]  ;;  %v60_v24 = vld [vmem:[%s4115_s1 + $0x110] sm:$0xff] }
   0x8   :  { %2268 = vmatprep.subr.mxu0 %v95_v7  ;;  %2378 = vmatprep.subr.mxu1 %v95_v7  ;;  %v58_v18 = vld [vmem:[%s4115_s1 + $0x100] sm:$0xff]  ;;  %v59_v22 = vld [vmem:[%s4115_s1 + $0x108] sm:$0xff]  ;;  %v109_v26 = vld [vmem:[%s4113_s2 + $0x58] sm:$0xff] }
   0x9   :  { %2269 = vmatpush3.msra.mxu0 %v95_v7  ;;  %2386 = vmatpush3.msra.mxu1 %v95_v7  ;;  %v110_v20 = vld [vmem:[%s4113_s2 + $0x60] sm:$0xff]  ;;  %v29_v27 = vld [vmem:[%s4115_s1 + $0x18] sm:$0xff]  ;;  %v108_v32 = vld [vmem:[%s4113_s2 + $0x50] sm:$0xff] }
   0xa   :  { %2270 = vmatprep.subr.mxu0 %v94_v8  ;;  %2379 = vmatprep.subr.mxu1 %v94_v8  ;;  %v158_v25 = vld [vmem:[%s4113_s2 + $0x1e0] sm:$0xff]  ;;  %v61_v28 = vld [vmem:[%s4115_s1 + $0x118] sm:$0xff]  ;;  %v31_v33 = vld [vmem:[%s4115_s1 + $0x28] sm:$0xff] }
   0xb   :  { %2271 = vmatpush3.msra.mxu0 %v94_v8  ;;  %2387 = vmatpush3.msra.mxu1 %v94_v8  ;;  %v30_v29 = vld [vmem:[%s4115_s1 + $0x20] sm:$0xff]  ;;  %v63_v34 = vld [vmem:[%s4115_s1 + $0x128] sm:$0xff]  ;;  %v32_v35 = vld [vmem:[%s4115_s1 + $0x30] sm:$0xff] }
   0xc   :  { %474 = vperm.xlu0 %2426, %v160_v9   ;;  %229 = vperm.xlu1 %2427, %v111_v10   ;;  %v62_v30 = vld [vmem:[%s4115_s1 + $0x120] sm:$0xff]  ;;  %v64_v36 = vld [vmem:[%s4115_s1 + $0x130] sm:$0xff]  ;;  %v141_v37 = vld [vmem:[%s4113_s2 + $0x158] sm:$0xff] }
   0xd   :  { %2272 = vmatprep.subr.mxu0 %v93_v11  ;;  %2380 = vmatprep.subr.mxu1 %v93_v11  ;;  %v142_v31 = vld [vmem:[%s4113_s2 + $0x160] sm:$0xff]  ;;  %v107_v38 = vld [vmem:[%s4113_s2 + $0x48] sm:$0xff]  ;;  %v33_v39 = vld [vmem:[%s4115_s1 + $0x38] sm:$0xff] }
   0xe   :  { %2273 = vmatpush3.msra.mxu0 %v93_v11  ;;  %2388 = vmatpush3.msra.mxu1 %v93_v11  ;;  %v65_v40 = vld [vmem:[%s4115_s1 + $0x138] sm:$0xff]  ;;  %v34_v41 = vld [vmem:[%s4115_s1 + $0x40] sm:$0xff]  ;;  %v140_v43 = vld [vmem:[%s4113_s2 + $0x150] sm:$0xff] }
   0xf   :  { %2274 = vmatprep.subr.mxu0 %v92_v12  ;;  %2381 = vmatprep.subr.mxu1 %v92_v12  ;;  %v66_v42 = vld [vmem:[%s4115_s1 + $0x140] sm:$0xff]  ;;  %v35_v45 = vld [vmem:[%s4115_s1 + $0x48] sm:$0xff]  ;;  %v36_v47 = vld [vmem:[%s4115_s1 + $0x50] sm:$0xff] }
  0x10   :  { %2275 = vmatpush3.msra.mxu0 %v92_v12  ;;  %2389 = vmatpush3.msra.mxu1 %v92_v12  ;;  %v106_v44 = vld [vmem:[%s4113_s2 + $0x40] sm:$0xff]  ;;  %v67_v46 = vld [vmem:[%s4115_s1 + $0x148] sm:$0xff]  ;;  %v68_v48 = vld [vmem:[%s4115_s1 + $0x150] sm:$0xff] }
  0x11   :  { %394 = vperm.xlu0 %2426, %v144_v13   ;;  %469 = vperm.xlu1 %2427, %v159_v14   ;;  %v139_v49 = vld [vmem:[%s4113_s2 + $0x148] sm:$0xff]  ;;  %v105_v50 = vld [vmem:[%s4113_s2 + $0x38] sm:$0xff]  ;;  %v38_v53 = vld [vmem:[%s4115_s1 + $0x60] sm:$0xff] }
  0x12   :  { %2276 = vmatprep.subr.mxu0 %v91_v15  ;;  %2382 = vmatprep.subr.mxu1 %v91_v15  ;;  %v37_v51 = vld [vmem:[%s4115_s1 + $0x58] sm:$0xff]  ;;  %v70_v54 = vld [vmem:[%s4115_s1 + $0x160] sm:$0xff]  ;;  %v104_v56 = vld [vmem:[%s4113_s2 + $0x30] sm:$0xff] }
  0x13   :  { %2277 = vmatpush3.msra.mxu0 %v91_v15  ;;  %2390 = vmatpush3.msra.mxu1 %v91_v15  ;;  %v69_v52 = vld [vmem:[%s4115_s1 + $0x158] sm:$0xff]  ;;  %v138_v55 = vld [vmem:[%s4113_s2 + $0x140] sm:$0xff]  ;;  %v39_v57 = vld [vmem:[%s4115_s1 + $0x68] sm:$0xff] }
  0x14   :  { %2278 = vmatprep.subr.mxu0 %v90_v16  ;;  %2383 = vmatprep.subr.mxu1 %v90_v16  ;;  %v71_v58 = vld [vmem:[%s4115_s1 + $0x168] sm:$0xff]  ;;  %v40_v59 = vld [vmem:[%s4115_s1 + $0x70] sm:$0xff]  ;;  %v137_v61 = vld [vmem:[%s4113_s2 + $0x138] sm:$0xff] }
  0x15   :  { %2279 = vmatpush3.msra.mxu0 %v90_v16  ;;  %2391 = vmatpush3.msra.mxu1 %v90_v16  ;;  %v72_v60 = vld [vmem:[%s4115_s1 + $0x170] sm:$0xff]  ;;  %v103_v62 = vld [vmem:[%s4113_s2 + $0x28] sm:$0xff]  ;;  %v41_v63 = vld [vmem:[%s4115_s1 + $0x78] sm:$0xff] }
  0x16   :  { %2280 = vmatprep.mubr.msk.f32.mxu0 %vm482_vm0, %v26_v17  ;;  %2328 = vmatprep.mubr.msk.f32.mxu1 %vm482_vm0, %v58_v18  ;;  %v73_v0 = vld [vmem:[%s4115_s1 + $0x178] sm:$0xff]  ;;  %v42_v1 = vld [vmem:[%s4115_s1 + $0x80] sm:$0xff]  ;;  %v136_v3 = vld [vmem:[%s4113_s2 + $0x130] sm:$0xff] }
  0x17   :  { %389 = vperm.xlu1 %2427, %v143_v19   ;;  %224 = vperm.xlu0 %2426, %v110_v20   ;;  %v74_v2 = vld [vmem:[%s4115_s1 + $0x180] sm:$0xff]  ;;  %v43_v5 = vld [vmem:[%s4115_s1 + $0x88] sm:$0xff]  ;;  %v44_v7 = vld [vmem:[%s4115_s1 + $0x90] sm:$0xff] }
  0x18   :  { %2281 = vmatmul.mubr.msk.f32.vlgmr.msra.gmra.mxu0 %vm482_vm0, %v27_v21  ;;  %2329 = vmatmul.mubr.msk.f32.vlgmr.msra.gmra.mxu1 %vm482_vm0, %v59_v22  ;;  %v102_v4 = vld [vmem:[%s4113_s2 + $0x20] sm:$0xff]  ;;  %v75_v6 = vld [vmem:[%s4115_s1 + $0x188] sm:$0xff]  ;;  %v76_v8 = vld [vmem:[%s4115_s1 + $0x190] sm:$0xff] }
  0x19   :  { %2283 = vmatprep.mubr.msk.f32.mxu0 %vm482_vm0, %v28_v23  ;;  %2331 = vmatprep.mubr.msk.f32.mxu1 %vm482_vm0, %v60_v24  ;;  %v135_v9 = vld [vmem:[%s4113_s2 + $0x128] sm:$0xff]  ;;  %v101_v10 = vld [vmem:[%s4113_s2 + $0x18] sm:$0xff]  ;;  %v46_v13 = vld [vmem:[%s4115_s1 + $0xa0] sm:$0xff] }
  0x1a   :  { %v45_v11 = vld [vmem:[%s4115_s1 + $0x98] sm:$0xff]  ;;  %v78_v14 = vld [vmem:[%s4115_s1 + $0x1a0] sm:$0xff]  ;;  %v100_v16 = vld [vmem:[%s4113_s2 + $0x10] sm:$0xff] }
  0x1b   :  { %464 = vperm.xlu0 %2426, %v158_v25   ;;  %219 = vperm.xlu1 %2427, %v109_v26   ;;  %v77_v12 = vld [vmem:[%s4115_s1 + $0x198] sm:$0xff]  ;;  %v134_v15 = vld [vmem:[%s4113_s2 + $0x120] sm:$0xff]  ;;  %v47_v17 = vld [vmem:[%s4115_s1 + $0xa8] sm:$0xff] }
  0x1c   :  { %2284 = vmatmul.mubr.msk.f32.gmra.mxu0 %vm482_vm0, %v29_v27  ;;  %2332 = vmatmul.mubr.msk.f32.gmra.mxu1 %vm482_vm0, %v61_v28  ;;  %v79_v18 = vld [vmem:[%s4115_s1 + $0x1a8] sm:$0xff]  ;;  %v48_v19 = vld [vmem:[%s4115_s1 + $0xb0] sm:$0xff]  ;;  %v133_v21 = vld [vmem:[%s4113_s2 + $0x118] sm:$0xff] }
  0x1d   :  { %2286 = vmatprep.mubr.msk.f32.mxu0 %vm482_vm0, %v30_v29  ;;  %2334 = vmatprep.mubr.msk.f32.mxu1 %vm482_vm0, %v62_v30  ;;  %v80_v20 = vld [vmem:[%s4115_s1 + $0x1b0] sm:$0xff]  ;;  %v99_v22 = vld [vmem:[%s4113_s2 + $0x8] sm:$0xff]  ;;  %v49_v23 = vld [vmem:[%s4115_s1 + $0xb8] sm:$0xff] }
  0x1e   :  { %v81_v24 = vld [vmem:[%s4115_s1 + $0x1b8] sm:$0xff]  ;;  %v50_v25 = vld [vmem:[%s4115_s1 + $0xc0] sm:$0xff]  ;;  %v132_v27 = vld [vmem:[%s4113_s2 + $0x110] sm:$0xff] }
  0x1f   :  { %384 = vperm.xlu0 %2426, %v142_v31   ;;  %214 = vperm.xlu1 %2427, %v108_v32   ;;  %v82_v26 = vld [vmem:[%s4115_s1 + $0x1c0] sm:$0xff]  ;;  %v51_v29 = vld [vmem:[%s4115_s1 + $0xc8] sm:$0xff]  ;;  %v52_v31 = vld [vmem:[%s4115_s1 + $0xd0] sm:$0xff] }
  0x20   :  { %2287 = vmatmul.mubr.msk.f32.gmra.mxu0 %vm482_vm0, %v31_v33  ;;  %2335 = vmatmul.mubr.msk.f32.gmra.mxu1 %vm482_vm0, %v63_v34  ;;  %v98_v28 = vld [vmem:[%s4113_s2] sm:$0xff]  ;;  %v83_v30 = vld [vmem:[%s4115_s1 + $0x1c8] sm:$0xff]  ;;  %v84_v32 = vld [vmem:[%s4115_s1 + $0x1d0] sm:$0xff] }
  0x21   :  { %2289 = vmatprep.mubr.msk.f32.mxu0 %vm482_vm0, %v32_v35  ;;  %2337 = vmatprep.mubr.msk.f32.mxu1 %vm482_vm0, %v64_v36  ;;  %v131_v33 = vld [vmem:[%s4113_s2 + $0x108] sm:$0xff]  ;;  %v129_v34 = vld [vmem:[%s4113_s2 + $0xf8] sm:$0xff] }
  0x22   :  { %v53_v35 = vld [vmem:[%s4115_s1 + $0xd8] sm:$0xff] }
  0x23   :  { %379 = vperm.xlu0 %2426, %v141_v37   ;;  %209 = vperm.xlu1 %2427, %v107_v38   ;;  %v85_v36 = vld [vmem:[%s4115_s1 + $0x1d8] sm:$0xff]  ;;  %v54_v37 = vld [vmem:[%s4115_s1 + $0xe0] sm:$0xff] }
  0x24   :  { %2290 = vmatmul.mubr.msk.f32.gmra.mxu0 %vm482_vm0, %v33_v39  ;;  %2338 = vmatmul.mubr.msk.f32.gmra.mxu1 %vm482_vm0, %v65_v40  ;;  %v86_v38 = vld [vmem:[%s4115_s1 + $0x1e0] sm:$0xff]  ;;  %v128_v40 = vld [vmem:[%s4113_s2 + $0xf0] sm:$0xff] }
  0x25   :  { %2292 = vmatprep.mubr.msk.f32.mxu0 %vm482_vm0, %v34_v41  ;;  %2340 = vmatprep.mubr.msk.f32.mxu1 %vm482_vm0, %v66_v42  ;;  %v130_v39 = vld [vmem:[%s4113_s2 + $0x100] sm:$0xff]  ;;  %v55_v41 = vld [vmem:[%s4115_s1 + $0xe8] sm:$0xff] }
  0x26   :  { %v87_v42 = vld [vmem:[%s4115_s1 + $0x1e8] sm:$0xff] }
  0x27   :  { %374 = vperm.xlu0 %2426, %v140_v43   ;;  %204 = vperm.xlu1 %2427, %v106_v44   ;;  %v56_v43 = vld [vmem:[%s4115_s1 + $0xf0] sm:$0xff] }
  0x28   :  { %2293 = vmatmul.mubr.msk.f32.gmra.mxu0 %vm482_vm0, %v35_v45  ;;  %2341 = vmatmul.mubr.msk.f32.gmra.mxu1 %vm482_vm0, %v67_v46  ;;  %v88_v44 = vld [vmem:[%s4115_s1 + $0x1f0] sm:$0xff]  ;;  %v127_v45 = vld [vmem:[%s4113_s2 + $0xe8] sm:$0xff]  ;;  %v126_v46 = vld [vmem:[%s4113_s2 + $0xe0] sm:$0xff] }
  0x29   :  { %2295 = vmatprep.mubr.msk.f32.mxu0 %vm482_vm0, %v36_v47  ;;  %2343 = vmatprep.mubr.msk.f32.mxu1 %vm482_vm0, %v68_v48  ;;  %v57_v47 = vld [vmem:[%s4115_s1 + $0xf8] sm:$0xff] }
  0x2a   :  { %v89_v48 = vld [vmem:[%s4115_s1 + $0x1f8] sm:$0xff] }
  0x2b   :  { %369 = vperm.xlu0 %2426, %v139_v49   ;;  %199 = vperm.xlu1 %2427, %v105_v50   ;;  %v125_v49 = vld [vmem:[%s4113_s2 + $0xd8] sm:$0xff]  ;;  %v124_v50 = vld [vmem:[%s4113_s2 + $0xd0] sm:$0xff] }
  0x2c   :  { %2296 = vmatmul.mubr.msk.f32.gmra.mxu0 %vm482_vm0, %v37_v51  ;;  %2344 = vmatmul.mubr.msk.f32.gmra.mxu1 %vm482_vm0, %v69_v52  ;;  %v157_v51 = vld [vmem:[%s4113_s2 + $0x1d8] sm:$0xff]  ;;  %v123_v52 = vld [vmem:[%s4113_s2 + $0xc8] sm:$0xff] }
  0x2d   :  { %2298 = vmatprep.mubr.msk.f32.mxu0 %vm482_vm0, %v38_v53  ;;  %2346 = vmatprep.mubr.msk.f32.mxu1 %vm482_vm0, %v70_v54  ;;  %v156_v53 = vld [vmem:[%s4113_s2 + $0x1d0] sm:$0xff]  ;;  %v122_v54 = vld [vmem:[%s4113_s2 + $0xc0] sm:$0xff] }
  0x2f   :  { %364 = vperm.xlu0 %2426, %v138_v55   ;;  %194 = vperm.xlu1 %2427, %v104_v56   ;;  %v155_v55 = vld [vmem:[%s4113_s2 + $0x1c8] sm:$0xff]  ;;  %v121_v56 = vld [vmem:[%s4113_s2 + $0xb8] sm:$0xff] }
  0x30   :  { %2299 = vmatmul.mubr.msk.f32.gmra.mxu0 %vm482_vm0, %v39_v57  ;;  %2347 = vmatmul.mubr.msk.f32.gmra.mxu1 %vm482_vm0, %v71_v58  ;;  %v154_v57 = vld [vmem:[%s4113_s2 + $0x1c0] sm:$0xff]  ;;  %v120_v58 = vld [vmem:[%s4113_s2 + $0xb0] sm:$0xff] }
  0x31   :  { %2301 = vmatprep.mubr.msk.f32.mxu0 %vm482_vm0, %v40_v59  ;;  %2349 = vmatprep.mubr.msk.f32.mxu1 %vm482_vm0, %v72_v60  ;;  %v153_v59 = vld [vmem:[%s4113_s2 + $0x1b8] sm:$0xff]  ;;  %v119_v60 = vld [vmem:[%s4113_s2 + $0xa8] sm:$0xff] }
  0x33   :  { %359 = vperm.xlu0 %2426, %v137_v61   ;;  %189 = vperm.xlu1 %2427, %v103_v62   ;;  %v152_v61 = vld [vmem:[%s4113_s2 + $0x1b0] sm:$0xff]  ;;  %v118_v62 = vld [vmem:[%s4113_s2 + $0xa0] sm:$0xff] }
  0x34   :  { %2302 = vmatmul.mubr.msk.f32.gmra.mxu0 %vm482_vm0, %v41_v63  ;;  %2350 = vmatmul.mubr.msk.f32.gmra.mxu1 %vm482_vm0, %v73_v0  ;;  %v151_v63 = vld [vmem:[%s4113_s2 + $0x1a8] sm:$0xff]  ;;  %v117_v0 = vld [vmem:[%s4113_s2 + $0x98] sm:$0xff] }
  0x35   :  { %2304 = vmatprep.mubr.msk.f32.mxu0 %vm482_vm0, %v42_v1  ;;  %2352 = vmatprep.mubr.msk.f32.mxu1 %vm482_vm0, %v74_v2  ;;  %v150_v1 = vld [vmem:[%s4113_s2 + $0x1a0] sm:$0xff]  ;;  %v116_v2 = vld [vmem:[%s4113_s2 + $0x90] sm:$0xff] }
  0x37   :  { %354 = vperm.xlu0 %2426, %v136_v3   ;;  %184 = vperm.xlu1 %2427, %v102_v4   ;;  %v149_v3 = vld [vmem:[%s4113_s2 + $0x198] sm:$0xff]  ;;  %v115_v4 = vld [vmem:[%s4113_s2 + $0x88] sm:$0xff] }
  0x38   :  { %2305 = vmatmul.mubr.msk.f32.gmra.mxu0 %vm482_vm0, %v43_v5  ;;  %2353 = vmatmul.mubr.msk.f32.gmra.mxu1 %vm482_vm0, %v75_v6  ;;  %v148_v5 = vld [vmem:[%s4113_s2 + $0x190] sm:$0xff]  ;;  %v114_v6 = vld [vmem:[%s4113_s2 + $0x80] sm:$0xff] }
  0x39   :  { %2307 = vmatprep.mubr.msk.f32.mxu0 %vm482_vm0, %v44_v7  ;;  %2355 = vmatprep.mubr.msk.f32.mxu1 %vm482_vm0, %v76_v8  ;;  %v147_v7 = vld [vmem:[%s4113_s2 + $0x188] sm:$0xff]  ;;  %v146_v8 = vld [vmem:[%s4113_s2 + $0x180] sm:$0xff] }
  0x3b   :  { %349 = vperm.xlu0 %2426, %v135_v9   ;;  %179 = vperm.xlu1 %2427, %v101_v10   ;;  %v1283_v9 = vld [vmem:[%s4116_s4 + $0xf8] sm:$0xff] }
  0x3c   :  { %2308 = vmatmul.mubr.msk.f32.gmra.mxu0 %vm482_vm0, %v45_v11  ;;  %2356 = vmatmul.mubr.msk.f32.gmra.mxu1 %vm482_vm0, %v77_v12  ;;  %v1267_v10 = vld [vmem:[%s4116_s4 + $0x78] sm:$0xff]  ;;  %v1282_v11 = vld [vmem:[%s4116_s4 + $0xf0] sm:$0xff] }
  0x3d   :  { %2310 = vmatprep.mubr.msk.f32.mxu0 %vm482_vm0, %v46_v13  ;;  %2358 = vmatprep.mubr.msk.f32.mxu1 %vm482_vm0, %v78_v14  ;;  %v1266_v12 = vld [vmem:[%s4116_s4 + $0x70] sm:$0xff]  ;;  %v1281_v13 = vld [vmem:[%s4116_s4 + $0xe8] sm:$0xff] }
  0x3e   :  { %v1265_v14 = vld [vmem:[%s4116_s4 + $0x68] sm:$0xff] }
  0x3f   :  { %344 = vperm.xlu0 %2426, %v134_v15   ;;  %174 = vperm.xlu1 %2427, %v100_v16   ;;  %v1280_v15 = vld [vmem:[%s4116_s4 + $0xe0] sm:$0xff] }
  0x40   :  { %2311 = vmatmul.mubr.msk.f32.gmra.mxu0 %vm482_vm0, %v47_v17  ;;  %2359 = vmatmul.mubr.msk.f32.gmra.mxu1 %vm482_vm0, %v79_v18  ;;  %v1264_v16 = vld [vmem:[%s4116_s4 + $0x60] sm:$0xff]  ;;  %v1279_v18 = vld [vmem:[%s4116_s4 + $0xd8] sm:$0xff] }
  0x41   :  { %2313 = vmatprep.mubr.msk.f32.mxu0 %vm482_vm0, %v48_v19  ;;  %2361 = vmatprep.mubr.msk.f32.mxu1 %vm482_vm0, %v80_v20  ;;  %v1263_v19 = vld [vmem:[%s4116_s4 + $0x58] sm:$0xff] }
  0x43   :  { %339 = vperm.xlu0 %2426, %v133_v21   ;;  %169 = vperm.xlu1 %2427, %v99_v22   ;;  %v1278_v21 = vld [vmem:[%s4116_s4 + $0xd0] sm:$0xff] }
  0x44   :  { %2314 = vmatmul.mubr.msk.f32.gmra.mxu0 %vm482_vm0, %v49_v23  ;;  %2362 = vmatmul.mubr.msk.f32.gmra.mxu1 %vm482_vm0, %v81_v24  ;;  %v1262_v22 = vld [vmem:[%s4116_s4 + $0x50] sm:$0xff]  ;;  %v4121_v23 = vmov 0.0  }
  0x45   :  { %2316 = vmatprep.mubr.msk.f32.mxu0 %vm482_vm0, %v50_v25  ;;  %2364 = vmatprep.mubr.msk.f32.mxu1 %vm482_vm0, %v82_v26  ;;  %v1277_v26 = vld [vmem:[%s4116_s4 + $0xc8] sm:$0xff] }
  0x46   :  { %1444 = vmatprep.subr.mxu1 %v4121_v23  ;;  %1669 = vmatprep.subr.mxu0 %v4121_v23 }
  0x47   :  { %334 = vperm.xlu0 %2426, %v132_v27   ;;  %164 = vperm.xlu1 %2427, %v98_v28   ;;  %v1261_v27 = vld [vmem:[%s4116_s4 + $0x48] sm:$0xff] }
  0x48   :  { %2317 = vmatmul.mubr.msk.f32.gmra.mxu0 %vm482_vm0, %v51_v29  ;;  %2365 = vmatmul.mubr.msk.f32.gmra.mxu1 %vm482_vm0, %v83_v30  ;;  %v1276_v29 = vld [vmem:[%s4116_s4 + $0xc0] sm:$0xff] }
  0x49   :  { %2319 = vmatprep.mubr.msk.f32.mxu0 %vm482_vm0, %v52_v31  ;;  %2367 = vmatprep.mubr.msk.f32.mxu1 %vm482_vm0, %v84_v32  ;;  %v1260_v30 = vld [vmem:[%s4116_s4 + $0x40] sm:$0xff]  ;;  %v1275_v32 = vld [vmem:[%s4116_s4 + $0xb8] sm:$0xff] }
  0x4b   :  { %329 = vperm.xlu0 %2426, %v131_v33   ;;  %319 = vperm.xlu1 %2427, %v129_v34   ;;  %v1259_v33 = vld [vmem:[%s4116_s4 + $0x38] sm:$0xff] }
  0x4c   :  { %2320 = vmatmul.mubr.msk.f32.gmra.mxu0 %vm482_vm0, %v53_v35  ;;  %2368 = vmatmul.mubr.msk.f32.gmra.mxu1 %vm482_vm0, %v85_v36  ;;  %v1274_v36 = vld [vmem:[%s4116_s4 + $0xb0] sm:$0xff] }
  0x4d   :  { %2322 = vmatprep.mubr.msk.f32.mxu0 %vm482_vm0, %v54_v37  ;;  %2370 = vmatprep.mubr.msk.f32.mxu1 %vm482_vm0, %v86_v38  ;;  %v1258_v37 = vld [vmem:[%s4116_s4 + $0x30] sm:$0xff] }
  0x4f   :  { %324 = vperm.xlu0 %2426, %v130_v39   ;;  %314 = vperm.xlu1 %2427, %v128_v40   ;;  %v1273_v39 = vld [vmem:[%s4116_s4 + $0xa8] sm:$0xff] }
  0x50   :  { %2323 = vmatmul.mubr.msk.f32.gmra.mxu0 %vm482_vm0, %v55_v41  ;;  %2371 = vmatmul.mubr.msk.f32.gmra.mxu1 %vm482_vm0, %v87_v42  ;;  %v1257_v40 = vld [vmem:[%s4116_s4 + $0x28] sm:$0xff]  ;;  %v1272_v42 = vld [vmem:[%s4116_s4 + $0xa0] sm:$0xff] }
  0x51   :  { %2325 = vmatprep.mubr.msk.f32.mxu0 %vm482_vm0, %v56_v43  ;;  %2373 = vmatprep.mubr.msk.f32.mxu1 %vm482_vm0, %v88_v44  ;;  %v1256_v43 = vld [vmem:[%s4116_s4 + $0x20] sm:$0xff] }
  0x53   :  { %309 = vperm.xlu0 %2426, %v127_v45   ;;  %304 = vperm.xlu1 %2427, %v126_v46   ;;  %v1271_v46 = vld [vmem:[%s4116_s4 + $0x98] sm:$0xff] }
  0x54   :  { %2326 = vmatmul.mubr.msk.f32.gmra.mxu0 %vm482_vm0, %v57_v47  ;;  %2374 = vmatmul.mubr.msk.f32.gmra.mxu1 %vm482_vm0, %v89_v48  ;;  %v1255_v47 = vld [vmem:[%s4116_s4 + $0x18] sm:$0xff] }
  0x57   :  { %299 = vperm.xlu0 %2426, %v125_v49   ;;  %294 = vperm.xlu1 %2427, %v124_v50   ;;  %v1270_v49 = vld [vmem:[%s4116_s4 + $0x90] sm:$0xff] }
  0x58   :  { %v1254_v50 = vld [vmem:[%s4116_s4 + $0x10] sm:$0xff] }
  0x5b   :  { %459 = vperm.xlu0 %2426, %v157_v51   ;;  %289 = vperm.xlu1 %2427, %v123_v52   ;;  %v1269_v52 = vld [vmem:[%s4116_s4 + $0x88] sm:$0xff] }
  0x5f   :  { %454 = vperm.xlu0 %2426, %v156_v53   ;;  %284 = vperm.xlu1 %2427, %v122_v54   ;;  %v1253_v53 = vld [vmem:[%s4116_s4 + $0x8] sm:$0xff] }
  0x63   :  { %449 = vperm.xlu0 %2426, %v155_v55   ;;  %279 = vperm.xlu1 %2427, %v121_v56   ;;  %v1268_v56 = vld [vmem:[%s4116_s4 + $0x80] sm:$0xff] }
  0x67   :  { %444 = vperm.xlu0 %2426, %v154_v57   ;;  %274 = vperm.xlu1 %2427, %v120_v58   ;;  %v1252_v57 = vld [vmem:[%s4116_s4] sm:$0xff] }
  0x6b   :  { %439 = vperm.xlu0 %2426, %v153_v59   ;;  %269 = vperm.xlu1 %2427, %v119_v60   ;;  %v1966_v59 = vld [vmem:[%s4117_s6] sm:$0xff]  ;;  %v1967_v60 = vld [vmem:[%s4117_s6 + $0x8] sm:$0xff] }
  0x6f   :  { %434 = vperm.xlu0 %2426, %v152_v61   ;;  %264 = vperm.xlu1 %2427, %v118_v62   ;;  %v1968_v62 = vld [vmem:[%s4117_s6 + $0x10] sm:$0xff] }
  0x73   :  { %429 = vperm.xlu0 %2426, %v151_v63   ;;  %259 = vperm.xlu1 %2427, %v117_v0   ;;  %v1969_v63 = vld [vmem:[%s4117_s6 + $0x18] sm:$0xff] }
  0x77   :  { %424 = vperm.xlu0 %2426, %v150_v1   ;;  %254 = vperm.xlu1 %2427, %v116_v2  }
  0x7b   :  { %419 = vperm.xlu0 %2426, %v149_v3   ;;  %249 = vperm.xlu1 %2427, %v115_v4  }
  0x7d   :  { %v2966_v17 = vpop.permute.xlu0 %239  ;;  %v2974_v20 = vpop.permute.xlu1 %234 }
  0x7f   :  { %414 = vperm.xlu0 %2426, %v148_v5   ;;  %244 = vperm.xlu1 %2427, %v114_v6  }
  0x82   :  { %v2984_v24 = vpop.permute.xlu0 %479  ;;  %v2986_v25 = vpop.permute.xlu1 %399 }
  0x83   :  { %409 = vperm.xlu0 %2426, %v147_v7   ;;  %404 = vperm.xlu1 %2427, %v146_v8   ;;  %v1125_v8 = vld [vmem:[%s4118_s3 + $0x8] sm:$0xff] }
  0x84   :  { %1508 = vmatprep.mubr.f32.mxu1 %v1125_v8 }
  0x87   :  { %1441 = vperm.xlu0 %2426, %v1283_v9   ;;  %1361 = vperm.xlu1 %2427, %v1267_v10   ;;  %v2994_v28 = vpop.permute.xlu0 %474  ;;  %v3002_v31 = vpop.permute.xlu1 %229  ;;  %v1127_v9 = vld [vmem:[%s4118_s3 + $0x18] sm:$0xff] }
  0x88   :  { %1733 = vmatprep.mubr.f32.mxu0 %v1127_v9 }
  0x8b   :  { %1436 = vperm.xlu0 %2426, %v1282_v11   ;;  %1356 = vperm.xlu1 %2427, %v1266_v12  }
  0x8c   :  { %v3010_v34 = vpop.permute.xlu0 %394  ;;  %v3012_v35 = vpop.permute.xlu1 %469 }
  0x8f   :  { %1431 = vperm.xlu0 %2426, %v1281_v13   ;;  %1351 = vperm.xlu1 %2427, %v1265_v14  }
  0x92   :  { %v3020_v38 = vpop.permute.xlu0 %224  ;;  %v3028_v41 = vpop.permute.xlu1 %389 }
  0x93   :  { %1426 = vperm.xlu0 %2426, %v1280_v15   ;;  %1346 = vperm.xlu1 %2427, %v1264_v16  }
  0x96   :  { %v3036_v44 = vpop.permute.xlu0 %464  ;;  %v3038_v45 = vpop.permute.xlu1 %219 }
  0x97   :  { %1421 = vperm.xlu0 %2426, %v1279_v18   ;;  %1341 = vperm.xlu1 %2427, %v1263_v19  }
  0x9a   :  { %v3046_v48 = vpop.permute.xlu0 %384  ;;  %v3054_v51 = vpop.permute.xlu1 %214 }
  0x9b   :  { %1416 = vperm.xlu0 %2426, %v1278_v21   ;;  %1336 = vperm.xlu1 %2427, %v1262_v22  }
  0x9e   :  { %v3062_v54 = vpop.permute.xlu0 %379  ;;  %v3064_v55 = vpop.permute.xlu1 %209 }
  0x9f   :  { %1411 = vperm.xlu0 %2426, %v1277_v26   ;;  %1331 = vperm.xlu1 %2427, %v1261_v27  }
  0xa2   :  { %v3072_v58 = vpop.permute.xlu0 %374  ;;  %v3080_v61 = vpop.permute.xlu1 %204 }
  0xa3   :  { %1406 = vperm.xlu0 %2426, %v1276_v29   ;;  %1326 = vperm.xlu1 %2427, %v1260_v30  }
  0xa6   :  { %v3088_v0 = vpop.permute.xlu0 %369  ;;  %v3090_v1 = vpop.permute.xlu1 %199 }
  0xa7   :  { %1401 = vperm.xlu0 %2426, %v1275_v32   ;;  %1321 = vperm.xlu1 %2427, %v1259_v33  }
  0xaa   :  { %v3092_v2 = vpop.permute.xlu0 %364  ;;  %v3094_v3 = vpop.permute.xlu1 %194 }
  0xab   :  { %1396 = vperm.xlu0 %2426, %v1274_v36   ;;  %1316 = vperm.xlu1 %2427, %v1258_v37  }
  0xae   :  { %v3096_v4 = vpop.permute.xlu0 %359  ;;  %v3098_v5 = vpop.permute.xlu1 %189 }
  0xaf   :  { %1391 = vperm.xlu0 %2426, %v1273_v39   ;;  %1311 = vperm.xlu1 %2427, %v1257_v40  }
  0xb2   :  { %v3114_v12 = vpop.permute.xlu0 %354  ;;  %v3120_v15 = vpop.permute.xlu1 %184 }
  0xb3   :  { %1386 = vperm.xlu0 %2426, %v1272_v42   ;;  %1306 = vperm.xlu1 %2427, %v1256_v43  }
  0xb6   :  { %v3130_v22 = vpop.permute.xlu0 %349  ;;  %v3136_v29 = vpop.permute.xlu1 %179 }
  0xb7   :  { %1381 = vperm.xlu0 %2426, %v1271_v46   ;;  %1301 = vperm.xlu1 %2427, %v1255_v47   ;;  %4131 = vst [vmem:[#allocation10_spill] sm:$0xff] %v3136_v29 }
  0xba   :  { %v3146_v37 = vpop.permute.xlu0 %344  ;;  %v3152_v42 = vpop.permute.xlu1 %174 }
  0xbb   :  { %1376 = vperm.xlu0 %2426, %v1270_v49   ;;  %1296 = vperm.xlu1 %2427, %v1254_v50   ;;  %4132 = vst [vmem:[#allocation11_spill] sm:$0xff] %v3152_v42 }
  0xbe   :  { %v3162_v50 = vpop.permute.xlu0 %339 }
  0xbf   :  { %1371 = vperm.xlu0 %2426, %v1269_v52   ;;  %1291 = vperm.xlu1 %2427, %v1253_v53   ;;  %4133 = vst [vmem:[#allocation12_spill] sm:$0xff] %v3162_v50 }
  0xc3   :  { %1366 = vperm.xlu0 %2426, %v1268_v56   ;;  %1286 = vperm.xlu1 %2427, %v1252_v57   ;;  %v3168_v56 = vpop.permute.xlu1 %169 }
  0xc4   :  { %4134 = vst [vmem:[#allocation13_spill] sm:$0xff] %v3168_v56 }
  0xc7   :  { %1972 = vperm.xlu0 %2426, %v1966_v59   ;;  %1977 = vperm.xlu1 %2427, %v1967_v60   ;;  %v3174_v23 = vpop.permute.xlu1 %164 }
  0xc8   :  { %4136 = vst [vmem:[#allocation15_spill] sm:$0xff] %v3174_v23 }
  0xcb   :  { %1982 = vperm.xlu0 %2426, %v1968_v62   ;;  %1987 = vperm.xlu1 %2427, %v1969_v63   ;;  %v3172_v63 = vpop.permute.xlu0 %334  ;;  %v3186_v42 = vpop.permute.xlu1 %319 }
  0xcc   :  { %4135 = vst [vmem:[#allocation14_spill] sm:$0xff] %v3172_v63  ;;  %4142 = vst [vmem:[#allocation21_spill] sm:$0xff] %v3186_v42 }
  0xd8   :  { %v3100_v6 = vpop.f32.mrf.mxu0  ;;  %v3102_v7 = vpop.f32.mrf.mxu1 }
  0xd9   :  { %4123 = vst [vmem:[#allocation2_spill] sm:$0xff] %v3100_v6  ;;  %4124 = vst [vmem:[#allocation3_spill] sm:$0xff] %v3102_v7 }
  0xda   :  { %v3110_v10 = vpop.f32.mrf.mxu0  ;;  %v3112_v11 = vpop.f32.mrf.mxu1 }
  0xdb   :  { %4125 = vst [vmem:[#allocation4_spill] sm:$0xff] %v3110_v10  ;;  %4126 = vst [vmem:[#allocation5_spill] sm:$0xff] %v3112_v11 }
  0xdc   :  { %v3116_v13 = vpop.f32.mrf.mxu0  ;;  %v3118_v14 = vpop.f32.mrf.mxu1 }
  0xdd   :  { %4127 = vst [vmem:[#allocation6_spill] sm:$0xff] %v3116_v13  ;;  %4128 = vst [vmem:[#allocation7_spill] sm:$0xff] %v3118_v14 }
  0xde   :  { %v3122_v16 = vpop.f32.mrf.mxu0  ;;  %v3124_v18 = vpop.f32.mrf.mxu1 }
  0xdf   :  { %4129 = vst [vmem:[#allocation8_spill] sm:$0xff] %v3122_v16  ;;  %4130 = vst [vmem:[#allocation9_spill] sm:$0xff] %v3124_v18  ;;  %v3180_v18 = vpop.permute.xlu0 %329 }
  0xe0   :  { %v3126_v19 = vpop.f32.mrf.mxu0  ;;  %v3128_v21 = vpop.f32.mrf.mxu1  ;;  %4139 = vst [vmem:[#allocation18_spill] sm:$0xff] %v3180_v18 }
  0xe2   :  { %v3132_v26 = vpop.f32.mrf.mxu0  ;;  %v3134_v27 = vpop.f32.mrf.mxu1 }
  0xe3   :  { %v3194_v23 = vpop.permute.xlu0 %324 }
  0xe4   :  { %v3138_v30 = vpop.f32.mrf.mxu0  ;;  %v3140_v32 = vpop.f32.mrf.mxu1  ;;  %4146 = vst [vmem:[#allocation25_spill] sm:$0xff] %v3194_v23 }
  0xe6   :  { %v3142_v33 = vpop.f32.mrf.mxu0  ;;  %v3144_v36 = vpop.f32.mrf.mxu1 }
  0xe8   :  { %v3148_v39 = vpop.f32.mrf.mxu0  ;;  %v3150_v40 = vpop.f32.mrf.mxu1 }
  0xea   :  { %v3154_v43 = vpop.f32.mrf.mxu0  ;;  %v3156_v46 = vpop.f32.mrf.mxu1 }
  0xec   :  { %v3158_v47 = vpop.f32.mrf.mxu0  ;;  %v3160_v49 = vpop.f32.mrf.mxu1 }
  0xee   :  { %v3164_v52 = vpop.f32.mrf.mxu0  ;;  %v3166_v53 = vpop.f32.mrf.mxu1 }
  0xf0   :  { %v2300_v57 = vpop.f32.mrf.mxu0  ;;  %v2348_v59 = vpop.f32.mrf.mxu1 }
  0xf2   :  { %v801_v60 = vpop.f32.mrf.mxu0  ;;  %v3170_v62 = vpop.f32.mrf.mxu1 }
  0xf4   :  { %v2303_v8 = vpop.f32.mrf.mxu0  ;;  %v2351_v9 = vpop.f32.mrf.mxu1 }
  0xf6   :  { %v811_v11 = vpop.f32.mrf.mxu0  ;;  %v971_v10 = vpop.f32.mrf.mxu1 }
  0xf8   :  { %v3176_v7 = vpop.f32.mrf.mxu0  ;;  %v3178_v6 = vpop.f32.mrf.mxu1 }
  0xf9   :  { %4137 = vst [vmem:[#allocation16_spill] sm:$0xff] %v3176_v7  ;;  %4138 = vst [vmem:[#allocation17_spill] sm:$0xff] %v3178_v6  ;;  %v3198_v7 = vpop.permute.xlu1 %314 }
  0xfa   :  { %v3182_v56 = vpop.f32.mrf.mxu0  ;;  %v3184_v16 = vpop.f32.mrf.mxu1  ;;  %4148 = vst [vmem:[#allocation27_spill] sm:$0xff] %v3198_v7 }
  0xfb   :  { %4140 = vst [vmem:[#allocation19_spill] sm:$0xff] %v3182_v56  ;;  %4141 = vst [vmem:[#allocation20_spill] sm:$0xff] %v3184_v16  ;;  %v3206_v16 = vpop.permute.xlu0 %309 }
  0xfc   :  { %v3188_v14 = vpop.f32.mrf.mxu1  ;;  %v3190_v63 = vpop.f32.mrf.mxu0  ;;  %4152 = vst [vmem:[#allocation31_spill] sm:$0xff] %v3206_v16 }
  0xfd   :  { %4143 = vst [vmem:[#allocation22_spill] sm:$0xff] %v3188_v14  ;;  %4144 = vst [vmem:[#allocation23_spill] sm:$0xff] %v3190_v63  ;;  %v3212_v63 = vpop.permute.xlu1 %304 }
  0xfe   :  { %v3192_v50 = vpop.f32.mrf.mxu1  ;;  %v3200_v6 = vpop.f32.mrf.mxu0  ;;  %4155 = vst [vmem:[#allocation34_spill] sm:$0xff] %v3212_v63 }
  0xff   :  { %4145 = vst [vmem:[#allocation24_spill] sm:$0xff] %v3192_v50  ;;  %4149 = vst [vmem:[#allocation28_spill] sm:$0xff] %v3200_v6  ;;  %v3220_v7 = vpop.permute.xlu0 %299 }
 0x100   :  { %v3196_v13 = vpop.f32.mrf.mxu1  ;;  %v3208_v42 = vpop.f32.mrf.mxu0  ;;  %4159 = vst [vmem:[#allocation38_spill] sm:$0xff] %v3220_v7  ;;  %v977_v7 = vadd.f32 %v2351_v9, %v2986_v25 }
 0x101   :  { %4147 = vst [vmem:[#allocation26_spill] sm:$0xff] %v3196_v13  ;;  %4153 = vst [vmem:[#allocation32_spill] sm:$0xff] %v3208_v42 }
 0x102   :  { %v3202_v18 = vpop.f32.mrf.mxu1  ;;  %v3216_v23 = vpop.f32.mrf.mxu0 }
 0x103   :  { %4150 = vst [vmem:[#allocation29_spill] sm:$0xff] %v3202_v18  ;;  %4157 = vst [vmem:[#allocation36_spill] sm:$0xff] %v3216_v23  ;;  %v3224_v18 = vpop.permute.xlu1 %294 }
 0x104   :  { %v3204_v56 = vpop.f32.mrf.mxu1  ;;  %4161 = vst [vmem:[#allocation40_spill] sm:$0xff] %v3224_v18 }
 0x105   :  { %4151 = vst [vmem:[#allocation30_spill] sm:$0xff] %v3204_v56  ;;  %v3226_v56 = vpop.f32.mrf.mxu0 }
 0x106   :  { %v3210_v14 = vpop.f32.mrf.mxu1  ;;  %4162 = vst [vmem:[#allocation41_spill] sm:$0xff] %v3226_v56  ;;  %v812_v56 = vadd.f32 %v811_v11, %v2974_v20  ;;  %v967_v20 = vadd.f32 %v2348_v59, %v3028_v41  ;;  %v4167_v11 = vmov 0.0  }
 0x107   :  { %4154 = vst [vmem:[#allocation33_spill] sm:$0xff] %v3210_v14  ;;  %v3230_v14 = vpop.permute.xlu0 %459  ;;  %v3232_v63 = vpop.f32.mrf.mxu0 }
 0x108   :  { %v3214_v50 = vpop.f32.mrf.mxu1  ;;  %4164 = vst [vmem:[#allocation43_spill] sm:$0xff] %v3230_v14  ;;  %4165 = vst [vmem:[#allocation44_spill] sm:$0xff] %v3232_v63  ;;  %v3234_v29 = vpop.permute.xlu1 %289 }
 0x109   :  { %4156 = vst [vmem:[#allocation35_spill] sm:$0xff] %v3214_v50  ;;  %4166 = vst [vmem:[#allocation45_spill] sm:$0xff] %v3234_v29  ;;  %v3243_v18 = vpop.f32.mrf.mxu0 }
 0x10a   :  { %v3218_v13 = vpop.f32.mrf.mxu1 }
 0x10b   :  { %4158 = vst [vmem:[#allocation37_spill] sm:$0xff] %v3218_v13  ;;  %v817_v13 = vadd.f32 %v2303_v8, %v2966_v17  ;;  %v3253_v8 = vpop.permute.xlu0 %454 }
 0x10c   :  { %v3222_v6 = vpop.f32.mrf.mxu1 }
 0x10d   :  { %4160 = vst [vmem:[#allocation39_spill] sm:$0xff] %v3222_v6 }
 0x10e   :  { %v3228_v16 = vpop.f32.mrf.mxu1 }
 0x10f   :  { %4163 = vst [vmem:[#allocation42_spill] sm:$0xff] %v3228_v16  ;;  %v972_v16 = vadd.f32 %v971_v10, %v3010_v34  ;;  %v802_v10 = vadd.f32 %v801_v60, %v3020_v38  ;;  %v957_v38 = vadd.f32 %v3160_v49, %v3062_v54  ;;  %v772_v60 = vadd.f32 %v3142_v33, %v3094_v3 }
 0x110   :  { %v2372_v42 = vpop.f32.mrf.mxu1  ;;  %v927_v3 = vadd.f32 %v3128_v21, %v3130_v22  ;;  %v4168_v22 = vld [vmem:[#allocation10_spill] sm:$0xff] }
 0x111   :  { %v3246_v63 = vadd.f32 %v2372_v42, %v3012_v35  ;;  %v3262_v35 = vpop.permute.xlu1 %284  ;;  %v792_v42 = vadd.f32 %v3164_v52, %v3054_v51  ;;  %v787_v51 = vadd.f32 %v3148_v39, %v3064_v55  ;;  %v947_v52 = vadd.f32 %v3150_v40, %v3088_v0 }
 0x112   :  { %v1041_v50 = vpop.f32.mrf.mxu1  ;;  %v942_v55 = vadd.f32 %v3156_v46, %v3092_v2 }
 0x113   :  { %v1069_v0 = vsub.f32 %v787_v51, %v3246_v63  ;;  %v1101_v39 = vsub.f32 %v947_v52, %v3246_v63  ;;  %v1097_v21 = vsub.f32 %v927_v3, %v3246_v63  ;;  %v4178_v51 = vld [vmem:[#allocation18_spill] sm:$0xff]  ;;  %v4179_v52 = vld [vmem:[#allocation3_spill] sm:$0xff] }
 0x114   :  { %v2375_v23 = vpop.f32.mrf.mxu1  ;;  %v4185_v3 = vld [vmem:[#allocation27_spill] sm:$0xff] }
 0x115   :  { %v3239_v6 = vadd.f32 %v2375_v23, %v2984_v24  ;;  %v807_v23 = vadd.f32 %v2300_v57, %v3002_v31  ;;  %v3258_v24 = vadd.f32 %v1041_v50, %v3036_v44  ;;  %v962_v31 = vadd.f32 %v3170_v62, %v3046_v48  ;;  %v3293_v49 = vpop.permute.xlu1 %279 }
 0x116   :  { %v1051_v14 = vpop.f32.mrf.mxu1  ;;  %v1105_v44 = vsub.f32 %v967_v20, %v3246_v63  ;;  %v4171_v20 = vld [vmem:[#allocation7_spill] sm:$0xff] }
 0x117   :  { %v3249_v29 = vadd.f32 %v1051_v14, %v2994_v28  ;;  %v1075_v17 = vsub.f32 %v817_v13, %v3239_v6  ;;  %v1107_v25 = vsub.f32 %v977_v7, %v3239_v6  ;;  %v3265_v7 = vpop.f32.mrf.mxu0  ;;  %v1073_v41 = vsub.f32 %v807_v23, %v3246_v63  ;;  %v4170_v23 = vld [vmem:[#allocation12_spill] sm:$0xff] }
 0x118   :  { %v797_v13 = vadd.f32 %v3158_v47, %v3038_v45  ;;  %v1072_v48 = vsub.f32 %v802_v10, %v3258_v24  ;;  %v1104_v14 = vsub.f32 %v962_v31, %v3258_v24  ;;  %v952_v45 = vadd.f32 %v3166_v53, %v3072_v58  ;;  %v4173_v10 = vld [vmem:[#allocation8_spill] sm:$0xff] }
 0x119   :  { %1445 = vmatpush1.msra.mxu1 %v1075_v17  ;;  %1670 = vmatpush1.msra.mxu0 %v1107_v25  ;;  %v1074_v34 = vsub.f32 %v812_v56, %v3249_v29  ;;  %v1106_v28 = vsub.f32 %v972_v16, %v3249_v29  ;;  %v3281_v16 = vpop.permute.xlu0 %449  ;;  %v3285_v50 = vpop.f32.mrf.mxu0  ;;  %v1103_v47 = vsub.f32 %v957_v38, %v3239_v6  ;;  %v4169_v25 = vld [vmem:[#allocation6_spill] sm:$0xff] }
 0x11a   :  { %1446 = vmatprep.subr.mxu1 %v4167_v11  ;;  %1671 = vmatprep.subr.mxu0 %v4167_v11  ;;  %v1071_v54 = vsub.f32 %v797_v13, %v3239_v6  ;;  %v1070_v58 = vsub.f32 %v792_v42, %v3249_v29  ;;  %v1102_v53 = vsub.f32 %v952_v45, %v3249_v29  ;;  %v3323_v59 = vpop.permute.xlu1 %274  ;;  %v4175_v13 = vld [vmem:[#allocation9_spill] sm:$0xff]  ;;  %v4177_v45 = vld [vmem:[#allocation2_spill] sm:$0xff] }
 0x11b   :  { %1447 = vmatpush1.msra.mxu1 %v1074_v34  ;;  %1672 = vmatpush1.msra.mxu0 %v1106_v28  ;;  %v782_v56 = vadd.f32 %v3154_v43, %v3080_v61  ;;  %v3305_v57 = vpop.f32.mrf.mxu0  ;;  %v777_v61 = vadd.f32 %v3138_v30, %v3090_v1  ;;  %v937_v43 = vadd.f32 %v3140_v32, %v3096_v4  ;;  %v4172_v28 = vld [vmem:[#allocation11_spill] sm:$0xff]  ;;  %v4176_v42 = vld [vmem:[#allocation13_spill] sm:$0xff] }
 0x11c   :  { %1448 = vmatprep.subr.mxu1 %v4167_v11  ;;  %1673 = vmatprep.subr.mxu0 %v4167_v11  ;;  %v1100_v46 = vsub.f32 %v942_v55, %v3258_v24  ;;  %v932_v1 = vadd.f32 %v3144_v36, %v3114_v12  ;;  %v767_v32 = vadd.f32 %v3126_v19, %v3098_v5  ;;  %v4180_v55 = vld [vmem:[#allocation15_spill] sm:$0xff] }
 0x11d   :  { %1449 = vmatpush1.msra.mxu1 %v1073_v41  ;;  %1674 = vmatpush1.msra.mxu0 %v1105_v44  ;;  %v3313_v40 = vpop.permute.xlu0 %444  ;;  %v1068_v2 = vsub.f32 %v782_v56, %v3258_v24  ;;  %v3327_v62 = vpop.f32.mrf.mxu0  ;;  %v1067_v4 = vsub.f32 %v777_v61, %v3239_v6  ;;  %v1099_v30 = vsub.f32 %v937_v43, %v3239_v6  ;;  %v4174_v44 = vld [vmem:[#allocation14_spill] sm:$0xff]  ;;  %v4182_v61 = vld [vmem:[#allocation25_spill] sm:$0xff] }
 0x11e   :  { %1450 = vmatprep.subr.mxu1 %v4167_v11  ;;  %1675 = vmatprep.subr.mxu0 %v4167_v11  ;;  %v1066_v12 = vsub.f32 %v772_v60, %v3249_v29  ;;  %v1098_v33 = vsub.f32 %v932_v1, %v3249_v29  ;;  %v762_v36 = vadd.f32 %v3132_v26, %v3120_v15  ;;  %v3357_v26 = vpop.permute.xlu1 %269  ;;  %v4183_v43 = vld [vmem:[#allocation5_spill] sm:$0xff] }
 0x11f   :  { %1451 = vmatpush1.msra.mxu1 %v1072_v48  ;;  %1676 = vmatpush1.msra.mxu0 %v1104_v14  ;;  %v3347_v17 = vpop.f32.mrf.mxu0  ;;  %v922_v5 = vadd.f32 %v3134_v27, %v3146_v37  ;;  %v1065_v19 = vsub.f32 %v767_v32, %v3246_v63  ;;  %v757_v15 = vadd.f32 %v4169_v25, %v4168_v22  ;;  %v4184_v1 = vld [vmem:[#allocation21_spill] sm:$0xff] }
 0x120   :  { %1452 = vmatprep.subr.mxu1 %v4167_v11  ;;  %1677 = vmatprep.subr.mxu0 %v4167_v11  ;;  %v917_v34 = vadd.f32 %v4171_v20, %v4170_v23  ;;  %v1064_v27 = vsub.f32 %v762_v36, %v3258_v24  ;;  %v752_v31 = vadd.f32 %v4173_v10, %v4172_v28  ;;  %v4187_v23 = vld [vmem:[#allocation34_spill] sm:$0xff] }
 0x121   :  { %1453 = vmatpush1.msra.mxu1 %v1071_v54  ;;  %1678 = vmatpush1.msra.mxu0 %v1103_v47  ;;  %v3345_v9 = vpop.permute.xlu0 %439  ;;  %v1096_v37 = vsub.f32 %v922_v5, %v3258_v24  ;;  %v2327_v41 = vpop.f32.mrf.mxu0  ;;  %v912_v38 = vadd.f32 %v4175_v13, %v4174_v44  ;;  %v1063_v48 = vsub.f32 %v757_v15, %v3239_v6 }
 0x122   :  { %1454 = vmatprep.subr.mxu1 %v4167_v11  ;;  %1679 = vmatprep.subr.mxu0 %v4167_v11  ;;  %v1095_v14 = vsub.f32 %v917_v34, %v3239_v6  ;;  %v747_v54 = vadd.f32 %v4177_v45, %v4176_v42  ;;  %v1123_v25 = vsub.f32 %v3239_v6, %v3239_v6 }
 0x123   :  { %1455 = vmatpush1.msra.mxu1 %v1070_v58  ;;  %1680 = vmatpush1.msra.mxu0 %v1102_v53  ;;  %v907_v58 = vadd.f32 %v4179_v52, %v4178_v51  ;;  %v1062_v53 = vsub.f32 %v752_v31, %v3249_v29  ;;  %v1094_v56 = vsub.f32 %v912_v38, %v3249_v29  ;;  %v891_v60 = vpop.f32.mrf.mxu0  ;;  %v4189_v31 = vld [vmem:[#allocation43_spill] sm:$0xff]  ;;  %v4193_v52 = vld [vmem:[#allocation45_spill] sm:$0xff] }
 0x124   :  { %1456 = vmatprep.subr.mxu1 %v4167_v11  ;;  %1681 = vmatprep.subr.mxu0 %v4167_v11  ;;  %v882_v20 = vadd.f32 %v3347_v17, %v4187_v23  ;;  %v1122_v34 = vsub.f32 %v3249_v29, %v3249_v29  ;;  %v4188_v17 = vld [vmem:[#allocation38_spill] sm:$0xff]  ;;  %v1120_v38 = vsub.f32 %v3258_v24, %v3258_v24 }
 0x125   :  { %1457 = vmatpush1.msra.mxu1 %v1069_v0  ;;  %1682 = vmatpush1.msra.mxu0 %v1101_v39  ;;  %v3375_v47 = vpop.permute.xlu0 %434  ;;  %v4181_v0 = vld [vmem:[#allocation4_spill] sm:$0xff]  ;;  %v1093_v32 = vsub.f32 %v907_v58, %v3246_v63  ;;  %v877_v10 = vadd.f32 %v3285_v50, %v4188_v17  ;;  %v4192_v50 = vld [vmem:[#allocation42_spill] sm:$0xff]  ;;  %v867_v58 = vadd.f32 %v3243_v18, %v4193_v52  ;;  %v4195_v18 = vld [vmem:[#allocation37_spill] sm:$0xff] }
 0x126   :  { %1458 = vmatprep.subr.mxu1 %v4167_v11  ;;  %1683 = vmatprep.subr.mxu0 %v4167_v11  ;;  %v742_v39 = vadd.f32 %v4181_v0, %v4180_v55  ;;  %v1088_v13 = vsub.f32 %v882_v20, %v3258_v24  ;;  %v1032_v45 = vadd.f32 %v4192_v50, %v3253_v8  ;;  %v4210_v52 = vld [vmem:[#allocation19_spill] sm:$0xff] }
 0x127   :  { %1459 = vmatpush1.msra.mxu1 %v1068_v2  ;;  %1684 = vmatpush1.msra.mxu0 %v1100_v46  ;;  %v902_v2 = vadd.f32 %v4183_v43, %v4182_v61  ;;  %v3387_v46 = vpop.permute.xlu1 %264  ;;  %v862_v0 = vadd.f32 %v3265_v7, %v3262_v35  ;;  %v4197_v35 = vld [vmem:[#allocation30_spill] sm:$0xff] }
 0x128   :  { %1460 = vmatprep.subr.mxu1 %v4167_v11  ;;  %1685 = vmatprep.subr.mxu0 %v4167_v11  ;;  %v1017_v7 = vadd.f32 %v4197_v35, %v3345_v9  ;;  %v1132_v35 = vld [vmem:[%s4118_s3 + $0x40] sm:$0xff] }
 0x129   :  { %1461 = vmatpush1.msra.mxu1 %v1067_v4  ;;  %1686 = vmatpush1.msra.mxu0 %v1099_v30  ;;  %v897_v4 = vadd.f32 %v2327_v41, %v4184_v1  ;;  %v1061_v30 = vsub.f32 %v747_v54, %v3246_v63  ;;  %v1092_v36 = vsub.f32 %v902_v2, %v3258_v24  ;;  %v3399_v5 = vpop.permute.xlu0 %429  ;;  %v4190_v41 = vld [vmem:[#allocation39_spill] sm:$0xff]  ;;  %v4196_v2 = vld [vmem:[#allocation41_spill] sm:$0xff] }
 0x12a   :  { %1462 = vmatprep.subr.mxu1 %v4167_v11  ;;  %1687 = vmatprep.subr.mxu0 %v4167_v11  ;;  %v1037_v44 = vadd.f32 %v4190_v41, %v4189_v31  ;;  %v1087_v54 = vsub.f32 %v877_v10, %v3239_v6  ;;  %v4206_v10 = vld [vmem:[#allocation28_spill] sm:$0xff] }
 0x12b   :  { %1463 = vmatpush1.msra.mxu1 %v1066_v12  ;;  %1688 = vmatpush1.msra.mxu0 %v1098_v33  ;;  %v892_v12 = vadd.f32 %v891_v60, %v4185_v3  ;;  %v1060_v33 = vsub.f32 %v742_v39, %v3258_v24  ;;  %v1091_v22 = vsub.f32 %v897_v4, %v3239_v6  ;;  %v3408_v15 = vpop.permute.xlu1 %259  ;;  %v4198_v4 = vld [vmem:[#allocation44_spill] sm:$0xff] }
 0x12c   :  { %1464 = vmatprep.subr.mxu1 %v4167_v11  ;;  %1689 = vmatprep.subr.mxu0 %v4167_v11  ;;  %v1119_v51 = vsub.f32 %v1037_v44, %v3239_v6  ;;  %v1022_v39 = vadd.f32 %v4195_v18, %v3313_v40  ;;  %v857_v60 = vadd.f32 %v4196_v2, %v3293_v49  ;;  %v4199_v49 = vld [vmem:[#allocation33_spill] sm:$0xff]  ;;  %v1124_v18 = vld [vmem:[%s4118_s3] sm:$0xff]  ;;  %v1133_v2 = vld [vmem:[%s4118_s3 + $0x48] sm:$0xff] }
 0x12d   :  { %1465 = vmatpush1.msra.mxu1 %v1065_v19  ;;  %1690 = vmatpush1.msra.mxu0 %v1097_v21  ;;  %v4186_v19 = vld [vmem:[#allocation31_spill] sm:$0xff]  ;;  %v3422_v28 = vpop.permute.xlu0 %424  ;;  %v1084_v40 = vsub.f32 %v862_v0, %v3258_v24  ;;  %v1115_v3 = vsub.f32 %v1017_v7, %v3239_v6  ;;  %v1134_v7 = vld [vmem:[%s4118_s3 + $0x50] sm:$0xff] }
 0x12e   :  { %1466 = vmatprep.subr.mxu1 %v4167_v11  ;;  %1691 = vmatprep.subr.mxu0 %v4167_v11  ;;  %v887_v21 = vadd.f32 %v3327_v62, %v4186_v19  ;;  %v1090_v62 = vsub.f32 %v892_v12, %v3249_v29  ;;  %v1116_v1 = vsub.f32 %v1022_v39, %v3258_v24  ;;  %v1126_v39 = vld [vmem:[%s4118_s3 + $0x10] sm:$0xff] }
 0x12f   :  { %1467 = vmatpush1.msra.mxu1 %v1064_v27  ;;  %1692 = vmatpush1.msra.mxu0 %v1096_v37  ;;  %v1121_v37 = vsub.f32 %v3246_v63, %v3246_v63  ;;  %v1083_v9 = vsub.f32 %v857_v60, %v3239_v6  ;;  %v1135_v60 = vld [vmem:[%s4118_s3 + $0x58] sm:$0xff] }
 0x130   :  { %1468 = vmatprep.subr.mxu1 %v4167_v11  ;;  %1693 = vmatprep.subr.mxu0 %v4167_v11  ;;  %v1089_v27 = vsub.f32 %v887_v21, %v3246_v63 }
 0x131   :  { %1469 = vmatpush1.msra.mxu1 %v1063_v48  ;;  %1694 = vmatpush1.msra.mxu0 %v1095_v14  ;;  %v3433_v48 = vpop.permute.xlu1 %254  ;;  %v4191_v14 = vld [vmem:[#allocation40_spill] sm:$0xff]  ;;  %v420_v55 = vpop.permute.xlu0 %419 }
 0x132   :  { %1470 = vmatprep.subr.mxu1 %v4167_v11  ;;  %1695 = vmatprep.subr.mxu0 %v4167_v11  ;;  %v872_v42 = vadd.f32 %v3305_v57, %v4191_v14  ;;  %v4194_v57 = vld [vmem:[#allocation35_spill] sm:$0xff]  ;;  %v832_v31 = vadd.f32 %v4206_v10, %v3433_v48  ;;  %v4208_v14 = vld [vmem:[#allocation16_spill] sm:$0xff]  ;;  %v4209_v48 = vld [vmem:[#allocation17_spill] sm:$0xff] }
 0x133   :  { %1471 = vmatpush1.msra.mxu1 %v1062_v53  ;;  %1696 = vmatpush1.msra.mxu0 %v1094_v56  ;;  %v1027_v53 = vadd.f32 %v4194_v57, %v3281_v16  ;;  %v1118_v56 = vsub.f32 %v1032_v45, %v3249_v29  ;;  %v1085_v16 = vsub.f32 %v867_v58, %v3246_v63  ;;  %v4211_v57 = vld [vmem:[#allocation20_spill] sm:$0xff]  ;;  %v1165_v10 = vld [vmem:[%s4118_s3 + $0x148] sm:$0xff] }
 0x134   :  { %1472 = vmatprep.subr.mxu1 %v4167_v11  ;;  %1697 = vmatprep.subr.mxu0 %v4167_v11  ;;  %v1086_v8 = vsub.f32 %v872_v42, %v3249_v29 }
 0x135   :  { %1473 = vmatpush1.msra.mxu1 %v1061_v30  ;;  %1698 = vmatpush1.msra.mxu0 %v1093_v32  ;;  %v1117_v61 = vsub.f32 %v1027_v53, %v3246_v63  ;;  %v250_v43 = vpop.permute.xlu1 %249  ;;  %v852_v30 = vadd.f32 %v4198_v4, %v3323_v59  ;;  %v1012_v32 = vadd.f32 %v4199_v49, %v3375_v47  ;;  %v415_v12 = vpop.permute.xlu0 %414  ;;  %v4201_v59 = vld [vmem:[#allocation26_spill] sm:$0xff]  ;;  %v1141_v49 = vld [vmem:[%s4118_s3 + $0x88] sm:$0xff] }
 0x136   :  { %1474 = vmatprep.subr.mxu1 %v4167_v11  ;;  %1699 = vmatprep.subr.mxu0 %v4167_v11  ;;  %v1007_v19 = vadd.f32 %v4201_v59, %v3399_v5  ;;  %v827_v42 = vadd.f32 %v4208_v14, %v250_v43  ;;  %v1128_v43 = vld [vmem:[%s4118_s3 + $0x20] sm:$0xff]  ;;  %v1146_v59 = vld [vmem:[%s4118_s3 + $0xb0] sm:$0xff] }
 0x137   :  { %1475 = vmatpush1.msra.mxu1 %v1060_v33  ;;  %1700 = vmatpush1.msra.mxu0 %v1092_v36  ;;  %v4200_v33 = vld [vmem:[#allocation32_spill] sm:$0xff]  ;;  %v1082_v47 = vsub.f32 %v852_v30, %v3249_v29  ;;  %v1114_v21 = vsub.f32 %v1012_v32, %v3249_v29  ;;  %v1136_v4 = vld [vmem:[%s4118_s3 + $0x60] sm:$0xff]  ;;  %v1143_v32 = vld [vmem:[%s4118_s3 + $0x98] sm:$0xff] }
 0x138   :  { %1476 = vmatprep.subr.mxu1 %v4167_v11  ;;  %1701 = vmatprep.subr.mxu0 %v4167_v11  ;;  %v847_v36 = vadd.f32 %v4200_v33, %v3357_v26  ;;  %v4203_v26 = vld [vmem:[#allocation29_spill] sm:$0xff]  ;;  %v1138_v30 = vld [vmem:[%s4118_s3 + $0x70] sm:$0xff] }
 0x139   :  { %1477 = vmatpush2.msra.mxu1 %v1091_v22  ;;  %1702 = vmatpush2.msra.mxu0 %v1123_v25  ;;  %v245_v22 = vpop.permute.xlu1 %244  ;;  %v4202_v25 = vld [vmem:[#allocation36_spill] sm:$0xff]  ;;  %v1002_v20 = vadd.f32 %v4203_v26, %v3422_v28  ;;  %v410_v41 = vpop.permute.xlu0 %409  ;;  %v1147_v33 = vld [vmem:[%s4118_s3 + $0xb8] sm:$0xff]  ;;  %v1152_v26 = vld [vmem:[%s4118_s3 + $0xe0] sm:$0xff] }
 0x13a   :  { %1478 = vmatprep.subr.mxu1 %v4167_v11  ;;  %1703 = vmatprep.subr.mxu0 %v4167_v11  ;;  %v842_v23 = vadd.f32 %v4202_v25, %v3387_v46  ;;  %v1081_v5 = vsub.f32 %v847_v36, %v3246_v63  ;;  %v4205_v46 = vld [vmem:[#allocation22_spill] sm:$0xff]  ;;  %v987_v45 = vadd.f32 %v4209_v48, %v410_v41  ;;  %v1153_v25 = vld [vmem:[%s4118_s3 + $0xe8] sm:$0xff]  ;;  %v1170_v14 = vld [vmem:[%s4118_s3 + $0x170] sm:$0xff] }
 0x13b   :  { %1479 = vmatpush2.msra.mxu1 %v1090_v62  ;;  %1704 = vmatpush2.msra.mxu0 %v1122_v34  ;;  %v1113_v62 = vsub.f32 %v1007_v19, %v3246_v63  ;;  %v4204_v34 = vld [vmem:[#allocation23_spill] sm:$0xff]  ;;  %v1112_v28 = vsub.f32 %v1002_v20, %v3258_v24  ;;  %v822_v58 = vadd.f32 %v4210_v52, %v245_v22  ;;  %v1144_v36 = vld [vmem:[%s4118_s3 + $0xa0] sm:$0xff]  ;;  %v1150_v22 = vld [vmem:[%s4118_s3 + $0xd0] sm:$0xff] }
 0x13c   :  { %1480 = vmatprep.subr.mxu1 %v4167_v11  ;;  %1705 = vmatprep.subr.mxu0 %v4167_v11  ;;  %v1080_v17 = vsub.f32 %v842_v23, %v3258_v24  ;;  %v1149_v19 = vld [vmem:[%s4118_s3 + $0xc8] sm:$0xff]  ;;  %v1155_v23 = vld [vmem:[%s4118_s3 + $0xf8] sm:$0xff]  ;;  %v1154_v20 = vld [vmem:[%s4118_s3 + $0xf0] sm:$0xff] }
 0x13d   :  { %1481 = vmatpush2.msra.mxu1 %v1089_v27  ;;  %1706 = vmatpush2.msra.mxu0 %v1121_v37  ;;  %v837_v27 = vadd.f32 %v4204_v34, %v3408_v15  ;;  %v997_v37 = vadd.f32 %v4205_v46, %v420_v55  ;;  %v4207_v15 = vld [vmem:[#allocation24_spill] sm:$0xff]  ;;  %v405_v50 = vpop.permute.xlu1 %404  ;;  %v1076_v55 = vsub.f32 %v822_v58, %v3258_v24  ;;  %v1156_v34 = vld [vmem:[%s4118_s3 + $0x100] sm:$0xff]  ;;  %v1161_v46 = vld [vmem:[%s4118_s3 + $0x128] sm:$0xff] }
 0x13e   :  { %1482 = vmatprep.subr.mxu1 %v4167_v11  ;;  %1707 = vmatprep.subr.mxu0 %v4167_v11  ;;  %v992_v44 = vadd.f32 %v4207_v15, %v415_v12  ;;  %v982_v53 = vadd.f32 %v4211_v57, %v405_v50  ;;  %v1145_v12 = vld [vmem:[%s4118_s3 + $0xa8] sm:$0xff]  ;;  %v1164_v41 = vld [vmem:[%s4118_s3 + $0x140] sm:$0xff]  ;;  %v1166_v15 = vld [vmem:[%s4118_s3 + $0x150] sm:$0xff] }
 0x13f   :  { %1483 = vmatpush2.msra.mxu1 %v1088_v13  ;;  %1708 = vmatpush2.msra.mxu0 %v1120_v38  ;;  %v1079_v13 = vsub.f32 %v837_v27, %v3239_v6  ;;  %v1111_v38 = vsub.f32 %v997_v37, %v3239_v6  ;;  %v1158_v27 = vld [vmem:[%s4118_s3 + $0x110] sm:$0xff]  ;;  %v1163_v37 = vld [vmem:[%s4118_s3 + $0x138] sm:$0xff]  ;;  %v1172_v48 = vld [vmem:[%s4118_s3 + $0x180] sm:$0xff] }
 0x140   :  { %1484 = vmatprep.subr.mxu1 %v4167_v11  ;;  %1709 = vmatprep.subr.mxu0 %v4167_v11  ;;  %v1108_v0 = vsub.f32 %v982_v53, %v3258_v24  ;;  %v1175_v50 = vld [vmem:[%s4118_s3 + $0x198] sm:$0xff]  ;;  %v1176_v52 = vld [vmem:[%s4118_s3 + $0x1a0] sm:$0xff]  ;;  %v1178_v58 = vld [vmem:[%s4118_s3 + $0x1b0] sm:$0xff] }
 0x141   :  { %1485 = vmatpush2.msra.mxu1 %v1087_v54  ;;  %1710 = vmatpush2.msra.mxu0 %v1119_v51  ;;  %v1078_v54 = vsub.f32 %v832_v31, %v3249_v29  ;;  %v1110_v51 = vsub.f32 %v992_v44, %v3249_v29  ;;  %v1167_v31 = vld [vmem:[%s4118_s3 + $0x158] sm:$0xff]  ;;  %v1169_v44 = vld [vmem:[%s4118_s3 + $0x168] sm:$0xff] }
 0x142   :  { %1486 = vmatprep.subr.mxu1 %v4167_v11  ;;  %1711 = vmatprep.subr.mxu0 %v4167_v11  ;;  %v1181_v57 = vld [vmem:[%s4118_s3 + $0x1c8] sm:$0xff]  ;;  %v1183_v53 = vld [vmem:[%s4118_s3 + $0x1d8] sm:$0xff] }
 0x143   :  { %1487 = vmatpush2.msra.mxu1 %v1086_v8  ;;  %1712 = vmatpush2.msra.mxu0 %v1118_v56  ;;  %v1077_v8 = vsub.f32 %v827_v42, %v3246_v63  ;;  %v1109_v56 = vsub.f32 %v987_v45, %v3246_v63  ;;  %v1173_v42 = vld [vmem:[%s4118_s3 + $0x188] sm:$0xff]  ;;  %v1174_v45 = vld [vmem:[%s4118_s3 + $0x190] sm:$0xff] }
 0x144   :  { %1488 = vmatprep.subr.mxu1 %v4167_v11  ;;  %1713 = vmatprep.subr.mxu0 %v4167_v11 }
 0x145   :  { %1489 = vmatpush2.msra.mxu1 %v1085_v16  ;;  %1714 = vmatpush2.msra.mxu0 %v1117_v61  ;;  %v1129_v16 = vld [vmem:[%s4118_s3 + $0x28] sm:$0xff]  ;;  %v1131_v61 = vld [vmem:[%s4118_s3 + $0x38] sm:$0xff] }
 0x146   :  { %1490 = vmatprep.subr.mxu1 %v4167_v11  ;;  %1715 = vmatprep.subr.mxu0 %v4167_v11 }
 0x147   :  { %1491 = vmatpush2.msra.mxu1 %v1084_v40  ;;  %1716 = vmatpush2.msra.mxu0 %v1116_v1  ;;  %v1137_v40 = vld [vmem:[%s4118_s3 + $0x68] sm:$0xff]  ;;  %v1139_v1 = vld [vmem:[%s4118_s3 + $0x78] sm:$0xff] }
 0x148   :  { %1492 = vmatprep.subr.mxu1 %v4167_v11  ;;  %1717 = vmatprep.subr.mxu0 %v4167_v11 }
 0x149   :  { %1493 = vmatpush2.msra.mxu1 %v1083_v9  ;;  %1718 = vmatpush2.msra.mxu0 %v1115_v3  ;;  %v1140_v9 = vld [vmem:[%s4118_s3 + $0x80] sm:$0xff]  ;;  %v1142_v3 = vld [vmem:[%s4118_s3 + $0x90] sm:$0xff] }
 0x14a   :  { %1494 = vmatprep.subr.mxu1 %v4167_v11  ;;  %1719 = vmatprep.subr.mxu0 %v4167_v11 }
 0x14b   :  { %1495 = vmatpush2.msra.mxu1 %v1082_v47  ;;  %1720 = vmatpush2.msra.mxu0 %v1114_v21  ;;  %v1151_v47 = vld [vmem:[%s4118_s3 + $0xd8] sm:$0xff]  ;;  %v1148_v21 = vld [vmem:[%s4118_s3 + $0xc0] sm:$0xff] }
 0x14c   :  { %1496 = vmatprep.subr.mxu1 %v4167_v11  ;;  %1721 = vmatprep.subr.mxu0 %v4167_v11 }
 0x14d   :  { %1497 = vmatpush2.msra.mxu1 %v1081_v5  ;;  %1722 = vmatpush2.msra.mxu0 %v1113_v62  ;;  %v1157_v5 = vld [vmem:[%s4118_s3 + $0x108] sm:$0xff]  ;;  %v1159_v62 = vld [vmem:[%s4118_s3 + $0x118] sm:$0xff] }
 0x14e   :  { %1498 = vmatprep.subr.mxu1 %v4167_v11  ;;  %1723 = vmatprep.subr.mxu0 %v4167_v11 }
 0x14f   :  { %1499 = vmatpush2.msra.mxu1 %v1080_v17  ;;  %1724 = vmatpush2.msra.mxu0 %v1112_v28  ;;  %v1160_v17 = vld [vmem:[%s4118_s3 + $0x120] sm:$0xff]  ;;  %v1162_v28 = vld [vmem:[%s4118_s3 + $0x130] sm:$0xff] }
 0x150   :  { %1500 = vmatprep.subr.mxu1 %v4167_v11  ;;  %1725 = vmatprep.subr.mxu0 %v4167_v11 }
 0x151   :  { %1501 = vmatpush2.msra.mxu1 %v1079_v13  ;;  %1726 = vmatpush2.msra.mxu0 %v1111_v38  ;;  %v1171_v13 = vld [vmem:[%s4118_s3 + $0x178] sm:$0xff]  ;;  %v1168_v38 = vld [vmem:[%s4118_s3 + $0x160] sm:$0xff] }
 0x152   :  { %1502 = vmatprep.subr.mxu1 %v4167_v11  ;;  %1727 = vmatprep.subr.mxu0 %v4167_v11 }
 0x153   :  { %1503 = vmatpush2.msra.mxu1 %v1078_v54  ;;  %1728 = vmatpush2.msra.mxu0 %v1110_v51  ;;  %v1177_v54 = vld [vmem:[%s4118_s3 + $0x1a8] sm:$0xff]  ;;  %v1179_v51 = vld [vmem:[%s4118_s3 + $0x1b8] sm:$0xff] }
 0x154   :  { %1504 = vmatprep.subr.mxu1 %v4167_v11  ;;  %1729 = vmatprep.subr.mxu0 %v4167_v11 }
 0x155   :  { %1505 = vmatpush2.msra.mxu1 %v1077_v8  ;;  %1730 = vmatpush2.msra.mxu0 %v1109_v56  ;;  %v1180_v8 = vld [vmem:[%s4118_s3 + $0x1c0] sm:$0xff]  ;;  %v1182_v56 = vld [vmem:[%s4118_s3 + $0x1d0] sm:$0xff] }
 0x156   :  { %1506 = vmatprep.subr.mxu1 %v4167_v11  ;;  %1731 = vmatprep.subr.mxu0 %v4167_v11  ;;  %v1130_v11 = vld [vmem:[%s4118_s3 + $0x30] sm:$0xff] }
 0x157   :  { %1507 = vmatpush2.msra.mxu1 %v1076_v55  ;;  %1732 = vmatpush2.msra.mxu0 %v1108_v0  ;;  %v1185_v55 = vld [vmem:[%s4118_s3 + $0x1e8] sm:$0xff]  ;;  %v1187_v0 = vld [vmem:[%s4118_s3 + $0x1f8] sm:$0xff] }
 0x158   :  { %1509 = vmatmul.mubr.f32.vlgmr.msra.gmra.mxu1 %v1124_v18  ;;  %1734 = vmatmul.mubr.f32.vlgmr.msra.gmra.mxu0 %v1126_v39  ;;  %v1184_v18 = vld [vmem:[%s4118_s3 + $0x1e0] sm:$0xff]  ;;  %v1186_v39 = vld [vmem:[%s4118_s3 + $0x1f0] sm:$0xff] }
 0x159   :  { %1513 = vmatprep.mubr.f32.mxu1 %v1129_v16  ;;  %1738 = vmatprep.mubr.f32.mxu0 %v1131_v61  ;;  %v1189_v16 = vld [vmem:[%s4118_s3 + $0x208] sm:$0xff]  ;;  %v1191_v61 = vld [vmem:[%s4118_s3 + $0x218] sm:$0xff] }
 0x15c   :  { %1514 = vmatmul.mubr.f32.gmra.mxu1 %v1128_v43  ;;  %1739 = vmatmul.mubr.f32.gmra.mxu0 %v1130_v11  ;;  %v1188_v43 = vld [vmem:[%s4118_s3 + $0x200] sm:$0xff]  ;;  %v1190_v11 = vld [vmem:[%s4118_s3 + $0x210] sm:$0xff] }
 0x15d   :  { %1518 = vmatprep.mubr.f32.mxu1 %v1133_v2  ;;  %1743 = vmatprep.mubr.f32.mxu0 %v1135_v60  ;;  %v1193_v2 = vld [vmem:[%s4118_s3 + $0x228] sm:$0xff]  ;;  %v1195_v60 = vld [vmem:[%s4118_s3 + $0x238] sm:$0xff] }
 0x160   :  { %1519 = vmatmul.mubr.f32.gmra.mxu1 %v1132_v35  ;;  %1744 = vmatmul.mubr.f32.gmra.mxu0 %v1134_v7  ;;  %v1192_v35 = vld [vmem:[%s4118_s3 + $0x220] sm:$0xff]  ;;  %v1194_v7 = vld [vmem:[%s4118_s3 + $0x230] sm:$0xff] }
 0x161   :  { %1523 = vmatprep.mubr.f32.mxu1 %v1137_v40  ;;  %1748 = vmatprep.mubr.f32.mxu0 %v1139_v1  ;;  %v1197_v40 = vld [vmem:[%s4118_s3 + $0x248] sm:$0xff]  ;;  %v1199_v1 = vld [vmem:[%s4118_s3 + $0x258] sm:$0xff] }
 0x164   :  { %1524 = vmatmul.mubr.f32.gmra.mxu1 %v1136_v4  ;;  %1749 = vmatmul.mubr.f32.gmra.mxu0 %v1138_v30  ;;  %v1196_v4 = vld [vmem:[%s4118_s3 + $0x240] sm:$0xff]  ;;  %v1198_v30 = vld [vmem:[%s4118_s3 + $0x250] sm:$0xff] }
 0x165   :  { %1528 = vmatprep.mubr.f32.mxu1 %v1141_v49  ;;  %1753 = vmatprep.mubr.f32.mxu0 %v1143_v32  ;;  %v1201_v49 = vld [vmem:[%s4118_s3 + $0x268] sm:$0xff]  ;;  %v1203_v32 = vld [vmem:[%s4118_s3 + $0x278] sm:$0xff] }
 0x168   :  { %1529 = vmatmul.mubr.f32.gmra.mxu1 %v1140_v9  ;;  %1754 = vmatmul.mubr.f32.gmra.mxu0 %v1142_v3  ;;  %v1200_v9 = vld [vmem:[%s4118_s3 + $0x260] sm:$0xff]  ;;  %v1202_v3 = vld [vmem:[%s4118_s3 + $0x270] sm:$0xff] }
 0x169   :  { %1533 = vmatprep.mubr.f32.mxu1 %v1145_v12  ;;  %1758 = vmatprep.mubr.f32.mxu0 %v1147_v33  ;;  %v1205_v12 = vld [vmem:[%s4118_s3 + $0x288] sm:$0xff]  ;;  %v1207_v33 = vld [vmem:[%s4118_s3 + $0x298] sm:$0xff] }
 0x16c   :  { %1534 = vmatmul.mubr.f32.gmra.mxu1 %v1144_v36  ;;  %1759 = vmatmul.mubr.f32.gmra.mxu0 %v1146_v59  ;;  %v1204_v36 = vld [vmem:[%s4118_s3 + $0x280] sm:$0xff]  ;;  %v1206_v59 = vld [vmem:[%s4118_s3 + $0x290] sm:$0xff] }
 0x16d   :  { %1538 = vmatprep.mubr.f32.mxu1 %v1149_v19  ;;  %1763 = vmatprep.mubr.f32.mxu0 %v1151_v47  ;;  %v1209_v19 = vld [vmem:[%s4118_s3 + $0x2a8] sm:$0xff]  ;;  %v1211_v47 = vld [vmem:[%s4118_s3 + $0x2b8] sm:$0xff] }
 0x170   :  { %1539 = vmatmul.mubr.f32.gmra.mxu1 %v1148_v21  ;;  %1764 = vmatmul.mubr.f32.gmra.mxu0 %v1150_v22  ;;  %v1208_v21 = vld [vmem:[%s4118_s3 + $0x2a0] sm:$0xff]  ;;  %v1210_v22 = vld [vmem:[%s4118_s3 + $0x2b0] sm:$0xff] }
 0x171   :  { %1543 = vmatprep.mubr.f32.mxu1 %v1153_v25  ;;  %1768 = vmatprep.mubr.f32.mxu0 %v1155_v23  ;;  %v1213_v25 = vld [vmem:[%s4118_s3 + $0x2c8] sm:$0xff]  ;;  %v1215_v23 = vld [vmem:[%s4118_s3 + $0x2d8] sm:$0xff] }
 0x174   :  { %1544 = vmatmul.mubr.f32.gmra.mxu1 %v1152_v26  ;;  %1769 = vmatmul.mubr.f32.gmra.mxu0 %v1154_v20  ;;  %v1212_v26 = vld [vmem:[%s4118_s3 + $0x2c0] sm:$0xff]  ;;  %v1214_v20 = vld [vmem:[%s4118_s3 + $0x2d0] sm:$0xff] }
 0x175   :  { %1548 = vmatprep.mubr.f32.mxu1 %v1157_v5  ;;  %1773 = vmatprep.mubr.f32.mxu0 %v1159_v62  ;;  %v1217_v5 = vld [vmem:[%s4118_s3 + $0x2e8] sm:$0xff]  ;;  %v1219_v62 = vld [vmem:[%s4118_s3 + $0x2f8] sm:$0xff] }
 0x178   :  { %1549 = vmatmul.mubr.f32.gmra.mxu1 %v1156_v34  ;;  %1774 = vmatmul.mubr.f32.gmra.mxu0 %v1158_v27  ;;  %v1216_v34 = vld [vmem:[%s4118_s3 + $0x2e0] sm:$0xff]  ;;  %v1218_v27 = vld [vmem:[%s4118_s3 + $0x2f0] sm:$0xff] }
 0x179   :  { %1553 = vmatprep.mubr.f32.mxu1 %v1161_v46  ;;  %1778 = vmatprep.mubr.f32.mxu0 %v1163_v37  ;;  %v1221_v46 = vld [vmem:[%s4118_s3 + $0x308] sm:$0xff]  ;;  %v1223_v37 = vld [vmem:[%s4118_s3 + $0x318] sm:$0xff] }
 0x17c   :  { %1554 = vmatmul.mubr.f32.gmra.mxu1 %v1160_v17  ;;  %1779 = vmatmul.mubr.f32.gmra.mxu0 %v1162_v28  ;;  %v1220_v17 = vld [vmem:[%s4118_s3 + $0x300] sm:$0xff]  ;;  %v1222_v28 = vld [vmem:[%s4118_s3 + $0x310] sm:$0xff] }
 0x17d   :  { %1558 = vmatprep.mubr.f32.mxu1 %v1165_v10  ;;  %1783 = vmatprep.mubr.f32.mxu0 %v1167_v31  ;;  %v1225_v10 = vld [vmem:[%s4118_s3 + $0x328] sm:$0xff]  ;;  %v1227_v31 = vld [vmem:[%s4118_s3 + $0x338] sm:$0xff] }
 0x180   :  { %1559 = vmatmul.mubr.f32.gmra.mxu1 %v1164_v41  ;;  %1784 = vmatmul.mubr.f32.gmra.mxu0 %v1166_v15  ;;  %v1224_v41 = vld [vmem:[%s4118_s3 + $0x320] sm:$0xff]  ;;  %v1226_v15 = vld [vmem:[%s4118_s3 + $0x330] sm:$0xff] }
 0x181   :  { %1563 = vmatprep.mubr.f32.mxu1 %v1169_v44  ;;  %1788 = vmatprep.mubr.f32.mxu0 %v1171_v13  ;;  %v1229_v44 = vld [vmem:[%s4118_s3 + $0x348] sm:$0xff]  ;;  %v1231_v13 = vld [vmem:[%s4118_s3 + $0x358] sm:$0xff] }
 0x184   :  { %1564 = vmatmul.mubr.f32.gmra.mxu1 %v1168_v38  ;;  %1789 = vmatmul.mubr.f32.gmra.mxu0 %v1170_v14  ;;  %v3835_v38 = vpop.permute.xlu1 %1361  ;;  %v1228_v14 = vld [vmem:[%s4118_s3 + $0x340] sm:$0xff] }
 0x185   :  { %1568 = vmatprep.mubr.f32.mxu1 %v1173_v42  ;;  %1793 = vmatprep.mubr.f32.mxu0 %v1175_v50  ;;  %v1230_v42 = vld [vmem:[%s4118_s3 + $0x350] sm:$0xff]  ;;  %v1233_v50 = vld [vmem:[%s4118_s3 + $0x368] sm:$0xff] }
 0x188   :  { %1569 = vmatmul.mubr.f32.gmra.mxu1 %v1172_v48  ;;  %1794 = vmatmul.mubr.f32.gmra.mxu0 %v1174_v45  ;;  %v1235_v48 = vld [vmem:[%s4118_s3 + $0x378] sm:$0xff]  ;;  %v1232_v45 = vld [vmem:[%s4118_s3 + $0x360] sm:$0xff] }
 0x189   :  { %1573 = vmatprep.mubr.f32.mxu1 %v1177_v54  ;;  %1798 = vmatprep.mubr.f32.mxu0 %v1179_v51  ;;  %v1234_v54 = vld [vmem:[%s4118_s3 + $0x370] sm:$0xff]  ;;  %v1237_v51 = vld [vmem:[%s4118_s3 + $0x388] sm:$0xff] }
 0x18c   :  { %1574 = vmatmul.mubr.f32.gmra.mxu1 %v1176_v52  ;;  %1799 = vmatmul.mubr.f32.gmra.mxu0 %v1178_v58  ;;  %v1239_v52 = vld [vmem:[%s4118_s3 + $0x398] sm:$0xff]  ;;  %v3861_v58 = vpop.permute.xlu1 %1356 }
 0x18d   :  { %1578 = vmatprep.mubr.f32.mxu1 %v1181_v57  ;;  %1803 = vmatprep.mubr.f32.mxu0 %v1183_v53  ;;  %v1236_v57 = vld [vmem:[%s4118_s3 + $0x380] sm:$0xff]  ;;  %v1238_v53 = vld [vmem:[%s4118_s3 + $0x390] sm:$0xff] }
 0x190   :  { %1579 = vmatmul.mubr.f32.gmra.mxu1 %v1180_v8  ;;  %1804 = vmatmul.mubr.f32.gmra.mxu0 %v1182_v56  ;;  %v1241_v8 = vld [vmem:[%s4118_s3 + $0x3a8] sm:$0xff]  ;;  %v1243_v56 = vld [vmem:[%s4118_s3 + $0x3b8] sm:$0xff] }
 0x191   :  { %1583 = vmatprep.mubr.f32.mxu1 %v1185_v55  ;;  %1808 = vmatprep.mubr.f32.mxu0 %v1187_v0  ;;  %v3875_v55 = vpop.permute.xlu1 %1351  ;;  %v1240_v0 = vld [vmem:[%s4118_s3 + $0x3a0] sm:$0xff] }
 0x194   :  { %1584 = vmatmul.mubr.f32.gmra.mxu1 %v1184_v18  ;;  %1809 = vmatmul.mubr.f32.gmra.mxu0 %v1186_v39  ;;  %v1242_v18 = vld [vmem:[%s4118_s3 + $0x3b0] sm:$0xff]  ;;  %v1245_v39 = vld [vmem:[%s4118_s3 + $0x3c8] sm:$0xff] }
 0x195   :  { %1588 = vmatprep.mubr.f32.mxu1 %v1189_v16  ;;  %1813 = vmatprep.mubr.f32.mxu0 %v1191_v61  ;;  %v1247_v16 = vld [vmem:[%s4118_s3 + $0x3d8] sm:$0xff]  ;;  %v1244_v61 = vld [vmem:[%s4118_s3 + $0x3c0] sm:$0xff] }
 0x198   :  { %1589 = vmatmul.mubr.f32.gmra.mxu1 %v1188_v43  ;;  %1814 = vmatmul.mubr.f32.gmra.mxu0 %v1190_v11  ;;  %v1246_v43 = vld [vmem:[%s4118_s3 + $0x3d0] sm:$0xff]  ;;  %v1249_v11 = vld [vmem:[%s4118_s3 + $0x3e8] sm:$0xff] }
 0x199   :  { %1593 = vmatprep.mubr.f32.mxu1 %v1193_v2  ;;  %1818 = vmatprep.mubr.f32.mxu0 %v1195_v60  ;;  %v1251_v2 = vld [vmem:[%s4118_s3 + $0x3f8] sm:$0xff]  ;;  %v3901_v60 = vpop.permute.xlu1 %1346 }
 0x19c   :  { %1594 = vmatmul.mubr.f32.gmra.mxu1 %v1192_v35  ;;  %1819 = vmatmul.mubr.f32.gmra.mxu0 %v1194_v7  ;;  %v1248_v35 = vld [vmem:[%s4118_s3 + $0x3e0] sm:$0xff]  ;;  %v1250_v7 = vld [vmem:[%s4118_s3 + $0x3f0] sm:$0xff] }
 0x19d   :  { %1598 = vmatprep.mubr.f32.mxu1 %v1197_v40  ;;  %1823 = vmatprep.mubr.f32.mxu0 %v1199_v1  ;;  %v3909_v40 = vpop.permute.xlu1 %1341 }
 0x1a0   :  { %1599 = vmatmul.mubr.f32.gmra.mxu1 %v1196_v4  ;;  %1824 = vmatmul.mubr.f32.gmra.mxu0 %v1198_v30 }
 0x1a1   :  { %1603 = vmatprep.mubr.f32.mxu1 %v1201_v49  ;;  %1828 = vmatprep.mubr.f32.mxu0 %v1203_v32  ;;  %v3911_v1 = vpop.permute.xlu1 %1336 }
 0x1a4   :  { %1604 = vmatmul.mubr.f32.gmra.mxu1 %v1200_v9  ;;  %1829 = vmatmul.mubr.f32.gmra.mxu0 %v1202_v3  ;;  %v3917_v3 = vpop.permute.xlu0 %1441 }
 0x1a5   :  { %1608 = vmatprep.mubr.f32.mxu1 %v1205_v12  ;;  %1833 = vmatprep.mubr.f32.mxu0 %v1207_v33  ;;  %v3913_v4 = vpop.permute.xlu1 %1331 }
 0x1a8   :  { %1609 = vmatmul.mubr.f32.gmra.mxu1 %v1204_v36  ;;  %1834 = vmatmul.mubr.f32.gmra.mxu0 %v1206_v59  ;;  %v3919_v33 = vpop.permute.xlu0 %1436 }
 0x1a9   :  { %1613 = vmatprep.mubr.f32.mxu1 %v1209_v19  ;;  %1838 = vmatprep.mubr.f32.mxu0 %v1211_v47  ;;  %v3915_v30 = vpop.permute.xlu1 %1326 }
 0x1ac   :  { %1614 = vmatmul.mubr.f32.gmra.mxu1 %v1208_v21  ;;  %1839 = vmatmul.mubr.f32.gmra.mxu0 %v1210_v22  ;;  %v3921_v59 = vpop.permute.xlu0 %1431 }
 0x1ad   :  { %1618 = vmatprep.mubr.f32.mxu1 %v1213_v25  ;;  %1843 = vmatprep.mubr.f32.mxu0 %v1215_v23  ;;  %v1322_v49 = vpop.permute.xlu1 %1321 }
 0x1b0   :  { %1619 = vmatmul.mubr.f32.gmra.mxu1 %v1212_v26  ;;  %1844 = vmatmul.mubr.f32.gmra.mxu0 %v1214_v20  ;;  %v3923_v47 = vpop.permute.xlu0 %1426 }
 0x1b1   :  { %1623 = vmatprep.mubr.f32.mxu1 %v1217_v5  ;;  %1848 = vmatprep.mubr.f32.mxu0 %v1219_v62  ;;  %v1317_v32 = vpop.permute.xlu1 %1316 }
 0x1b4   :  { %1624 = vmatmul.mubr.f32.gmra.mxu1 %v1216_v34  ;;  %1849 = vmatmul.mubr.f32.gmra.mxu0 %v1218_v27  ;;  %v3925_v22 = vpop.permute.xlu0 %1421 }
 0x1b5   :  { %1628 = vmatprep.mubr.f32.mxu1 %v1221_v46  ;;  %1853 = vmatprep.mubr.f32.mxu0 %v1223_v37  ;;  %v1312_v9 = vpop.permute.xlu1 %1311 }
 0x1b8   :  { %1629 = vmatmul.mubr.f32.gmra.mxu1 %v1220_v17  ;;  %1854 = vmatmul.mubr.f32.gmra.mxu0 %v1222_v28  ;;  %v3927_v34 = vpop.permute.xlu0 %1416 }
 0x1b9   :  { %1633 = vmatprep.mubr.f32.mxu1 %v1225_v10  ;;  %1858 = vmatprep.mubr.f32.mxu0 %v1227_v31  ;;  %v1307_v12 = vpop.permute.xlu1 %1306 }
 0x1bc   :  { %1634 = vmatmul.mubr.f32.gmra.mxu1 %v1224_v41  ;;  %1859 = vmatmul.mubr.f32.gmra.mxu0 %v1226_v15 }
 0x1bd   :  { %1638 = vmatprep.mubr.f32.mxu1 %v1229_v44  ;;  %1863 = vmatprep.mubr.f32.mxu0 %v1231_v13  ;;  %v1302_v36 = vpop.permute.xlu1 %1301  ;;  %v3933_v44 = vpop.permute.xlu0 %1411 }
 0x1c0   :  { %1639 = vmatmul.mubr.f32.gmra.mxu1 %v1228_v14  ;;  %1864 = vmatmul.mubr.f32.gmra.mxu0 %v1230_v42 }
 0x1c1   :  { %1643 = vmatprep.mubr.f32.mxu1 %v1233_v50  ;;  %1868 = vmatprep.mubr.f32.mxu0 %v1235_v48  ;;  %v1297_v19 = vpop.permute.xlu1 %1296 }
 0x1c4   :  { %1644 = vmatmul.mubr.f32.gmra.mxu1 %v1232_v45  ;;  %1869 = vmatmul.mubr.f32.gmra.mxu0 %v1234_v54 }
 0x1c5   :  { %1648 = vmatprep.mubr.f32.mxu1 %v1237_v51  ;;  %1873 = vmatprep.mubr.f32.mxu0 %v1239_v52  ;;  %v1292_v21 = vpop.permute.xlu1 %1291 }
 0x1c8   :  { %1649 = vmatmul.mubr.f32.gmra.mxu1 %v1236_v57  ;;  %1874 = vmatmul.mubr.f32.gmra.mxu0 %v1238_v53  ;;  %v3937_v57 = vpop.permute.xlu0 %1406 }
 0x1c9   :  { %1653 = vmatprep.mubr.f32.mxu1 %v1241_v8  ;;  %1878 = vmatprep.mubr.f32.mxu0 %v1243_v56  ;;  %v1287_v25 = vpop.permute.xlu1 %1286 }
 0x1cc   :  { %1654 = vmatmul.mubr.f32.gmra.mxu1 %v1240_v0  ;;  %1879 = vmatmul.mubr.f32.gmra.mxu0 %v1242_v18 }
 0x1cd   :  { %1658 = vmatprep.mubr.f32.mxu1 %v1245_v39  ;;  %1883 = vmatprep.mubr.f32.mxu0 %v1247_v16 }
 0x1d0   :  { %1659 = vmatmul.mubr.f32.gmra.mxu1 %v1244_v61  ;;  %1884 = vmatmul.mubr.f32.gmra.mxu0 %v1246_v43 }
 0x1d1   :  { %1663 = vmatprep.mubr.f32.mxu1 %v1249_v11  ;;  %1888 = vmatprep.mubr.f32.mxu0 %v1251_v2  ;;  %v3943_v11 = vpop.permute.xlu0 %1401 }
 0x1d4   :  { %1664 = vmatmul.mubr.f32.gmra.mxu1 %v1248_v35  ;;  %1889 = vmatmul.mubr.f32.gmra.mxu0 %v1250_v7 }
 0x218   :  { %v1510_v23 = vpop.f32.mrf.mxu1  ;;  %v1735_v26 = vpop.f32.mrf.mxu0 }
 0x219   :  { %v1511_v20 = vadd.f32 %v1510_v23, %v1287_v25 }
 0x21a   :  { %v1512_v5 = vpop.f32.mrf.mxu1  ;;  %v1737_v62 = vpop.f32.mrf.mxu0 }
 0x21b   :  { %v3929_v27 = vadd.f32 %v1735_v26, %v1511_v20  ;;  %v3947_v20 = vpop.permute.xlu0 %1396 }
 0x21c   :  { %v1515_v46 = vpop.f32.mrf.mxu1  ;;  %v1740_v37 = vpop.f32.mrf.mxu0 }
 0x21d   :  { %4212 = vst [vmem:[#allocation10_spill] sm:$0xff] %v3929_v27  ;;  %v1516_v17 = vadd.f32 %v1515_v46, %v1292_v21 }
 0x21e   :  { %v1517_v28 = vpop.f32.mrf.mxu1  ;;  %v1742_v10 = vpop.f32.mrf.mxu0 }
 0x21f   :  { %v3931_v31 = vadd.f32 %v1740_v37, %v1516_v17 }
 0x220   :  { %v1520_v41 = vpop.f32.mrf.mxu1  ;;  %v1745_v15 = vpop.f32.mrf.mxu0 }
 0x221   :  { %4213 = vst [vmem:[#allocation6_spill] sm:$0xff] %v3931_v31  ;;  %v1521_v13 = vadd.f32 %v1520_v41, %v1297_v19  ;;  %v3953_v41 = vpop.permute.xlu0 %1391 }
 0x222   :  { %v1522_v14 = vpop.f32.mrf.mxu1  ;;  %v1747_v42 = vpop.f32.mrf.mxu0 }
 0x223   :  { %v3935_v50 = vadd.f32 %v1745_v15, %v1521_v13 }
 0x224   :  { %v1525_v48 = vpop.f32.mrf.mxu1  ;;  %v1750_v45 = vpop.f32.mrf.mxu0 }
 0x225   :  { %4214 = vst [vmem:[#allocation12_spill] sm:$0xff] %v3935_v50  ;;  %v1526_v54 = vadd.f32 %v1525_v48, %v1302_v36 }
 0x226   :  { %v1527_v51 = vpop.f32.mrf.mxu1  ;;  %v1752_v52 = vpop.f32.mrf.mxu0 }
 0x227   :  { %v3939_v53 = vadd.f32 %v1750_v45, %v1526_v54  ;;  %v1963_v54 = vld [vmem:[%s4119_s5 + $0x28] sm:$0xff] }
 0x228   :  { %v1530_v8 = vpop.f32.mrf.mxu1  ;;  %v1755_v56 = vpop.f32.mrf.mxu0  ;;  %2064 = vmatprep.mubr.f32.mxu1 %v1963_v54 }
 0x229   :  { %v1531_v0 = vadd.f32 %v1530_v8, %v1307_v12 }
 0x22a   :  { %v1532_v18 = vpop.f32.mrf.mxu1  ;;  %v1757_v39 = vpop.f32.mrf.mxu0 }
 0x22b   :  { %v3941_v16 = vadd.f32 %v1755_v56, %v1531_v0 }
 0x22c   :  { %v1535_v61 = vpop.f32.mrf.mxu1  ;;  %v1760_v43 = vpop.f32.mrf.mxu0 }
 0x22d   :  { %v1536_v2 = vadd.f32 %v1535_v61, %v1312_v9 }
 0x22e   :  { %v1537_v35 = vpop.f32.mrf.mxu1  ;;  %v1762_v7 = vpop.f32.mrf.mxu0 }
 0x22f   :  { %v3945_v36 = vadd.f32 %v1760_v43, %v1536_v2 }
 0x230   :  { %v1540_v19 = vpop.f32.mrf.mxu1  ;;  %v1765_v21 = vpop.f32.mrf.mxu0 }
 0x231   :  { %v1541_v25 = vadd.f32 %v1540_v19, %v1317_v32 }
 0x232   :  { %v1542_v23 = vpop.f32.mrf.mxu1  ;;  %v1767_v26 = vpop.f32.mrf.mxu0 }
 0x233   :  { %v3949_v12 = vadd.f32 %v1765_v21, %v1541_v25 }
 0x234   :  { %v1545_v5 = vpop.f32.mrf.mxu1  ;;  %v1770_v62 = vpop.f32.mrf.mxu0 }
 0x235   :  { %v1546_v46 = vadd.f32 %v1545_v5, %v1322_v49  ;;  %v1959_v49 = vld [vmem:[%s4119_s5 + $0x8] sm:$0xff] }
 0x236   :  { %v1547_v37 = vpop.f32.mrf.mxu1  ;;  %v1772_v17 = vpop.f32.mrf.mxu0  ;;  %2054 = vmatprep.mubr.f32.mxu0 %v1959_v49 }
 0x237   :  { %v3951_v28 = vadd.f32 %v1770_v62, %v1546_v46 }
 0x238   :  { %v1550_v9 = vpop.f32.mrf.mxu1  ;;  %v1775_v10 = vpop.f32.mrf.mxu0 }
 0x239   :  { %v1551_v15 = vadd.f32 %v1550_v9, %v3915_v30  ;;  %v3965_v30 = vpop.permute.xlu0 %1386 }
 0x23a   :  { %v1552_v32 = vpop.f32.mrf.mxu1  ;;  %v1777_v13 = vpop.f32.mrf.mxu0 }
 0x23b   :  { %v3956_v14 = vadd.f32 %v1775_v10, %v1551_v15 }
 0x23c   :  { %v1555_v42 = vpop.f32.mrf.mxu1  ;;  %v1780_v48 = vpop.f32.mrf.mxu0 }
 0x23d   :  { %v1556_v45 = vadd.f32 %v1555_v42, %v3913_v4  ;;  %v1382_v35 = vpop.permute.xlu0 %1381 }
 0x23e   :  { %v1557_v51 = vpop.f32.mrf.mxu1  ;;  %v1782_v52 = vpop.f32.mrf.mxu0 }
 0x23f   :  { %v3967_v8 = vadd.f32 %v1780_v48, %v1556_v45 }
 0x240   :  { %v1560_v56 = vpop.f32.mrf.mxu1  ;;  %v1785_v0 = vpop.f32.mrf.mxu0 }
 0x241   :  { %v1561_v4 = vadd.f32 %v1560_v56, %v3911_v1  ;;  %v1377_v1 = vpop.permute.xlu0 %1376 }
 0x242   :  { %v1562_v18 = vpop.f32.mrf.mxu1  ;;  %v1787_v39 = vpop.f32.mrf.mxu0 }
 0x243   :  { %v3970_v61 = vadd.f32 %v1785_v0, %v1561_v4 }
 0x244   :  { %v1565_v43 = vpop.f32.mrf.mxu1  ;;  %v1790_v2 = vpop.f32.mrf.mxu0 }
 0x245   :  { %v1566_v7 = vadd.f32 %v1565_v43, %v3909_v40  ;;  %v1372_v48 = vpop.permute.xlu0 %1371 }
 0x246   :  { %v1567_v19 = vpop.f32.mrf.mxu1  ;;  %v1792_v21 = vpop.f32.mrf.mxu0 }
 0x247   :  { %v3973_v25 = vadd.f32 %v1790_v2, %v1566_v7 }
 0x248   :  { %v1570_v23 = vpop.f32.mrf.mxu1  ;;  %v1795_v26 = vpop.f32.mrf.mxu0 }
 0x249   :  { %v1571_v5 = vadd.f32 %v1570_v23, %v3901_v60 }
 0x24a   :  { %v1572_v62 = vpop.f32.mrf.mxu1  ;;  %v1797_v46 = vpop.f32.mrf.mxu0 }
 0x24b   :  { %v3976_v37 = vadd.f32 %v1795_v26, %v1571_v5 }
 0x24c   :  { %v1575_v17 = vpop.f32.mrf.mxu1  ;;  %v1800_v9 = vpop.f32.mrf.mxu0 }
 0x24d   :  { %v1576_v10 = vadd.f32 %v1575_v17, %v3875_v55  ;;  %v1367_v55 = vpop.permute.xlu0 %1366 }
 0x24e   :  { %v1577_v15 = vpop.f32.mrf.mxu1  ;;  %v1802_v32 = vpop.f32.mrf.mxu0 }
 0x24f   :  { %v3979_v40 = vadd.f32 %v1800_v9, %v1576_v10 }
 0x250   :  { %v1580_v13 = vpop.f32.mrf.mxu1  ;;  %v1805_v42 = vpop.f32.mrf.mxu0 }
 0x251   :  { %v1581_v45 = vadd.f32 %v1580_v13, %v3861_v58 }
 0x252   :  { %v1582_v49 = vpop.f32.mrf.mxu1  ;;  %v1807_v60 = vpop.f32.mrf.mxu0 }
 0x253   :  { %v3982_v54 = vadd.f32 %v1805_v42, %v1581_v45 }
 0x254   :  { %v1585_v51 = vpop.f32.mrf.mxu1  ;;  %v1810_v52 = vpop.f32.mrf.mxu0 }
 0x255   :  { %v1586_v56 = vadd.f32 %v1585_v51, %v3835_v38 }
 0x256   :  { %v1587_v0 = vpop.f32.mrf.mxu1  ;;  %v1812_v4 = vpop.f32.mrf.mxu0 }
 0x257   :  { %v3985_v18 = vadd.f32 %v1810_v52, %v1586_v56 }
 0x258   :  { %v1590_v39 = vpop.f32.mrf.mxu1  ;;  %v1815_v43 = vpop.f32.mrf.mxu0 }
 0x259   :  { %v1591_v2 = vadd.f32 %v1590_v39, %v1367_v55 }
 0x25a   :  { %v1592_v7 = vpop.f32.mrf.mxu1  ;;  %v1817_v19 = vpop.f32.mrf.mxu0 }
 0x25b   :  { %v3987_v21 = vadd.f32 %v1815_v43, %v1591_v2 }
 0x25c   :  { %v1595_v58 = vpop.f32.mrf.mxu1  ;;  %v1820_v23 = vpop.f32.mrf.mxu0 }
 0x25d   :  { %4215 = vst [vmem:[#allocation7_spill] sm:$0xff] %v3987_v21  ;;  %v1596_v26 = vadd.f32 %v1595_v58, %v1372_v48 }
 0x25e   :  { %v1597_v5 = vpop.f32.mrf.mxu1  ;;  %v1822_v62 = vpop.f32.mrf.mxu0 }
 0x25f   :  { %v3989_v46 = vadd.f32 %v1820_v23, %v1596_v26 }
 0x260   :  { %v1600_v38 = vpop.f32.mrf.mxu1  ;;  %v1825_v17 = vpop.f32.mrf.mxu0 }
 0x261   :  { %4216 = vst [vmem:[#allocation11_spill] sm:$0xff] %v3989_v46  ;;  %v1601_v9 = vadd.f32 %v1600_v38, %v1377_v1 }
 0x262   :  { %v1602_v10 = vpop.f32.mrf.mxu1  ;;  %v1827_v15 = vpop.f32.mrf.mxu0 }
 0x263   :  { %v3991_v32 = vadd.f32 %v1825_v17, %v1601_v9 }
 0x264   :  { %v1605_v13 = vpop.f32.mrf.mxu1  ;;  %v1830_v42 = vpop.f32.mrf.mxu0 }
 0x265   :  { %4217 = vst [vmem:[#allocation8_spill] sm:$0xff] %v3991_v32  ;;  %v1606_v45 = vadd.f32 %v1605_v13, %v1382_v35 }
 0x266   :  { %v1607_v49 = vpop.f32.mrf.mxu1  ;;  %v1832_v60 = vpop.f32.mrf.mxu0 }
 0x267   :  { %v3993_v51 = vadd.f32 %v1830_v42, %v1606_v45 }
 0x268   :  { %v1610_v52 = vpop.f32.mrf.mxu1  ;;  %v1835_v48 = vpop.f32.mrf.mxu0 }
 0x269   :  { %v1611_v56 = vadd.f32 %v1610_v52, %v3965_v30 }
 0x26a   :  { %v1612_v0 = vpop.f32.mrf.mxu1  ;;  %v1837_v4 = vpop.f32.mrf.mxu0 }
 0x26b   :  { %v3996_v55 = vadd.f32 %v1835_v48, %v1611_v56 }
 0x26c   :  { %v3998_v1 = vpop.f32.mrf.mxu1  ;;  %v4000_v39 = vpop.f32.mrf.mxu0 }
 0x26e   :  { %v1617_v43 = vpop.f32.mrf.mxu1  ;;  %v1842_v2 = vpop.f32.mrf.mxu0 }
 0x270   :  { %v4002_v7 = vpop.f32.mrf.mxu1  ;;  %v4004_v35 = vpop.f32.mrf.mxu0 }
 0x272   :  { %v1622_v19 = vpop.f32.mrf.mxu1  ;;  %v1847_v58 = vpop.f32.mrf.mxu0 }
 0x274   :  { %v4006_v23 = vpop.f32.mrf.mxu1  ;;  %v4008_v26 = vpop.f32.mrf.mxu0 }
 0x276   :  { %v1627_v30 = vpop.f32.mrf.mxu1  ;;  %v1852_v5 = vpop.f32.mrf.mxu0 }
 0x278   :  { %v1630_v62 = vpop.f32.mrf.mxu1  ;;  %v4010_v38 = vpop.f32.mrf.mxu0 }
 0x27a   :  { %v1632_v17 = vpop.f32.mrf.mxu1  ;;  %v1857_v9 = vpop.f32.mrf.mxu0 }
 0x27c   :  { %v1635_v10 = vpop.f32.mrf.mxu1  ;;  %v1860_v15 = vpop.f32.mrf.mxu0 }
 0x27e   :  { %v1637_v13 = vpop.f32.mrf.mxu1  ;;  %v1862_v42 = vpop.f32.mrf.mxu0 }
 0x280   :  { %v1640_v45 = vpop.f32.mrf.mxu1  ;;  %v1865_v49 = vpop.f32.mrf.mxu0 }
 0x282   :  { %v1642_v60 = vpop.f32.mrf.mxu1  ;;  %v1867_v52 = vpop.f32.mrf.mxu0 }
 0x284   :  { %v1645_v48 = vpop.f32.mrf.mxu1  ;;  %v1870_v56 = vpop.f32.mrf.mxu0 }
 0x286   :  { %v1647_v0 = vpop.f32.mrf.mxu1  ;;  %v1872_v4 = vpop.f32.mrf.mxu0 }
 0x288   :  { %v1650_v43 = vpop.f32.mrf.mxu1  ;;  %v1875_v2 = vpop.f32.mrf.mxu0 }
 0x289   :  { %v1651_v0 = vadd.f32 %v1650_v43, %v3923_v47  ;;  %v1908_v47 = vadd.f32 %v3982_v54, %v3249_v29  ;;  %v1906_v54 = vadd.f32 %v3976_v37, %v3258_v24  ;;  %v1621_v37 = vadd.f32 %v4002_v7, %v3947_v20 }
 0x28a   :  { %v1652_v19 = vpop.f32.mrf.mxu1  ;;  %v1877_v58 = vpop.f32.mrf.mxu0 }
 0x28c   :  { %v1655_v30 = vpop.f32.mrf.mxu1  ;;  %v1880_v5 = vpop.f32.mrf.mxu0 }
 0x28d   :  { %v1656_v60 = vadd.f32 %v1655_v30, %v3921_v59 }
 0x28e   :  { %v1657_v17 = vpop.f32.mrf.mxu1  ;;  %v1882_v9 = vpop.f32.mrf.mxu0 }
 0x28f   :  { %v1646_v17 = vadd.f32 %v1645_v48, %v3925_v22  ;;  %v1881_v9 = vadd.f32 %v1880_v5, %v1656_v60 }
 0x290   :  { %v1660_v27 = vpop.f32.mrf.mxu1  ;;  %v1885_v21 = vpop.f32.mrf.mxu0 }
 0x291   :  { %v1661_v13 = vadd.f32 %v1660_v27, %v3919_v33  ;;  %v1909_v33 = vadd.f32 %v3985_v18, %v3239_v6  ;;  %v1641_v27 = vadd.f32 %v1640_v45, %v3927_v34  ;;  %v1923_v22 = vadd.f32 %v1881_v9, %v3246_v63 }
 0x292   :  { %v1662_v42 = vpop.f32.mrf.mxu1  ;;  %v1887_v31 = vpop.f32.mrf.mxu0  ;;  %v1631_v34 = vadd.f32 %v1630_v62, %v3937_v57  ;;  %v1905_v57 = vadd.f32 %v3973_v25, %v3239_v6  ;;  %v1616_v25 = vadd.f32 %v3998_v1, %v3953_v41  ;;  %v1902_v41 = vadd.f32 %v3956_v14, %v3258_v24 }
 0x293   :  { %v1886_v4 = vadd.f32 %v1885_v21, %v1661_v13  ;;  %v1876_v31 = vadd.f32 %v1875_v2, %v1651_v0  ;;  %v1941_v18 = vmax.f32 %v1909_v33, 0.0  ;;  %v1866_v45 = vadd.f32 %v1865_v49, %v1641_v27 }
 0x294   :  { %v1665_v52 = vpop.f32.mrf.mxu1  ;;  %v1890_v46 = vpop.f32.mrf.mxu0  ;;  %v1856_v49 = vadd.f32 %v4010_v38, %v1631_v34  ;;  %v1903_v38 = vadd.f32 %v3967_v8, %v3246_v63  ;;  %v1937_v13 = vmax.f32 %v1905_v57, 0.0  ;;  %v1900_v14 = vadd.f32 %v3949_v12, %v3249_v29  ;;  %v1961_v57 = vld [vmem:[%s4119_s5 + $0x18] sm:$0xff] }
 0x295   :  { %v1666_v19 = vadd.f32 %v1665_v52, %v3917_v3  ;;  %v1924_v59 = vadd.f32 %v1886_v4, %v3249_v29  ;;  %v1636_v3 = vadd.f32 %v1635_v10, %v3933_v44  ;;  %v1922_v48 = vadd.f32 %v1876_v31, %v3258_v24 }
 0x296   :  { %v1667_v58 = vpop.f32.mrf.mxu1  ;;  %v1892_v50 = vpop.f32.mrf.mxu0  ;;  %v1940_v44 = vmax.f32 %v1908_v47, 0.0  ;;  %v1920_v2 = vadd.f32 %v1866_v45, %v3249_v29  ;;  %v1918_v42 = vadd.f32 %v1856_v49, %v3258_v24  ;;  %v1935_v0 = vmax.f32 %v1903_v38, 0.0  ;;  %v4222_v45 = vld [vmem:[#allocation7_spill] sm:$0xff]  ;;  %v1964_v49 = vld [vmem:[%s4119_s5 + $0x30] sm:$0xff] }
 0x297   :  { %v1891_v32 = vadd.f32 %v1890_v46, %v1666_v19  ;;  %v1871_v50 = vadd.f32 %v1870_v56, %v1646_v17  ;;  %v1907_v46 = vadd.f32 %v3979_v40, %v3246_v63  ;;  %v1956_v43 = vmax.f32 %v1924_v59, 0.0 }
 0x298   :  { %v1861_v10 = vadd.f32 %v1860_v15, %v1636_v3  ;;  %v1955_v56 = vmax.f32 %v1923_v22, 0.0  ;;  %v1938_v15 = vmax.f32 %v1906_v54, 0.0  ;;  %v1952_v60 = vmax.f32 %v1920_v2, 0.0  ;;  %v1973_v2 = vpop.permute.xlu0 %1972 }
 0x299   :  { %v1925_v30 = vadd.f32 %v1891_v32, %v3239_v6  ;;  %v1626_v32 = vadd.f32 %v4006_v23, %v3943_v11  ;;  %v1921_v40 = vadd.f32 %v1871_v50, %v3239_v6  ;;  %v1939_v62 = vmax.f32 %v1907_v46, 0.0 }
 0x29a   :  { %v1954_v11 = vmax.f32 %v1922_v48, 0.0  ;;  %v1904_v23 = vadd.f32 %v3970_v61, %v3249_v29  ;;  %v1919_v20 = vadd.f32 %v1861_v10, %v3246_v63  ;;  %v1846_v61 = vadd.f32 %v4004_v35, %v1621_v37  ;;  %v1960_v37 = vld [vmem:[%s4119_s5 + $0x10] sm:$0xff] }
 0x29b   :  { %v1957_v21 = vmax.f32 %v1925_v30, 0.0  ;;  %v1851_v5 = vadd.f32 %v4008_v26, %v1626_v32  ;;  %v1953_v7 = vmax.f32 %v1921_v40, 0.0  ;;  %v1841_v26 = vadd.f32 %v4000_v39, %v1616_v25 }
 0x29c   :  { %v1936_v1 = vmax.f32 %v1904_v23, 0.0  ;;  %v1951_v52 = vmax.f32 %v1919_v20, 0.0  ;;  %v1901_v35 = vadd.f32 %v3951_v28, %v3239_v6  ;;  %v1916_v4 = vadd.f32 %v1846_v61, %v3249_v29  ;;  %v1983_v20 = vpop.permute.xlu0 %1982 }
 0x29d   :  { %2220 = vmatprep.subr.mxu0 %v1957_v21  ;;  %2392 = vmatprep.subr.mxu1 %v1957_v21  ;;  %v1917_v8 = vadd.f32 %v1851_v5, %v3239_v6  ;;  %v1950_v19 = vmax.f32 %v1918_v42, 0.0  ;;  %v1934_v39 = vmax.f32 %v1902_v41, 0.0  ;;  %v1915_v58 = vadd.f32 %v1841_v26, %v3246_v63 }
 0x29e   :  { %2221 = vmatpush3.msra.mxu0 %v1941_v18  ;;  %2408 = vmatpush3.msra.mxu1 %v1941_v18  ;;  %v1899_v28 = vadd.f32 %v3945_v36, %v3246_v63  ;;  %v1933_v9 = vmax.f32 %v1901_v35, 0.0  ;;  %v1914_v33 = vadd.f32 %v3996_v55, %v3258_v24  ;;  %v1948_v27 = vmax.f32 %v1916_v4, 0.0  ;;  %v4218_v55 = vld [vmem:[#allocation8_spill] sm:$0xff] }
 0x29f   :  { %2222 = vmatprep.subr.mxu0 %v1956_v43  ;;  %2393 = vmatprep.subr.mxu1 %v1956_v43  ;;  %v1949_v17 = vmax.f32 %v1917_v8, 0.0  ;;  %v1898_v12 = vadd.f32 %v3941_v16, %v3258_v24  ;;  %v1932_v31 = vmax.f32 %v1900_v14, 0.0  ;;  %v1913_v59 = vadd.f32 %v3993_v51, %v3239_v6  ;;  %v4219_v16 = vld [vmem:[#allocation12_spill] sm:$0xff]  ;;  %v4220_v51 = vld [vmem:[#allocation11_spill] sm:$0xff] }
 0x2a0   :  { %2223 = vmatpush3.msra.mxu0 %v1940_v44  ;;  %2409 = vmatpush3.msra.mxu1 %v1940_v44  ;;  %v1947_v30 = vmax.f32 %v1915_v58, 0.0  ;;  %v1897_v36 = vadd.f32 %v3939_v53, %v3239_v6  ;;  %v1931_v47 = vmax.f32 %v1899_v28, 0.0  ;;  %v1912_v3 = vadd.f32 %v4218_v55, %v3249_v29  ;;  %v4221_v6 = vld [vmem:[#allocation6_spill] sm:$0xff] }
 0x2a1   :  { %2224 = vmatprep.subr.mxu0 %v1955_v56  ;;  %2394 = vmatprep.subr.mxu1 %v1955_v56  ;;  %v1946_v50 = vmax.f32 %v1914_v33, 0.0  ;;  %v1896_v22 = vadd.f32 %v4219_v16, %v3249_v29  ;;  %v1930_v21 = vmax.f32 %v1898_v12, 0.0  ;;  %v1911_v46 = vadd.f32 %v4220_v51, %v3246_v63  ;;  %v4223_v29 = vld [vmem:[#allocation10_spill] sm:$0xff] }
 0x2a2   :  { %2225 = vmatpush3.msra.mxu0 %v1939_v62  ;;  %2410 = vmatpush3.msra.mxu1 %v1939_v62  ;;  %v1945_v18 = vmax.f32 %v1913_v59, 0.0  ;;  %v1895_v53 = vadd.f32 %v4221_v6, %v3246_v63  ;;  %v1929_v34 = vmax.f32 %v1897_v36, 0.0  ;;  %v1910_v48 = vadd.f32 %v4222_v45, %v3258_v24  ;;  %v1958_v56 = vld [vmem:[%s4119_s5] sm:$0xff]  ;;  %v1965_v62 = vld [vmem:[%s4119_s5 + $0x38] sm:$0xff] }
 0x2a3   :  { %2226 = vmatprep.subr.mxu0 %v1954_v11  ;;  %2395 = vmatprep.subr.mxu1 %v1954_v11  ;;  %v1944_v43 = vmax.f32 %v1912_v3, 0.0  ;;  %v1894_v54 = vadd.f32 %v4223_v29, %v3258_v24  ;;  %v1928_v44 = vmax.f32 %v1896_v22, 0.0  ;;  %v1943_v32 = vmax.f32 %v1911_v46, 0.0  ;;  %v1962_v24 = vld [vmem:[%s4119_s5 + $0x20] sm:$0xff] }
 0x2a4   :  { %2227 = vmatpush3.msra.mxu0 %v1938_v15  ;;  %2411 = vmatpush3.msra.mxu1 %v1938_v15  ;;  %v1927_v10 = vmax.f32 %v1895_v53, 0.0  ;;  %v1942_v63 = vmax.f32 %v1910_v48, 0.0  ;;  %v1978_v15 = vpop.permute.xlu1 %1977 }
 0x2a5   :  { %2228 = vmatprep.subr.mxu0 %v1953_v7  ;;  %2396 = vmatprep.subr.mxu1 %v1953_v7  ;;  %v1926_v40 = vmax.f32 %v1894_v54, 0.0 }
 0x2a6   :  { %2229 = vmatpush3.msra.mxu0 %v1937_v13  ;;  %2412 = vmatpush3.msra.mxu1 %v1937_v13 }
 0x2a7   :  { %2230 = vmatprep.subr.mxu0 %v1952_v60  ;;  %2397 = vmatprep.subr.mxu1 %v1952_v60 }
 0x2a8   :  { %2231 = vmatpush3.msra.mxu0 %v1936_v1  ;;  %2413 = vmatpush3.msra.mxu1 %v1936_v1 }
 0x2a9   :  { %2232 = vmatprep.subr.mxu0 %v1951_v52  ;;  %2398 = vmatprep.subr.mxu1 %v1951_v52  ;;  %v1988_v52 = vpop.permute.xlu1 %1987 }
 0x2aa   :  { %2233 = vmatpush3.msra.mxu0 %v1935_v0  ;;  %2414 = vmatpush3.msra.mxu1 %v1935_v0 }
 0x2ab   :  { %2234 = vmatprep.subr.mxu0 %v1950_v19  ;;  %2399 = vmatprep.subr.mxu1 %v1950_v19 }
 0x2ac   :  { %2235 = vmatpush3.msra.mxu0 %v1934_v39  ;;  %2415 = vmatpush3.msra.mxu1 %v1934_v39 }
 0x2ad   :  { %2236 = vmatprep.subr.mxu0 %v1949_v17  ;;  %2400 = vmatprep.subr.mxu1 %v1949_v17 }
 0x2ae   :  { %2237 = vmatpush3.msra.mxu0 %v1933_v9  ;;  %2416 = vmatpush3.msra.mxu1 %v1933_v9 }
 0x2af   :  { %2238 = vmatprep.subr.mxu0 %v1948_v27  ;;  %2401 = vmatprep.subr.mxu1 %v1948_v27 }
 0x2b0   :  { %2239 = vmatpush3.msra.mxu0 %v1932_v31  ;;  %2417 = vmatpush3.msra.mxu1 %v1932_v31 }
 0x2b1   :  { %2240 = vmatprep.subr.mxu0 %v1947_v30  ;;  %2402 = vmatprep.subr.mxu1 %v1947_v30 }
 0x2b2   :  { %2241 = vmatpush3.msra.mxu0 %v1931_v47  ;;  %2418 = vmatpush3.msra.mxu1 %v1931_v47 }
 0x2b3   :  { %2242 = vmatprep.subr.mxu0 %v1946_v50  ;;  %2403 = vmatprep.subr.mxu1 %v1946_v50 }
 0x2b4   :  { %2243 = vmatpush3.msra.mxu0 %v1930_v21  ;;  %2419 = vmatpush3.msra.mxu1 %v1930_v21 }
 0x2b5   :  { %2244 = vmatprep.subr.mxu0 %v1945_v18  ;;  %2404 = vmatprep.subr.mxu1 %v1945_v18 }
 0x2b6   :  { %2245 = vmatpush3.msra.mxu0 %v1929_v34  ;;  %2420 = vmatpush3.msra.mxu1 %v1929_v34 }
 0x2b7   :  { %2246 = vmatprep.subr.mxu0 %v1944_v43  ;;  %2405 = vmatprep.subr.mxu1 %v1944_v43 }
 0x2b8   :  { %2247 = vmatpush3.msra.mxu0 %v1928_v44  ;;  %2421 = vmatpush3.msra.mxu1 %v1928_v44 }
 0x2b9   :  { %2248 = vmatprep.subr.mxu0 %v1943_v32  ;;  %2406 = vmatprep.subr.mxu1 %v1943_v32 }
 0x2ba   :  { %2249 = vmatpush3.msra.mxu0 %v1927_v10  ;;  %2422 = vmatpush3.msra.mxu1 %v1927_v10 }
 0x2bb   :  { %2250 = vmatprep.subr.mxu0 %v1942_v63  ;;  %2407 = vmatprep.subr.mxu1 %v1942_v63 }
 0x2bc   :  { %2251 = vmatpush3.msra.mxu0 %v1926_v40  ;;  %2423 = vmatpush3.msra.mxu1 %v1926_v40 }
 0x2bd   :  { %2055 = vmatmul.mubr.f32.vlgmr.msra.gmra.mxu0 %v1958_v56  ;;  %2065 = vmatmul.mubr.f32.vlgmr.msra.gmra.mxu1 %v1962_v24 }
 0x2be   :  { %2059 = vmatprep.mubr.f32.mxu0 %v1961_v57  ;;  %2069 = vmatprep.mubr.f32.mxu1 %v1965_v62 }
 0x2c1   :  { %2060 = vmatmul.mubr.f32.gmra.mxu0 %v1960_v37  ;;  %2070 = vmatmul.mubr.f32.gmra.mxu1 %v1964_v49 }
 0x37d   :  { %v2252_v11 = vpop.f32.mrf.mxu0  ;;  %v2258_v23 = vpop.f32.mrf.mxu1 }
 0x37f   :  { %v2253_v25 = vpop.f32.mrf.mxu0  ;;  %v2259_v5 = vpop.f32.mrf.mxu1 }
 0x380   :  { %v2254_v7 = vadd.f32 %v2253_v25, %v2252_v11  ;;  %v2260_v38 = vadd.f32 %v2259_v5, %v2258_v23 }
 0x381   :  { %v2255_v13 = vpop.f32.mrf.mxu0  ;;  %v2261_v61 = vpop.f32.mrf.mxu1 }
 0x382   :  { %v2057_v42 = vadd.f32 %v2254_v7, %v1973_v2  ;;  %v2067_v60 = vadd.f32 %v2260_v38, %v1983_v20 }
 0x383   :  { %v2256_v41 = vpop.f32.mrf.mxu0  ;;  %v2262_v1 = vpop.f32.mrf.mxu1 }
 0x384   :  { %2076 = vst.msk [vmem:[%s4120_s7] sm:$0xff] %vm2075_vm1, %v2057_v42  ;;  %2078 = vst.msk [vmem:[%s4120_s7 + $0x10] sm:$0xff] %vm2075_vm1, %v2067_v60  ;;  %v2257_v26 = vadd.f32 %v2256_v41, %v2255_v13  ;;  %v2263_v8 = vadd.f32 %v2262_v1, %v2261_v61 }
 0x386   :  { %v2062_v35 = vadd.f32 %v2257_v26, %v1978_v15  ;;  %v2072_v0 = vadd.f32 %v2263_v8, %v1988_v52 }
 0x388   :  { %2077 = vst.msk [vmem:[%s4120_s7 + $0x8] sm:$0xff] %vm2075_vm1, %v2062_v35  ;;  %2079 = vst.msk [vmem:[%s4120_s7 + $0x18] sm:$0xff] %vm2075_vm1, %v2072_v0 }

</bundles_post_ra>
